<compile_context>
chip_gen: v5e
topology: v5e:2x2
jax: 0.10.0
libtpu: 0.0.40
codegen_flags: <defaults>
</compile_context>

<pallas_src>
import jax
import jax.numpy as jnp
from jax.experimental import pallas as pl
from jax.experimental.pallas import tpu as pltpu


# MXU precision for the f32 matmul. HIGHEST = fp32 parity with the PyTorch
# reference (multiple bf16 MXU passes). Use jax.lax.Precision.HIGH for ~2x
# MXU throughput if ~1e-5 relative error is acceptable.
_MXU_PRECISION = jax.lax.Precision.HIGHEST


def _round_up(x: int, m: int) -> int:
    return ((x + m - 1) // m) * m


def _physical_vmem_bytes() -> int:
    """Per-core VMEM capacity; conservative 64 MiB fallback (v7x-sized)."""
    try:
        info = pltpu.get_tpu_info()
        cap = getattr(info, "vmem_capacity_bytes", None)
        if cap:
            return int(cap)
    except Exception:
        pass
    return 64 << 20


# ------------------------- kernels ------------------------- #

def _matmul_acc_kernel(a_ref, b_ref, o_ref):
    """Tiled matmul; accumulates directly into the resident f32 output tile."""
    @pl.when(pl.program_id(2) == 0)
    def _():
        o_ref[...] = jnp.zeros_like(o_ref)

    o_ref[...] += jnp.dot(a_ref[...], b_ref[...],
                          precision=_MXU_PRECISION,
                          preferred_element_type=jnp.float32)


def _matmul_small_kernel(a_ref, b_ref, o_ref):
    """Small-problem path: one MXU pass per M-stripe (A/C pipelined)."""
    o_ref[...] = jnp.dot(a_ref[...], b_ref[...],
                         precision=_MXU_PRECISION,
                         preferred_element_type=jnp.float32)


# ------------------------- wrappers ------------------------- #

def _matmul_small(a: jax.Array, b: jax.Array, bm: int = 128) -> jax.Array:
    """Whole B resident in VMEM; 1-D grid over M pipelines A loads / C stores."""
    M, K = a.shape
    _, N = b.shape
    bm = M if M <= bm else bm          # bm is a multiple of 8 or the full M
    grid_m = pl.cdiv(M, bm)

    return pl.pallas_call(
        _matmul_small_kernel,
        out_shape=jax.ShapeDtypeStruct((M, N), jnp.float32),
        grid_spec=pltpu.PrefetchScalarGridSpec(
            num_scalar_prefetch=0,
            grid=(grid_m,),
            in_specs=[
                pl.BlockSpec((bm, K), lambda i: (i, 0)),
                pl.BlockSpec((K, N), lambda i: (0, 0)),   # fetched once
            ],
            out_specs=pl.BlockSpec((bm, N), lambda i: (i, 0)),
        ),
        compiler_params=pltpu.CompilerParams(
            dimension_semantics=("parallel",),
            vmem_limit_bytes=32 << 20),
        cost_estimate=pl.CostEstimate(
            flops=2 * M * N * K, transcendentals=0,
            bytes_accessed=4 * (M * K + K * N + M * N)),
    )(a, b)


def _matmul_tiled(a: jax.Array, b: jax.Array, tm: int, tn: int,
                  tk: int) -> jax.Array:
    M, K = a.shape
    _, N = b.shape

    physical = _physical_vmem_bytes()
    budget = (physical * 3) // 4       # ~48 MiB on v7x, ~96 MiB on v5e/v6e

    # On 128-MiB-VMEM chips (v5e/v6e), widen the N tile to halve A re-reads.
    if budget >= (90 << 20):
        tn = max(tn, 2048)

    # Clamp tiles to the problem (sublane mult-of-8 / lane mult-of-128).
    tm = min(tm, _round_up(M, 8))
    tn = min(tn, _round_up(N, 128))
    tk = min(tk, _round_up(K, 128))

    # Megacore (v7x): ensure the parallel axes have >= 2 blocks combined so
    # both TensorCores get work.
    if pl.cdiv(M, tm) * pl.cdiv(N, tn) < 2 and M > 8:
        tm = max(8, _round_up(pl.cdiv(M, 2), 8))

    # Only K needs zero padding (zeros contribute nothing to the reduction).
    # M/N edge blocks rely on Pallas masking out-of-bounds output writes, so
    # no M/N padding and no output slice (saves full HBM passes).
    Kp = _round_up(K, tk)
    a_p = a if Kp == K else jnp.pad(a, ((0, 0), (0, Kp - K)))
    b_p = b if Kp == K else jnp.pad(b, ((0, Kp - K), (0, 0)))

    gm, gn, gk = pl.cdiv(M, tm), pl.cdiv(N, tn), Kp // tk

    # Double-buffered A/B/C tiles + compiler internal scratch slack.
    vmem_needed = 2 * (tm * tk + tk * tn + tm * tn) * 4 + (8 << 20)
    vmem_limit = int(min(max(vmem_needed, 32 << 20), budget))

    return pl.pallas_call(
        _matmul_acc_kernel,
        out_shape=jax.ShapeDtypeStruct((M, N), jnp.float32),
        grid_spec=pltpu.PrefetchScalarGridSpec(
            num_scalar_prefetch=0,
            grid=(gm, gn, gk),
            in_specs=[
                pl.BlockSpec((tm, tk), lambda i, j, k: (i, k)),
                pl.BlockSpec((tk, tn), lambda i, j, k: (k, j)),
            ],
            out_specs=pl.BlockSpec((tm, tn), lambda i, j, k: (i, j)),
        ),
        compiler_params=pltpu.CompilerParams(
            dimension_semantics=("parallel", "parallel", "arbitrary"),
            vmem_limit_bytes=vmem_limit),
        cost_estimate=pl.CostEstimate(
            flops=2 * M * N * K, transcendentals=0,
            # Realistic traffic: A re-read per N tile, B per M tile, C once.
            bytes_accessed=4 * (M * Kp * gn + Kp * N * gm + M * N)),
    )(a_p, b_p)


def matmul(a: jax.Array, b: jax.Array, *, tm: int = 1024, tn: int = 1024,
           tk: int = 512, force_tiled: bool = False) -> jax.Array:
    """C = A @ B in float32 via Pallas (matches ModelNew.forward semantics)."""
    a = a.astype(jnp.float32)
    b = b.astype(jnp.float32)
    M, K = a.shape
    K2, N = b.shape
    assert K == K2, "inner dims must match"

    # Small problems: B resident, pipelined 1-D grid over M.
    total_bytes = 4 * (M * K + K * N + M * N)
    if not force_tiled and total_bytes <= (8 << 20):
        return _matmul_small(a, b)

    return _matmul_tiled(a, b, tm, tn, tk)


if __name__ == "__main__":
    key = jax.random.PRNGKey(0)
    ka, kb, kc, kd = jax.random.split(key, 4)

    # 1) Small square case (matches the PyTorch module's N x N use) ->
    #    pipelined small-problem path.
    N = 256
    A = jax.random.normal(ka, (N, N), dtype=jnp.float32)
    B = jax.random.normal(kb, (N, N), dtype=jnp.float32)
    C = jax.block_until_ready(matmul(A, B))
    C_ref = jnp.dot(A, B, precision=jax.lax.Precision.HIGHEST,
                    preferred_element_type=jnp.float32)
    err = float(jnp.max(jnp.abs(C - C_ref)))
    tol = 1e-3 * max(1.0, float(jnp.max(jnp.abs(C_ref))))
    assert err < tol, f"small path error too large: {err} (tol {tol})"

    # 2) Exercise the tiled path: non tile-divisible M/N (masked edge blocks),
    #    K that needs zero padding, multi-step K accumulation, megacore split.
    M2, K2_, N2 = 300, 640, 384
    A2 = jax.random.normal(kc, (M2, K2_), dtype=jnp.float32)
    B2 = jax.random.normal(kd, (K2_, N2), dtype=jnp.float32)
    C2 = jax.block_until_ready(matmul(A2, B2, force_tiled=True))
    C2_ref = jnp.dot(A2, B2, precision=jax.lax.Precision.HIGHEST,
                     preferred_element_type=jnp.float32)
    err2 = float(jnp.max(jnp.abs(C2 - C2_ref)))
    tol2 = 1e-3 * max(1.0, float(jnp.max(jnp.abs(C2_ref))))
    assert err2 < tol2, f"tiled path error too large: {err2} (tol {tol2})"

    print("KERNEL_OK")
</pallas_src>

<mosaic_0001>
module attributes {stable_mosaic.version = 11 : i64} {
  func.func @_matmul_small_kernel(%arg0: i32, %arg1: memref<128x256xf32, #tpu.memory_space<vmem>>, %arg2: memref<256x256xf32, #tpu.memory_space<vmem>>, %arg3: memref<128x256xf32, #tpu.memory_space<vmem>>) attributes {dimension_semantics = [#tpu.dimension_semantics<parallel>], iteration_bounds = array<i64: 2>, scalar_prefetch = 0 : i64, scratch_operands = 0 : i64, tpu.core_type = #tpu.core_type<tc>, window_params = [{transform_indices = @transform_0, window_bounds = array<i64: 128, 256>}, {pipeline_mode = #tpu.pipeline_mode<synchronous>, transform_indices = @transform_1, window_bounds = array<i64: 256, 256>}, {transform_indices = @transform_2, window_bounds = array<i64: 128, 256>}]} {
    %c0 = arith.constant 0 : index
    %c0_0 = arith.constant 0 : index
    %0 = vector.load %arg1[%c0, %c0_0] : memref<128x256xf32, #tpu.memory_space<vmem>>, vector<128x256xf32>
    %c0_1 = arith.constant 0 : index
    %c0_2 = arith.constant 0 : index
    %1 = vector.load %arg2[%c0_1, %c0_2] : memref<256x256xf32, #tpu.memory_space<vmem>>, vector<256x256xf32>
    %cst = arith.constant dense<0.000000e+00> : vector<128x256xf32>
    %2 = tpu.matmul %0, %1, %cst {dimension_numbers = #tpu.dot_dimension_numbers<[1], [0], [0], [1], [0, 0, 1, 1], [], []>, precision = #tpu.contract_precision<fp32>} : vector<128x256xf32>, vector<256x256xf32>, vector<128x256xf32> -> vector<128x256xf32>
    %c0_3 = arith.constant 0 : index
    %c0_4 = arith.constant 0 : index
    %3 = vector.load %arg3[%c0_3, %c0_4] : memref<128x256xf32, #tpu.memory_space<vmem>>, vector<128x256xf32>
    tpu.vector_store %arg3[%c0_3, %c0_4], %2 {strides = array<i32>} : memref<128x256xf32, #tpu.memory_space<vmem>>, vector<128x256xf32>,
    return
  }
  func.func @transform_0(%arg0: i32) -> (i32, i32) {
    %c0_i32 = arith.constant 0 : i32
    %c0_i32_0 = arith.constant 0 : i32
    return %arg0, %c0_i32 : i32, i32
  }
  func.func @transform_1(%arg0: i32) -> (i32, i32) {
    %c0_i32 = arith.constant 0 : i32
    %c0_i32_0 = arith.constant 0 : i32
    %c0_i32_1 = arith.constant 0 : i32
    return %c0_i32, %c0_i32_0 : i32, i32
  }
  func.func @transform_2(%arg0: i32) -> (i32, i32) {
    %c0_i32 = arith.constant 0 : i32
    %c0_i32_0 = arith.constant 0 : i32
    return %arg0, %c0_i32 : i32, i32
  }
}

</mosaic_0001>

<bundles_post_ra>
// kernel: tpu_custom_call.1
= control target key start
LH: loop header
LB: loop body
LE: loop exit
PB: predicated region body
PF: predicated region fallthrough
CT: control target
= control target key end

     0   :  { %7 = vsyncpa [#allocation3], 0  ;;  %s6008_s0 = inlined_call_operand.hbm [shape: f32[256,256], index: 0, kind: input, shape index: {}]   ;;  %s6009_s1 = inlined_call_operand.hbm [shape: f32[256,256], index: 1, kind: input, shape index: {}]   ;;  %s6010_s2 = inlined_call_operand.hbm [shape: f32[256,256], index: 2, kind: output, shape index: {}]  }
   0x1   :  { %9 = vsyncpa [#allocation3 + $0x1], 0 }
   0x2   :  { %10 = vsyncpa [#allocation6], 0 }
   0x3   :  { %11 = vsyncpa [#allocation4], 0 }
   0x4   :  { %13 = vsyncpa [#allocation4 + $0x1], 0  ;;  %s3871_s9 = smov 0   ;;  %s3873_s10 = smov 0  }
   0x5   :  { %s3875_s11 = smov 0   ;;  %s3877_s12 = smov 0  }
   0x6 LB: > { %s3892_s13 = sadd.s32 4294967295, %s3849_s12   ;;  %s3636_s14 = sadd.s32 4294967294, %s3849_s12   ;;  %s3849_s12 = sphi %s3877_s12, %s6592_s12   ;;  %s3845_s11 = sphi %s3875_s11, %s6591_s11   ;;  %s3841_s10 = sphi %s3873_s10, %s6590_s10   ;;  %s3837_s9 = sphi %s3871_s9, %s6589_s9  }
   0x7   : > { %p39_p0 = scmp.ne.s32.totalorder %s3841_s10, %s3837_s9  ;;  %p40_p1 = scmp.eq.s32.totalorder %s3892_s13, 0 }
   0x8   : > { %p84_p2 = scmp.eq.s32.totalorder %s3892_s13, 1  ;;  %p90_p3 = scmp.eq.s32.totalorder %s3636_s14, 1 }
   0x9   : > { %p3901_p4 = por %p40_p1, %p39_p0  ;;  %p3637_p5 = scmp.ge.s32.totalorder %s3849_s12, 1 }
   0xa   : > { %p3906_p6 = por %p90_p3, %p39_p0  ;;  %p97_p7 = scmp.lt.s32.totalorder %s3849_s12, 3 }
   0xb   : > { %s108_s19 = sshll.u32 %s6009_s1, 4  ;;  %s3851_s21 = smov [#allocation5]   ;;  %s109_s19 = int_to_ptr.hbm [resolvable:$true] %s108_s19 }
   0xc   : > { %p3914_p8 = pnand %p3637_p5, %p97_p7  ;;  %s110_s22 = sshll.u32 %s3851_s21, 4  ;;  %s111_s22 = int_to_ptr.vmem [resolvable:$true] %s110_s22 }
   0xd   : > { %s3924_s23 = sadd.s32 1, %s3849_s12   ;;  %s3852_s24 = smov 256  }
   0xe   : > { %p3666_p9 = pneg %p3914_p8  ;;  %s3853_s25 = smov 16  }
   0xf   : > { %s23_s26 = ssub.s32 %s3849_s12, %s3924_s23  ;;  %s26_s27 = sadd.s32 1, %s3845_s11 }
  0x10   : > { %p3667_p10 = pnand %p3666_p9, %p40_p1  ;;  %p24_p12 = scmp.eq.s32.totalorder %s23_s26, 0 }
  0x11   : > { %p33_p13 = scmp.ne.s32.totalorder %s3845_s11, %s3841_s10  ;;  %p34_p0 = scmp.eq.s32.totalorder %s3849_s12, 0 }
  0x12   : > { %3669 = dma.hbm_to_vmem [thread:$0]  (!%p3667_p10), %s109_s19, 8192, %s111_s22, [#allocation6], %s3852_s24, %s3852_s24, %s3853_s25  }
  0x13   : > { %s3936_s28 = scalar_select %p24_p12, %s3845_s11, %s26_s27  }
  0x14   : > { %p3940_p3 = por %p84_p2, %p33_p13  ;;  %p3679_p5 = scmp.lt.s32.totalorder %s3849_s12, 2 }
  0x15   : > { %s124_s30 = sand.u32 1, %s3845_s11   ;;  %s3655_s3 = sshll.u32 %s3849_s12, 8 }
  0x16   : > { %p35_p7 = por %p34_p0, %p33_p13  ;;  %s3640_s4 = sshll.u32 %s124_s30, 8 }
  0x17   : > { %s134_s7 = scalar_lea.hbm %s6008_s0, %s3655_s3  ;;  %s128_s14 = scalar_lea.vmem [#allocation2], %s3640_s4 }
  0x18   : > { %s135_s8 = sshll.u32 %s134_s7, 4  ;;  %s137_s17 = sshll.u32 %s128_s14, 4  ;;  %s136_s8 = int_to_ptr.hbm [resolvable:$true] %s135_s8  ;;  %s138_s17 = int_to_ptr.vmem [resolvable:$true] %s137_s17 }
  0x19   : > { %p3950_p9 = pnand %p3679_p5, %p35_p7  ;;  %s125_s19 = scalar_lea.sflag [#allocation3], %s124_s30 }
  0x1a   : > { %s3749_s21 = sshra.s32 %s136_s8, 4  ;;  %s3756_s3 = scalar_lea.hbm %s6008_s0, 512  ;;  %s3750_s21 = int_to_ptr.hbm [resolvable:$true] %s3749_s21 }
  0x1b   : > { %s3751_s22 = scalar_lea.hbm %s3750_s21, 256  ;;  %p3753_p10 = pneg %p3950_p9 }
  0x1c   : > { %p3752_p2 = scmp.ne.s32.totalorder %s3750_s21, %s3751_s22  ;;  %p3757_p0 = scmp.lt.s32.totalorder %s3750_s21, %s6008_s0 }
  0x1d   : > { %p3758_p5 = scmp.lt.s32.totalorder %s3756_s3, %s3751_s22 }
  0x1e   : > { %p3754_p12 = pnand %p3753_p10, %p3752_p2 }
  0x1f   : > { %p3759_p7 = por %p3758_p5, %p3757_p0 }
  0x20   : > { %p3755_p13 = pneg %p3754_p12 }
  0x22   : > { %p3760_p11 = pnand %p3759_p7, %p3755_p13 }
  0x24   : > { %3763 = shalt.err (!%p3760_p11)
}
  0x25   : > { %3673 = dma.hbm_to_vmem [thread:$0]  (!%p3950_p9), %s136_s8, 4096, %s138_s17, %s125_s19, %s3852_s24, %s3852_s24, %s3853_s25  }
  0x26   : > { %149 = sbr.rel (%p3914_p8) target bundleno = 988 (0x3dc), region = 28 }
  0x2b   : > { %s3970_s30 = sand.u32 1, %s3841_s10  }
  0x2c   : > { %s3645_s6 = sshll.u32 %s3970_s30, 8  ;;  %s152_s7 = scalar_lea.sflag [#allocation3], %s3970_s30 }
  0x2d   : > { %s3976_s14 = scalar_lea.vmem [#allocation2], %s3645_s6 }
  0x2e   : > { %3824 = dma.done.wait (%p3901_p4), %s152_s7, 4096  }
  0x2f   : > { %3826 = vsyncadd (%p3901_p4), %s152_s7, 4294963200 }
  0x30   : > { %3828 = dma.done.wait (%p40_p1), [#allocation6], 8192  }
  0x31   : > { %3830 = vsyncadd (%p40_p1), [#allocation6], 4294959104  ;;  %v246_v0 = vld [vmem:[#allocation5 + $0xf0] sm:$0xff]  ;;  %v244_v1 = vld [vmem:[#allocation5 + $0xe0] sm:$0xff]  ;;  %s5457_s15 = scalar_lea.vmem [#allocation7], %s3645_s6  ;;  %s3657_s20 = sshll.u32 %s3892_s13, 8 }
  0x32   : > { %v242_v2 = vld [vmem:[#allocation5 + $0xd0] sm:$0xff]  ;;  %v3986_v3 = vand.u32 4294901760, %v246_v0  ;;  %v3988_v4 = vand.u32 4294901760, %v244_v1  ;;  %v240_v6 = vld [vmem:[#allocation5 + $0xc0] sm:$0xff]  ;;  %s3549_s8 = scalar_lea.hbm %s6010_s2, %s3657_s20  ;;  %s3550_s17 = sshll.u32 %s5457_s15, 4  ;;  %s3551_s17 = int_to_ptr.vmem [resolvable:$true] %s3550_s17 }
  0x33   : > { %v3990_v5 = vand.u32 4294901760, %v242_v2  ;;  %v238_v7 = vld [vmem:[#allocation5 + $0xb0] sm:$0xff]  ;;  %v236_v8 = vld [vmem:[#allocation5 + $0xa0] sm:$0xff]  ;;  %v3992_v9 = vand.u32 4294901760, %v240_v6  ;;  %s3552_s18 = sshll.u32 %s3549_s8, 4  ;;  %s3537_s13 = scalar_lea.sflag [#allocation4], %s3970_s30  ;;  %s3553_s18 = int_to_ptr.hbm [resolvable:$true] %s3552_s18 }
  0x34   : > { %v3994_v10 = vand.u32 4294901760, %v238_v7  ;;  %v3996_v11 = vand.u32 4294901760, %v236_v8  ;;  %v234_v12 = vld [vmem:[#allocation5 + $0x90] sm:$0xff]  ;;  %v232_v13 = vld [vmem:[#allocation5 + $0x80] sm:$0xff]  ;;  %281 = vmatpush.msra.mxu0 %v3986_v3  ;;  %v4000_v14 = vsub.f32 %v246_v0, %v3986_v3  ;;  %v4003_v15 = vsub.f32 %v244_v1, %v3988_v4  ;;  %732 = vmatpush.msra.mxu3 %v3986_v3  ;;  %s3793_s19 = sshra.s32 %s3553_s18, 4  ;;  %s3799_s27 = scalar_lea.hbm %s6010_s2, 512  ;;  %s3794_s19 = int_to_ptr.hbm [resolvable:$true] %s3793_s19 }
  0x35   : > { %v4007_v16 = vsub.f32 %v242_v2, %v3990_v5  ;;  %v4009_v17 = vand.u32 4294901760, %v234_v12  ;;  %v230_v18 = vld [vmem:[#allocation5 + $0x70] sm:$0xff]  ;;  %v4012_v19 = vsub.f32 %v240_v6, %v3992_v9  ;;  %v4025_v25 = vand.u32 4294901760, %v232_v13  ;;  %v228_v26 = vld [vmem:[#allocation5 + $0x60] sm:$0xff]  ;;  %s3795_s21 = scalar_lea.hbm %s3794_s19, 256  ;;  %p3800_p11 = scmp.lt.s32.totalorder %s3794_s19, %s6010_s2 }
  0x36   : > { %v4015_v20 = vsub.f32 %v238_v7, %v3994_v10  ;;  %v4018_v21 = vsub.f32 %v236_v8, %v3996_v11  ;;  %283 = vmatpush.msra.mxu0 %v3988_v4  ;;  %604 = vmatpush.msra.mxu2 %v4000_v14  ;;  %v6028_v22 = vand.u32 4294901760, %v4000_v14  ;;  %v6027_v23 = vand.u32 4294901760, %v4003_v15  ;;  %v226_v36 = vld [vmem:[#allocation5 + $0x50] sm:$0xff]  ;;  %v224_v41 = vld [vmem:[#allocation5 + $0x40] sm:$0xff]  ;;  %p3796_p1 = scmp.ne.s32.totalorder %s3794_s19, %s3795_s21  ;;  %p3801_p9 = scmp.lt.s32.totalorder %s3799_s27, %s3795_s21 }
  0x37   : > { %v6024_v24 = vand.u32 4294901760, %v4007_v16  ;;  %734 = vmatpush.msra.mxu3 %v3988_v4  ;;  %v6021_v27 = vand.u32 4294901760, %v4012_v19  ;;  %v4029_v28 = vand.u32 4294901760, %v230_v18  ;;  %v4032_v29 = vsub.f32 %v234_v12, %v4009_v17  ;;  %v222_v49 = vld [vmem:[#allocation5 + $0x30] sm:$0xff]  ;;  %v220_v55 = vld [vmem:[#allocation5 + $0x20] sm:$0xff] }
  0x38   : > { %285 = vmatpush.msra.mxu0 %v3990_v5  ;;  %607 = vmatpush.msra.mxu2 %v4003_v15  ;;  %v444_v30 = vsub.f32 %v4000_v14, %v6028_v22  ;;  %v450_v31 = vsub.f32 %v4003_v15, %v6027_v23  ;;  %v6020_v33 = vand.u32 4294901760, %v4015_v20  ;;  %v4047_v34 = vand.u32 4294901760, %v228_v26  ;;  %v184_v56 = vld [vmem:[%s3976_s14] sm:$0xff]  ;;  %v218_v60 = vld [vmem:[#allocation5 + $0x10] sm:$0xff]  ;;  %p3797_p4 = pnand %p3796_p1, %p3940_p3  ;;  %p3802_p2 = por %p3801_p9, %p3800_p11 }
  0x39   : > { %v456_v32 = vsub.f32 %v4007_v16, %v6024_v24  ;;  %736 = vmatpush.msra.mxu3 %v3990_v5  ;;  %v6018_v35 = vand.u32 4294901760, %v4018_v21  ;;  %v462_v39 = vsub.f32 %v4012_v19, %v6021_v27  ;;  %v4056_v40 = vsub.f32 %v232_v13, %v4025_v25  ;;  %v278_v63 = vld [vmem:[#allocation5 + $0x1f0] sm:$0xff]  ;;  %v216_v13 = vld [vmem:[#allocation5] sm:$0xff] }
  0x3a   : > { %287 = vmatpush.msra.mxu0 %v3992_v9  ;;  %v445_v37 = vand.u32 4294901760, %v444_v30  ;;  %610 = vmatpush.msra.mxu2 %v4007_v16  ;;  %v451_v38 = vand.u32 4294901760, %v450_v31  ;;  %v6017_v42 = vand.u32 4294901760, %v4032_v29  ;;  %v4061_v43 = vsub.f32 %v230_v18, %v4029_v28  ;;  %p3798_p8 = pneg %p3797_p4 }
  0x3b   : > { %738 = vmatpush.msra.mxu3 %v3992_v9  ;;  %v457_v44 = vand.u32 4294901760, %v456_v32  ;;  %v468_v45 = vsub.f32 %v4015_v20, %v6020_v33  ;;  %v4067_v46 = vand.u32 4294901760, %v226_v36  ;;  %v474_v47 = vsub.f32 %v4018_v21, %v6018_v35  ;;  %v186_v32 = vld [vmem:[%s3976_s14 + $0x10] sm:$0xff] }
  0x3c   : > { %289 = vmatpush.msra.mxu0 %v3994_v10  ;;  %446 = vmatpush.msra.mxu1 %v445_v37  ;;  %v4074_v48 = vand.u32 4294901760, %v224_v41  ;;  %v463_v50 = vand.u32 4294901760, %v462_v39  ;;  %v6015_v51 = vand.u32 4294901760, %v4056_v40  ;;  %v4079_v52 = vsub.f32 %v228_v26, %v4047_v34  ;;  %p3803_p10 = pnand %p3802_p2, %p3798_p8 }
  0x3d   : > { %613 = vmatpush.msra.mxu2 %v4012_v19  ;;  %740 = vmatpush.msra.mxu3 %v3994_v10  ;;  %v480_v53 = vsub.f32 %v4032_v29, %v6017_v42  ;;  %v6014_v54 = vand.u32 4294901760, %v4061_v43  ;;  %v469_v57 = vand.u32 4294901760, %v468_v45  ;;  %v4089_v58 = vand.u32 4294901760, %v222_v49  ;;  %v272_v42 = vld [vmem:[#allocation5 + $0x1c0] sm:$0xff] }
  0x3e   : > { %291 = vmatpush.msra.mxu0 %v3996_v11  ;;  %452 = vmatpush.msra.mxu1 %v451_v38  ;;  %v4092_v59 = vsub.f32 %v226_v36, %v4067_v46  ;;  %v475_v61 = vand.u32 4294901760, %v474_v47  ;;  %v4097_v62 = vsub.f32 %v224_v41, %v4074_v48  ;;  %v486_v0 = vsub.f32 %v4056_v40, %v6015_v51  ;;  %v276_v36 = vld [vmem:[#allocation5 + $0x1e0] sm:$0xff] }
  0x3f   : > { %616 = vmatpush.msra.mxu2 %v4015_v20  ;;  %742 = vmatpush.msra.mxu3 %v3996_v11  ;;  %v4103_v1 = vand.u32 4294901760, %v220_v55  ;;  %v6013_v2 = vand.u32 4294901760, %v4079_v52  ;;  %v4106_v6 = vand.u32 4294901760, %v184_v56  ;;  %v481_v7 = vand.u32 4294901760, %v480_v53 }
  0x40   : > { %293 = vmatpush.msra.mxu0 %v4009_v17  ;;  %458 = vmatpush.msra.mxu1 %v457_v44  ;;  %v492_v8 = vsub.f32 %v4061_v43, %v6014_v54  ;;  %v4113_v12 = vand.u32 4294901760, %v218_v60  ;;  %v6011_v18 = vand.u32 4294901760, %v4092_v59  ;;  %v4118_v26 = vsub.f32 %v222_v49, %v4089_v58 }
  0x41   : > { %619 = vmatpush.msra.mxu2 %v4018_v21  ;;  %744 = vmatpush.msra.mxu3 %v4009_v17  ;;  %6250 = vst [vmem:[#allocation11_spill] sm:$0xff] %v4106_v6  ;;  %v4121_v30 = vsub.f32 %v184_v56, %v4106_v6  ;;  %v4123_v31 = vand.u32 4294901760, %v278_v63  ;;  %v6012_v37 = vand.u32 4294901760, %v4097_v62  ;;  %v487_v38 = vand.u32 4294901760, %v486_v0 }
  0x42   : > { %295 = vmatpush.msra.mxu0 %v4025_v25  ;;  %464 = vmatpush.msra.mxu1 %v463_v50  ;;  %v498_v39 = vsub.f32 %v4079_v52, %v6013_v2  ;;  %v4133_v41 = vand.u32 4294901760, %v216_v13  ;;  %v4136_v44 = vsub.f32 %v220_v55, %v4103_v1  ;;  %v493_v45 = vand.u32 4294901760, %v492_v8 }
  0x43   : > { %622 = vmatpush.msra.mxu2 %v4032_v29  ;;  %746 = vmatpush.msra.mxu3 %v4025_v25  ;;  %6251 = vst [vmem:[#allocation12_spill] sm:$0xff] %v4121_v30  ;;  %v4141_v47 = vand.u32 4294901760, %v4121_v30  ;;  %v4143_v49 = vand.u32 4294901760, %v186_v32  ;;  %v4145_v50 = vand.u32 4294901760, %v276_v36  ;;  %v504_v53 = vsub.f32 %v4092_v59, %v6011_v18 }
  0x44   : > { %297 = vmatpush.msra.mxu0 %v4029_v28  ;;  %470 = vmatpush.msra.mxu1 %v469_v57  ;;  %v6016_v55 = vand.u32 4294901760, %v4118_v26  ;;  %v4153_v56 = vsub.f32 %v218_v60, %v4113_v12  ;;  %v4156_v57 = vsub.f32 %v278_v63, %v4123_v31  ;;  %v510_v0 = vsub.f32 %v4097_v62, %v6012_v37 }
  0x45   : > { %625 = vmatpush.msra.mxu2 %v4056_v40  ;;  %748 = vmatpush.msra.mxu3 %v4029_v28  ;;  %6252 = vst [vmem:[#allocation13_spill] sm:$0xff] %v4141_v47  ;;  %v6019_v60 = vand.u32 4294901760, %v4136_v44  ;;  %v4166_v8 = vsub.f32 %v216_v13, %v4133_v41  ;;  %v4169_v63 = vsub.f32 %v276_v36, %v4145_v50  ;;  %v505_v13 = vand.u32 4294901760, %v504_v53 }
  0x46   : > { %299 = vmatpush.msra.mxu0 %v4047_v34  ;;  %476 = vmatpush.msra.mxu1 %v475_v61  ;;  %6253 = vst [vmem:[#allocation14_spill] sm:$0xff] %v4143_v49  ;;  %v274_v61 = vld [vmem:[#allocation5 + $0x1d0] sm:$0xff]  ;;  %v315_v18 = vsub.f32 %v4121_v30, %v4141_v47  ;;  %v4176_v37 = vsub.f32 %v186_v32, %v4143_v49  ;;  %v6022_v2 = vand.u32 4294901760, %v4153_v56  ;;  %v6023_v54 = vand.u32 4294901760, %v4156_v57 }
  0x47   : > { %628 = vmatpush.msra.mxu2 %v4061_v43  ;;  %750 = vmatpush.msra.mxu3 %v4047_v34  ;;  %v516_v36 = vsub.f32 %v4118_v26, %v6016_v55  ;;  %v511_v51 = vand.u32 4294901760, %v510_v0  ;;  %v522_v32 = vsub.f32 %v4136_v44, %v6019_v60  ;;  %v6026_v53 = vand.u32 4294901760, %v4169_v63 }
  0x48   : > { %301 = vmatpush.msra.mxu0 %v4067_v46  ;;  %482 = vmatpush.msra.mxu1 %v481_v7  ;;  %v499_v7 = vand.u32 4294901760, %v498_v39  ;;  %6254 = vst [vmem:[#allocation15_spill] sm:$0xff] %v4176_v37  ;;  %v4179_v39 = vand.u32 4294901760, %v274_v61  ;;  %v4198_v35 = vand.u32 4294901760, %v315_v18  ;;  %v4202_v0 = vand.u32 4294901760, %v4176_v37 }
  0x49   : > { %631 = vmatpush.msra.mxu2 %v4079_v52  ;;  %752 = vmatpush.msra.mxu3 %v4067_v46  ;;  %v4207_v60 = vand.u32 4294901760, %v272_v42  ;;  %v517_v33 = vand.u32 4294901760, %v516_v36  ;;  %v528_v18 = vsub.f32 %v4153_v56, %v6022_v2  ;;  %v1250_v27 = vsub.f32 %v4156_v57, %v6023_v54 }
  0x4a   : > { %303 = vmatpush.msra.mxu0 %v4074_v48  ;;  %488 = vmatpush.msra.mxu1 %v487_v38  ;;  %v188_v38 = vld [vmem:[%s3976_s14 + $0x20] sm:$0xff]  ;;  %6256 = vst [vmem:[#allocation17_spill] sm:$0xff] %v4198_v35  ;;  %v1256_v2 = vsub.f32 %v4169_v63, %v6026_v53 }
  0x4b   : > { %634 = vmatpush.msra.mxu2 %v4092_v59  ;;  %754 = vmatpush.msra.mxu3 %v4074_v48  ;;  %v4195_v55 = vand.u32 4294901760, %v188_v38  ;;  %6257 = vst [vmem:[#allocation18_spill] sm:$0xff] %v4202_v0  ;;  %v529_v24 = vand.u32 4294901760, %v528_v18 }
  0x4c   : > { %305 = vmatpush.msra.mxu0 %v4089_v58  ;;  %494 = vmatpush.msra.mxu1 %v493_v45  ;;  %v6025_v45 = vand.u32 4294901760, %v4166_v8 }
  0x4d   : > { %637 = vmatpush.msra.mxu2 %v4097_v62  ;;  %756 = vmatpush.msra.mxu3 %v4089_v58  ;;  %6255 = vst [vmem:[#allocation16_spill] sm:$0xff] %v4195_v55  ;;  %v4233_v54 = vsub.f32 %v188_v38, %v4195_v55  ;;  %v1257_v38 = vand.u32 4294901760, %v1256_v2  ;;  %v6264_v2 = vand.u32 4294901760, %v4003_v15 }
  0x4e   : > { %307 = vmatpush.msra.mxu0 %v4103_v1  ;;  %500 = vmatpush.msra.mxu1 %v499_v7  ;;  %v4205_v7 = vsub.f32 %v274_v61, %v4179_v39  ;;  %v4219_v61 = vsub.f32 %v272_v42, %v4207_v60  ;;  %v534_v36 = vsub.f32 %v4166_v8, %v6025_v45  ;;  %v1251_v45 = vand.u32 4294901760, %v1250_v27 }
  0x4f   : > { %640 = vmatpush.msra.mxu2 %v4118_v26  ;;  %758 = vmatpush.msra.mxu3 %v4103_v1  ;;  %v323_v42 = vsub.f32 %v4176_v37, %v4202_v0  ;;  %6258 = vst [vmem:[#allocation19_spill] sm:$0xff] %v4233_v54  ;;  %v4250_v18 = vand.u32 4294901760, %v4233_v54 }
  0x50   : > { %309 = vmatpush.msra.mxu0 %v4113_v12  ;;  %506 = vmatpush.msra.mxu1 %v505_v13  ;;  %v523_v13 = vand.u32 4294901760, %v522_v32  ;;  %v190_v32 = vld [vmem:[%s3976_s14 + $0x30] sm:$0xff]  ;;  %v535_v23 = vand.u32 4294901760, %v534_v36  ;;  %v6263_v53 = vand.u32 4294901760, %v4205_v7 }
  0x51   : > { %643 = vmatpush.msra.mxu2 %v4136_v44  ;;  %760 = vmatpush.msra.mxu3 %v4113_v12  ;;  %v4242_v22 = vand.u32 4294901760, %v190_v32  ;;  %v4247_v27 = vand.u32 4294901760, %v323_v42  ;;  %6262 = vst [vmem:[#allocation22_spill] sm:$0xff] %v4250_v18 }
  0x52   : > { %311 = vmatpush.msra.mxu0 %v4133_v41  ;;  %512 = vmatpush.msra.mxu1 %v511_v51  ;;  %v270_v51 = vld [vmem:[#allocation5 + $0x1b0] sm:$0xff] }
  0x53   : > { %317 = vmatmul.f32.vlgmr.msra.gmra.mxu0 %v4198_v35  ;;  %646 = vmatpush.msra.mxu2 %v4153_v56  ;;  %6259 = vst [vmem:[#allocation20_spill] sm:$0xff] %v4242_v22  ;;  %v4271_v15 = vsub.f32 %v190_v32, %v4242_v22  ;;  %v268_v32 = vld [vmem:[#allocation5 + $0x1a0] sm:$0xff] }
  0x54   : > { %518 = vmatpush.msra.mxu1 %v517_v33  ;;  %762 = vmatpush.msra.mxu3 %v4133_v41  ;;  %v6260_v33 = vand.u32 4294901760, %v4000_v14  ;;  %6261 = vst [vmem:[#allocation21_spill] sm:$0xff] %v4247_v27  ;;  %v6265_v14 = vand.u32 4294901760, %v4219_v61 }
  0x55   : > { %649 = vmatpush.msra.mxu2 %v4166_v8  ;;  %766 = vmatmul.f32.vlgmr.msra.gmra.mxu3 %v4141_v47  ;;  %6266 = vst [vmem:[#allocation23_spill] sm:$0xff] %v4271_v15 }
  0x56   : > { %524 = vmatpush.msra.mxu1 %v523_v13  ;;  %652 = vmatmul.f32.vlgmr.msra.gmra.mxu2 %v4121_v30  ;;  %v1262_v13 = vsub.f32 %v4205_v7, %v6263_v53  ;;  %v4255_v30 = vand.u32 4294901760, %v270_v51  ;;  %v1268_v36 = vsub.f32 %v4219_v61, %v6265_v14  ;;  %v6271_v14 = vand.u32 4294901760, %v4012_v19 }
  0x57   : > { %1087 = vmatpush.msrb.mxu2 %v4123_v31  ;;  %863 = vmatpush.msrb.mxu0 %v6260_v33 }
  0x58   : > { %530 = vmatpush.msra.mxu1 %v529_v24  ;;  %1252 = vmatpush.msrb.mxu3 %v1251_v45  ;;  %v4264_v42 = vsub.f32 %v270_v51, %v4255_v30  ;;  %v331_v24 = vsub.f32 %v4233_v54, %v4250_v18  ;;  %v1263_v45 = vand.u32 4294901760, %v1262_v13  ;;  %v192_v51 = vld [vmem:[%s3976_s14 + $0x40] sm:$0xff] }
  0x59   : > { %1089 = vmatpush.msrb.mxu2 %v4145_v50  ;;  %867 = vmatpush.msrb.mxu0 %v6264_v2  ;;  %v4293_v2 = vand.u32 4294901760, %v268_v32 }
  0x5a   : > { %536 = vmatpush.msra.mxu1 %v535_v23  ;;  %1258 = vmatpush.msrb.mxu3 %v1257_v38  ;;  %v6035_v53 = vand.u32 4294901760, %v4264_v42  ;;  %v6267_v23 = vand.u32 4294901760, %v4007_v16  ;;  %v1269_v38 = vand.u32 4294901760, %v1268_v36  ;;  %v4285_v13 = vand.u32 4294901760, %v331_v24 }
  0x5b   : > { %325 = vmatmul.f32.gmra.mxu0 %v4247_v27  ;;  %538 = vmatmul.f32.vlgmr.msra.gmra.mxu1 %v4106_v6  ;;  %v4291_v16 = vand.u32 4294901760, %v192_v51  ;;  %v4300_v36 = vsub.f32 %v268_v32, %v4293_v2  ;;  %v6272_v24 = vand.u32 4294901760, %v4015_v20 }
  0x5c   : > { %990 = vmatpush.msrb.mxu1 %v3986_v3  ;;  %1091 = vmatpush.msrb.mxu2 %v4179_v39  ;;  %v1274_v33 = vsub.f32 %v4264_v42, %v6035_v53  ;;  %6268 = vst [vmem:[#allocation24_spill] sm:$0xff] %v4285_v13  ;;  %v4288_v3 = vand.u32 4294901760, %v4271_v15 }
  0x5d   : > { %772 = vmatmul.f32.gmra.mxu3 %v4202_v0  ;;  %871 = vmatpush.msrb.mxu0 %v6267_v23  ;;  %6270 = vst [vmem:[#allocation26_spill] sm:$0xff] %v4291_v16  ;;  %v4310_v19 = vsub.f32 %v192_v51, %v4291_v16  ;;  %v6034_v23 = vand.u32 4294901760, %v4300_v36  ;;  %v6275_v51 = vand.u32 4294901760, %v4018_v21  ;;  %v6330_v0 = vand.u32 4294901760, %v4205_v7 }
  0x5e   : > { %657 = vmatmul.f32.gmra.mxu2 %v4176_v37  ;;  %992 = vmatpush.msrb.mxu1 %v3988_v4  ;;  %6269 = vst [vmem:[#allocation25_spill] sm:$0xff] %v4288_v3  ;;  %v1275_v4 = vand.u32 4294901760, %v1274_v33 }
  0x5f   : > { %1264 = vmatpush.msrb.mxu3 %v1263_v45  ;;  %1093 = vmatpush.msrb.mxu2 %v4207_v60  ;;  %6273 = vst [vmem:[#allocation27_spill] sm:$0xff] %v4310_v19  ;;  %v194_v45 = vld [vmem:[%s3976_s14 + $0x50] sm:$0xff] }
  0x60   : > { %994 = vmatpush.msrb.mxu1 %v3990_v5  ;;  %875 = vmatpush.msrb.mxu0 %v6271_v14  ;;  %v339_v5 = vsub.f32 %v4271_v15, %v4288_v3  ;;  %v4321_v20 = vand.u32 4294901760, %v194_v45 }
  0x61   : > { %1270 = vmatpush.msrb.mxu3 %v1269_v38  ;;  %1095 = vmatpush.msrb.mxu2 %v4255_v30  ;;  %v266_v38 = vld [vmem:[#allocation5 + $0x190] sm:$0xff] }
  0x62   : > { %996 = vmatpush.msrb.mxu1 %v3992_v9  ;;  %879 = vmatpush.msrb.mxu0 %v6272_v24  ;;  %v1280_v9 = vsub.f32 %v4300_v36, %v6034_v23  ;;  %6274 = vst [vmem:[#allocation28_spill] sm:$0xff] %v4321_v20  ;;  %v4325_v33 = vand.u32 4294901760, %v339_v5  ;;  %v4331_v14 = vand.u32 4294901760, %v266_v38  ;;  %v4340_v24 = vsub.f32 %v194_v45, %v4321_v20  ;;  %v204_v23 = vld [vmem:[%s3976_s14 + $0xa0] sm:$0xff] }
  0x63   : > { %333 = vmatmul.f32.gmra.mxu0 %v4285_v13  ;;  %542 = vmatmul.f32.gmra.mxu1 %v4143_v49  ;;  %v6280_v5 = vand.u32 4294901760, %v4056_v40  ;;  %v6281_v45 = vand.u32 4294901760, %v4061_v43 }
  0x64   : > { %1276 = vmatpush.msrb.mxu3 %v1275_v4  ;;  %998 = vmatpush.msrb.mxu1 %v3994_v10  ;;  %6276 = vst [vmem:[#allocation29_spill] sm:$0xff] %v4325_v33  ;;  %v4328_v10 = vand.u32 4294901760, %v4310_v19  ;;  %v1281_v32 = vand.u32 4294901760, %v1280_v9  ;;  %v6278_v4 = vand.u32 4294901760, %v4032_v29  ;;  %v4337_v21 = vsub.f32 %v266_v38, %v4331_v14  ;;  %v196_v9 = vld [vmem:[%s3976_s14 + $0x60] sm:$0xff] }
  0x65   : > { %778 = vmatmul.f32.gmra.mxu3 %v4250_v18  ;;  %1097 = vmatpush.msrb.mxu2 %v4293_v2  ;;  %6279 = vst [vmem:[#allocation31_spill] sm:$0xff] %v4340_v24  ;;  %v4360_v40 = vand.u32 4294901760, %v4340_v24 }
  0x66   : > { %662 = vmatmul.f32.gmra.mxu2 %v4233_v54  ;;  %883 = vmatpush.msrb.mxu0 %v6275_v51  ;;  %6277 = vst [vmem:[#allocation30_spill] sm:$0xff] %v4328_v10  ;;  %v6032_v29 = vand.u32 4294901760, %v4337_v21  ;;  %v264_v51 = vld [vmem:[#allocation5 + $0x180] sm:$0xff] }
  0x67   : > { %1000 = vmatpush.msrb.mxu1 %v3996_v11  ;;  %1282 = vmatpush.msrb.mxu3 %v1281_v32  ;;  %v347_v11 = vsub.f32 %v4310_v19, %v4328_v10  ;;  %6282 = vst [vmem:[#allocation32_spill] sm:$0xff] %v4360_v40  ;;  %v4367_v32 = vand.u32 4294901760, %v264_v51 }
  0x68   : > { %887 = vmatpush.msrb.mxu0 %v6278_v4  ;;  %1099 = vmatpush.msrb.mxu2 %v4331_v14  ;;  %v6285_v4 = vand.u32 4294901760, %v4079_v52 }
  0x69   : > { %1002 = vmatpush.msrb.mxu1 %v4009_v17  ;;  %v1286_v17 = vsub.f32 %v4337_v21, %v6032_v29  ;;  %v4363_v38 = vand.u32 4294901760, %v347_v11  ;;  %v6286_v11 = vand.u32 4294901760, %v4092_v59 }
  0x6a   : > { %891 = vmatpush.msrb.mxu0 %v6280_v5  ;;  %1101 = vmatpush.msrb.mxu2 %v4367_v32  ;;  %v4374_v5 = vsub.f32 %v264_v51, %v4367_v32  ;;  %v6290_v51 = vand.u32 4294901760, %v4118_v26 }
  0x6b   : > { %341 = vmatmul.f32.gmra.mxu0 %v4325_v33  ;;  %546 = vmatmul.f32.gmra.mxu1 %v4195_v55  ;;  %6283 = vst [vmem:[#allocation33_spill] sm:$0xff] %v4363_v38  ;;  %v1287_v43 = vand.u32 4294901760, %v1286_v17  ;;  %v6288_v17 = vand.u32 4294901760, %v4097_v62 }
  0x6c   : > { %1004 = vmatpush.msrb.mxu1 %v4025_v25  ;;  %895 = vmatpush.msrb.mxu0 %v6281_v45  ;;  %v4365_v25 = vand.u32 4294901760, %v196_v9  ;;  %v6031_v52 = vand.u32 4294901760, %v4374_v5  ;;  %v198_v45 = vld [vmem:[%s3976_s14 + $0x70] sm:$0xff] }
  0x6d   : > { %784 = vmatmul.f32.gmra.mxu3 %v4288_v3 }
  0x6e   : > { %667 = vmatmul.f32.gmra.mxu2 %v4271_v15  ;;  %1006 = vmatpush.msrb.mxu1 %v4029_v28  ;;  %6284 = vst [vmem:[#allocation34_spill] sm:$0xff] %v4365_v25  ;;  %v355_v28 = vsub.f32 %v4340_v24, %v4360_v40 }
  0x6f   : > { %899 = vmatpush.msrb.mxu0 %v6285_v4  ;;  %1288 = vmatpush.msrb.mxu3 %v1287_v43  ;;  %v4403_v43 = vand.u32 4294901760, %v198_v45 }
  0x70   : > { %1008 = vmatpush.msrb.mxu1 %v4047_v34  ;;  %v4384_v34 = vsub.f32 %v196_v9, %v4365_v25  ;;  %v4396_v59 = vand.u32 4294901760, %v355_v28  ;;  %v262_v9 = vld [vmem:[#allocation5 + $0x170] sm:$0xff]  ;;  %v6294_v28 = vand.u32 4294901760, %v4153_v56 }
  0x71   : > { %903 = vmatpush.msrb.mxu0 %v6286_v11  ;;  %6292 = vst [vmem:[#allocation38_spill] sm:$0xff] %v4403_v43  ;;  %v4405_v4 = vand.u32 4294901760, %v262_v9  ;;  %v6293_v11 = vand.u32 4294901760, %v4136_v44  ;;  %v4422_v44 = vsub.f32 %v198_v45, %v4403_v43 }
  0x72   : > { %1010 = vmatpush.msrb.mxu1 %v4067_v46  ;;  %6287 = vst [vmem:[#allocation35_spill] sm:$0xff] %v4384_v34  ;;  %v1292_v46 = vsub.f32 %v4374_v5, %v6031_v52  ;;  %v4401_v62 = vand.u32 4294901760, %v4384_v34 }
  0x73   : > { %349 = vmatmul.f32.gmra.mxu0 %v4363_v38  ;;  %550 = vmatmul.f32.gmra.mxu1 %v4242_v22  ;;  %6289 = vst [vmem:[#allocation36_spill] sm:$0xff] %v4396_v59  ;;  %v4412_v26 = vsub.f32 %v262_v9, %v4405_v4  ;;  %v260_v9 = vld [vmem:[#allocation5 + $0x160] sm:$0xff] }
  0x74   : > { %907 = vmatpush.msrb.mxu0 %v6288_v17  ;;  %1012 = vmatpush.msrb.mxu1 %v4074_v48  ;;  %6291 = vst [vmem:[#allocation37_spill] sm:$0xff] %v4401_v62  ;;  %v1293_v48 = vand.u32 4294901760, %v1292_v46  ;;  %v200_v17 = vld [vmem:[%s3976_s14 + $0x80] sm:$0xff] }
  0x75   : > { %790 = vmatmul.f32.gmra.mxu3 %v4328_v10  ;;  %1103 = vmatpush.msrb.mxu2 %v4405_v4  ;;  %6295 = vst [vmem:[#allocation39_spill] sm:$0xff] %v4422_v44  ;;  %v6030_v46 = vand.u32 4294901760, %v4412_v26  ;;  %v4435_v45 = vand.u32 4294901760, %v200_v17 }
  0x76   : > { %672 = vmatmul.f32.gmra.mxu2 %v4310_v19  ;;  %911 = vmatpush.msrb.mxu0 %v6290_v51 }
  0x77   : > { %1014 = vmatpush.msrb.mxu1 %v4089_v58  ;;  %1294 = vmatpush.msrb.mxu3 %v1293_v48  ;;  %v363_v58 = vsub.f32 %v4384_v34, %v4401_v62  ;;  %v1298_v56 = vsub.f32 %v4412_v26, %v6030_v46  ;;  %6297 = vst [vmem:[#allocation40_spill] sm:$0xff] %v4435_v45  ;;  %v4443_v48 = vand.u32 4294901760, %v260_v9 }
  0x78   : > { %915 = vmatpush.msrb.mxu0 %v6293_v11 }
  0x79   : > { %1016 = vmatpush.msrb.mxu1 %v4103_v1  ;;  %v6296_v1 = vand.u32 4294901760, %v4166_v8  ;;  %v4438_v51 = vand.u32 4294901760, %v363_v58  ;;  %v1299_v8 = vand.u32 4294901760, %v1298_v56  ;;  %1105 = vmatpush.msrb.mxu2 %v4443_v48  ;;  %v4449_v11 = vsub.f32 %v260_v9, %v4443_v48  ;;  %v258_v9 = vld [vmem:[#allocation5 + $0x150] sm:$0xff] }
  0x7a   : > { %919 = vmatpush.msrb.mxu0 %v6294_v28  ;;  %v4477_v29 = vand.u32 4294901760, %v258_v9 }
  0x7b   : > { %357 = vmatmul.f32.gmra.mxu0 %v4396_v59  ;;  %554 = vmatmul.f32.gmra.mxu1 %v4291_v16  ;;  %6298 = vst [vmem:[#allocation41_spill] sm:$0xff] %v4438_v51  ;;  %v6033_v58 = vand.u32 4294901760, %v4449_v11 }
  0x7c   : > { %1018 = vmatpush.msrb.mxu1 %v4113_v12  ;;  %923 = vmatpush.msrb.mxu0 %v6296_v1  ;;  %v4441_v12 = vand.u32 4294901760, %v4422_v44  ;;  %v202_v1 = vld [vmem:[%s3976_s14 + $0x90] sm:$0xff] }
  0x7d   : > { %796 = vmatmul.f32.gmra.mxu3 %v4360_v40  ;;  %v4475_v46 = vand.u32 4294901760, %v202_v1  ;;  %1107 = vmatpush.msrb.mxu2 %v4477_v29 }
  0x7e   : > { %1410 = vmatpush.msra.mxu0 %v4156_v57  ;;  %677 = vmatmul.f32.gmra.mxu2 %v4340_v24  ;;  %6299 = vst [vmem:[#allocation42_spill] sm:$0xff] %v4441_v12  ;;  %v371_v28 = vsub.f32 %v4422_v44, %v4441_v12 }
  0x7f   : > { %1020 = vmatpush.msrb.mxu1 %v4133_v41  ;;  %1300 = vmatpush.msrb.mxu3 %v1299_v8  ;;  %v4452_v41 = vsub.f32 %v200_v17, %v4435_v45  ;;  %v1304_v17 = vsub.f32 %v4449_v11, %v6033_v58  ;;  %6303 = vst [vmem:[#allocation46_spill] sm:$0xff] %v4475_v46 }
  0x80   : > { %1413 = vmatpush.msra.mxu0 %v4169_v63  ;;  %v4473_v8 = vand.u32 4294901760, %v371_v28  ;;  %v4483_v58 = vsub.f32 %v258_v9, %v4477_v29 }
  0x81   : > { %1538 = vmatpush.msra.mxu1 %v4123_v31  ;;  %6300 = vst [vmem:[#allocation43_spill] sm:$0xff] %v4452_v41  ;;  %v4470_v56 = vand.u32 4294901760, %v4452_v41  ;;  %v1305_v52 = vand.u32 4294901760, %v1304_v17  ;;  %v4492_v17 = vsub.f32 %v202_v1, %v4475_v46 }
  0x82   : > { %1416 = vmatpush.msra.mxu0 %v4205_v7  ;;  %6302 = vst [vmem:[#allocation45_spill] sm:$0xff] %v4473_v8 }
  0x83   : > { %1540 = vmatpush.msra.mxu1 %v4145_v50  ;;  %365 = vmatmul.f32.gmra.mxu0 %v4438_v51  ;;  %6301 = vst [vmem:[#allocation44_spill] sm:$0xff] %v4470_v56  ;;  %v379_v28 = vsub.f32 %v4452_v41, %v4470_v56  ;;  %v4507_v1 = vand.u32 4294901760, %v4492_v17 }
  0x84   : > { %558 = vmatmul.f32.gmra.mxu1 %v4321_v20  ;;  %1419 = vmatpush.msra.mxu0 %v4219_v61  ;;  %6304 = vst [vmem:[#allocation47_spill] sm:$0xff] %v4492_v17 }
  0x85   : > { %1542 = vmatpush.msra.mxu1 %v4179_v39  ;;  %802 = vmatmul.f32.gmra.mxu3 %v4401_v62  ;;  %v4503_v53 = vand.u32 4294901760, %v379_v28  ;;  %6306 = vst [vmem:[#allocation49_spill] sm:$0xff] %v4507_v1 }
  0x86   : > { %682 = vmatmul.f32.gmra.mxu2 %v4384_v34  ;;  %1422 = vmatpush.msra.mxu0 %v4264_v42  ;;  %v4509_v34 = vand.u32 4294901760, %v204_v23 }
  0x87   : > { %1544 = vmatpush.msra.mxu1 %v4207_v60  ;;  %1306 = vmatpush.msrb.mxu3 %v1305_v52  ;;  %v6040_v52 = vand.u32 4294901760, %v4483_v58  ;;  %6305 = vst [vmem:[#allocation48_spill] sm:$0xff] %v4503_v53 }
  0x88   : > { %1425 = vmatpush.msra.mxu0 %v4300_v36  ;;  %6307 = vst [vmem:[#allocation50_spill] sm:$0xff] %v4509_v34 }
  0x89   : > { %1546 = vmatpush.msra.mxu1 %v4255_v30  ;;  %v1310_v9 = vsub.f32 %v4483_v58, %v6040_v52  ;;  %v4526_v52 = vsub.f32 %v204_v23, %v4509_v34 }
  0x8a   : > { %1428 = vmatpush.msra.mxu0 %v4337_v21 }
  0x8b   : > { %1548 = vmatpush.msra.mxu1 %v4293_v2  ;;  %373 = vmatmul.f32.gmra.mxu0 %v4473_v8  ;;  %v256_v8 = vld [vmem:[#allocation5 + $0x140] sm:$0xff]  ;;  %v1311_v62 = vand.u32 4294901760, %v1310_v9  ;;  %v387_v9 = vsub.f32 %v4492_v17, %v4507_v1  ;;  %6308 = vst [vmem:[#allocation51_spill] sm:$0xff] %v4526_v52  ;;  %v4543_v24 = vand.u32 4294901760, %v4526_v52 }
  0x8c   : > { %562 = vmatmul.f32.gmra.mxu1 %v4365_v25  ;;  %1431 = vmatpush.msra.mxu0 %v4374_v5  ;;  %v4511_v51 = vand.u32 4294901760, %v256_v8 }
  0x8d   : > { %1550 = vmatpush.msra.mxu1 %v4331_v14  ;;  %808 = vmatmul.f32.gmra.mxu3 %v4441_v12  ;;  %v254_v12 = vld [vmem:[#allocation5 + $0x130] sm:$0xff]  ;;  %v4540_v23 = vand.u32 4294901760, %v387_v9  ;;  %6311 = vst [vmem:[#allocation54_spill] sm:$0xff] %v4543_v24  ;;  %v395_v9 = vsub.f32 %v4526_v52, %v4543_v24 }
  0x8e   : > { %687 = vmatmul.f32.gmra.mxu2 %v4422_v44  ;;  %1434 = vmatpush.msra.mxu0 %v4412_v26  ;;  %v4517_v28 = vsub.f32 %v256_v8, %v4511_v51  ;;  %v4545_v59 = vand.u32 4294901760, %v254_v12 }
  0x8f   : > { %1552 = vmatpush.msra.mxu1 %v4367_v32  ;;  %1312 = vmatpush.msrb.mxu3 %v1311_v62  ;;  %v206_v62 = vld [vmem:[%s3976_s14 + $0xb0] sm:$0xff]  ;;  %6310 = vst [vmem:[#allocation53_spill] sm:$0xff] %v4540_v23 }
  0x90   : > { %1109 = vmatpush.msrb.mxu2 %v4511_v51  ;;  %1437 = vmatpush.msra.mxu0 %v4449_v11  ;;  %v6047_v44 = vand.u32 4294901760, %v4517_v28 }
  0x91   : > { %1554 = vmatpush.msra.mxu1 %v4405_v4 }
  0x92   : > { %1440 = vmatpush.msra.mxu0 %v4483_v58  ;;  %v1316_v8 = vsub.f32 %v4517_v28, %v6047_v44  ;;  %1111 = vmatpush.msrb.mxu2 %v4545_v59  ;;  %v4551_v44 = vsub.f32 %v254_v12, %v4545_v59 }
  0x93   : > { %381 = vmatmul.f32.gmra.mxu0 %v4503_v53  ;;  %1556 = vmatpush.msra.mxu1 %v4443_v48  ;;  %v4537_v53 = vand.u32 4294901760, %v206_v62 }
  0x94   : > { %566 = vmatmul.f32.gmra.mxu1 %v4403_v43  ;;  %v1317_v40 = vand.u32 4294901760, %v1316_v8  ;;  %1443 = vmatpush.msra.mxu0 %v4517_v28  ;;  %v6055_v8 = vand.u32 4294901760, %v4551_v44 }
  0x95   : > { %814 = vmatmul.f32.gmra.mxu3 %v4470_v56  ;;  %6309 = vst [vmem:[#allocation52_spill] sm:$0xff] %v4537_v53  ;;  %1558 = vmatpush.msra.mxu1 %v4477_v29  ;;  %v4572_v56 = vand.u32 4294901760, %v395_v9 }
  0x96   : > { %692 = vmatmul.f32.gmra.mxu2 %v4452_v41  ;;  %1318 = vmatpush.msrb.mxu3 %v1317_v40  ;;  %v4554_v41 = vsub.f32 %v206_v62, %v4537_v53  ;;  %v208_v40 = vld [vmem:[%s3976_s14 + $0xc0] sm:$0xff]  ;;  %v1322_v12 = vsub.f32 %v4551_v44, %v6055_v8 }
  0x97   : > { %1560 = vmatpush.msra.mxu1 %v4511_v51  ;;  %1446 = vmatpush.msra.mxu0 %v4551_v44  ;;  %6314 = vst [vmem:[#allocation57_spill] sm:$0xff] %v4572_v56  ;;  %v4574_v19 = vand.u32 4294901760, %v208_v40 }
  0x98   : > { %6312 = vst [vmem:[#allocation55_spill] sm:$0xff] %v4554_v41  ;;  %v4570_v62 = vand.u32 4294901760, %v4554_v41  ;;  %v1323_v10 = vand.u32 4294901760, %v1322_v12 }
  0x99   : > { %1562 = vmatpush.msra.mxu1 %v4545_v59  ;;  %6315 = vst [vmem:[#allocation58_spill] sm:$0xff] %v4574_v19  ;;  %v4588_v9 = vsub.f32 %v208_v40, %v4574_v19 }
  0x9a   : > { %6313 = vst [vmem:[#allocation56_spill] sm:$0xff] %v4570_v62  ;;  %1324 = vmatpush.msrb.mxu3 %v1323_v10  ;;  %v403_v8 = vsub.f32 %v4554_v41, %v4570_v62  ;;  %v210_v10 = vld [vmem:[%s3976_s14 + $0xd0] sm:$0xff] }
  0x9b   : > { %389 = vmatmul.f32.gmra.mxu0 %v4540_v23  ;;  %v252_v23 = vld [vmem:[#allocation5 + $0x120] sm:$0xff]  ;;  %6316 = vst [vmem:[#allocation59_spill] sm:$0xff] %v4588_v9  ;;  %v4601_v40 = vand.u32 4294901760, %v4588_v9  ;;  %v4603_v15 = vand.u32 4294901760, %v210_v10 }
  0x9c   : > { %570 = vmatmul.f32.gmra.mxu1 %v4435_v45  ;;  %v4576_v38 = vand.u32 4294901760, %v252_v23 }
  0x9d   : > { %820 = vmatmul.f32.gmra.mxu3 %v4507_v1  ;;  %6318 = vst [vmem:[#allocation61_spill] sm:$0xff] %v4601_v40 }
  0x9e   : > { %697 = vmatmul.f32.gmra.mxu2 %v4492_v17  ;;  %v4580_v1 = vsub.f32 %v252_v23, %v4576_v38  ;;  %1564 = vmatpush.msra.mxu1 %v4576_v38  ;;  %v250_v17 = vld [vmem:[#allocation5 + $0x110] sm:$0xff]  ;;  %6319 = vst [vmem:[#allocation62_spill] sm:$0xff] %v4603_v15 }
  0x9f   : > { %1113 = vmatpush.msrb.mxu2 %v4576_v38  ;;  %v4605_v33 = vand.u32 4294901760, %v250_v17 }
  0xa0   : > { %v6062_v12 = vand.u32 4294901760, %v4580_v1  ;;  %1449 = vmatpush.msra.mxu0 %v4580_v1 }
  0xa1   : > { %1115 = vmatpush.msrb.mxu2 %v4605_v33  ;;  %1566 = vmatpush.msra.mxu1 %v4605_v33 }
  0xa2   : > { %v1328_v23 = vsub.f32 %v4580_v1, %v6062_v12  ;;  %v4617_v12 = vsub.f32 %v210_v10, %v4603_v15 }
  0xa3   : > { %397 = vmatmul.f32.gmra.mxu0 %v4572_v56  ;;  %v4598_v56 = vand.u32 4294901760, %v403_v8  ;;  %v411_v8 = vsub.f32 %v4588_v9, %v4601_v40 }
  0xa4   : > { %574 = vmatmul.f32.gmra.mxu1 %v4475_v46  ;;  %v1329_v3 = vand.u32 4294901760, %v1328_v23  ;;  %6320 = vst [vmem:[#allocation63_spill] sm:$0xff] %v4617_v12  ;;  %v4632_v10 = vand.u32 4294901760, %v4617_v12 }
  0xa5   : > { %826 = vmatmul.f32.gmra.mxu3 %v4543_v24  ;;  %6317 = vst [vmem:[#allocation60_spill] sm:$0xff] %v4598_v56  ;;  %v4609_v24 = vsub.f32 %v250_v17, %v4605_v33  ;;  %v4629_v54 = vand.u32 4294901760, %v411_v8 }
  0xa6   : > { %702 = vmatmul.f32.gmra.mxu2 %v4526_v52  ;;  %1330 = vmatpush.msrb.mxu3 %v1329_v3  ;;  %v212_v3 = vld [vmem:[%s3976_s14 + $0xe0] sm:$0xff]  ;;  %6322 = vst [vmem:[#allocation65_spill] sm:$0xff] %v4632_v10 }
  0xa7   : > { %v6069_v23 = vand.u32 4294901760, %v4609_v24  ;;  %1452 = vmatpush.msra.mxu0 %v4609_v24  ;;  %6321 = vst [vmem:[#allocation64_spill] sm:$0xff] %v4629_v54  ;;  %v4634_v18 = vand.u32 4294901760, %v212_v3 }
  0xa9   : > { %v1334_v17 = vsub.f32 %v4609_v24, %v6069_v23  ;;  %6323 = vst [vmem:[#allocation66_spill] sm:$0xff] %v4634_v18  ;;  %v6324_v23 = vand.u32 4294901760, %v4156_v57 }
  0xab   : > { %405 = vmatmul.f32.gmra.mxu0 %v4598_v56  ;;  %v248_v56 = vld [vmem:[#allocation5 + $0x100] sm:$0xff]  ;;  %v1335_v13 = vand.u32 4294901760, %v1334_v17  ;;  %v419_v17 = vsub.f32 %v4617_v12, %v4632_v10 }
  0xac   : > { %578 = vmatmul.f32.gmra.mxu1 %v4509_v34  ;;  %v4627_v52 = vand.u32 4294901760, %v248_v56 }
  0xad   : > { %832 = vmatmul.f32.gmra.mxu3 %v4570_v62 }
  0xae   : > { %707 = vmatmul.f32.gmra.mxu2 %v4554_v41  ;;  %v4638_v62 = vsub.f32 %v248_v56, %v4627_v52  ;;  %1568 = vmatpush.msra.mxu1 %v4627_v52  ;;  %v4650_v56 = vsub.f32 %v212_v3, %v4634_v18  ;;  %v214_v41 = vld [vmem:[%s3976_s14 + $0xf0] sm:$0xff] }
  0xaf   : > { %1117 = vmatpush.msrb.mxu2 %v4627_v52  ;;  %1336 = vmatpush.msrb.mxu3 %v1335_v13  ;;  %v6326_v13 = vand.u32 4294901760, %v4169_v63  ;;  %v4665_v3 = vand.u32 4294901760, %v214_v41  ;;  %v6331_v63 = vand.u32 4294901760, %v4219_v61  ;;  %v185_v61 = vld [vmem:[%s3976_s14 + $0x8] sm:$0xff] }
  0xb0   : > { %v1339_v8 = vand.u32 4294901760, %v4638_v62  ;;  %1455 = vmatpush.msra.mxu0 %v4638_v62  ;;  %6325 = vst [vmem:[#allocation67_spill] sm:$0xff] %v4650_v56  ;;  %v4663_v37 = vand.u32 4294901760, %v4650_v56 }
  0xb1   : > { %1669 = vmatpush.msra.mxu2 %v6324_v23  ;;  %6329 = vst [vmem:[#allocation70_spill] sm:$0xff] %v4665_v3 }
  0xb2   : > { %v1340_v57 = vsub.f32 %v4638_v62, %v1339_v8  ;;  %6328 = vst [vmem:[#allocation69_spill] sm:$0xff] %v4663_v37 }
  0xb3   : > { %413 = vmatmul.f32.gmra.mxu0 %v4629_v54  ;;  %1673 = vmatpush.msra.mxu2 %v6326_v13  ;;  %v4660_v54 = vand.u32 4294901760, %v419_v17  ;;  %v427_v17 = vsub.f32 %v4650_v56, %v4663_v37  ;;  %v6341_v13 = vand.u32 4294901760, %v4412_v26 }
  0xb4   : > { %582 = vmatmul.f32.gmra.mxu1 %v4537_v53  ;;  %v1341_v23 = vand.u32 4294901760, %v1340_v57  ;;  %v4677_v57 = vsub.f32 %v214_v41, %v4665_v3  ;;  %v6336_v41 = vand.u32 4294901760, %v4300_v36  ;;  %v6338_v36 = vand.u32 4294901760, %v4374_v5 }
  0xb5   : > { %838 = vmatmul.f32.gmra.mxu3 %v4601_v40  ;;  %6327 = vst [vmem:[#allocation68_spill] sm:$0xff] %v4660_v54  ;;  %1677 = vmatpush.msra.mxu2 %v6330_v0  ;;  %v6333_v0 = vand.u32 4294901760, %v4264_v42  ;;  %v4696_v42 = vand.u32 4294901760, %v185_v61 }
  0xb6   : > { %712 = vmatmul.f32.gmra.mxu2 %v4588_v9  ;;  %1342 = vmatpush.msrb.mxu3 %v1341_v23  ;;  %6332 = vst [vmem:[#allocation71_spill] sm:$0xff] %v4677_v57  ;;  %v4688_v7 = vand.u32 4294901760, %v4677_v57 }
  0xb7   : > { %1681 = vmatpush.msra.mxu2 %v6331_v63 }
  0xb8   : > { %1796 = vmatpush.msra.mxu3 %v4123_v31  ;;  %v4685_v31 = vand.u32 4294901760, %v427_v17  ;;  %6335 = vst [vmem:[#allocation73_spill] sm:$0xff] %v4688_v7 }
  0xb9   : > { %1685 = vmatpush.msra.mxu2 %v6333_v0 }
  0xba   : > { %1798 = vmatpush.msra.mxu3 %v4145_v50  ;;  %6334 = vst [vmem:[#allocation72_spill] sm:$0xff] %v4685_v31  ;;  %v6337_v50 = vand.u32 4294901760, %v4337_v21  ;;  %v187_v21 = vld [vmem:[%s3976_s14 + $0x18] sm:$0xff] }
  0xbb   : > { %421 = vmatmul.f32.gmra.mxu0 %v4660_v54  ;;  %1689 = vmatpush.msra.mxu2 %v6336_v41  ;;  %v4723_v23 = vand.u32 4294901760, %v187_v21 }
  0xbc   : > { %586 = vmatmul.f32.gmra.mxu1 %v4574_v19  ;;  %1800 = vmatpush.msra.mxu3 %v4179_v39  ;;  %v435_v39 = vsub.f32 %v4677_v57, %v4688_v7 }
  0xbd   : > { %844 = vmatmul.f32.gmra.mxu3 %v4632_v10  ;;  %1693 = vmatpush.msra.mxu2 %v6337_v50  ;;  %v4736_v26 = vsub.f32 %v187_v21, %v4723_v23  ;;  %v193_v21 = vld [vmem:[%s3976_s14 + $0x48] sm:$0xff] }
  0xbe   : > { %717 = vmatmul.f32.gmra.mxu2 %v4617_v12  ;;  %1802 = vmatpush.msra.mxu3 %v4207_v60  ;;  %v4709_v60 = vsub.f32 %v185_v61, %v4696_v42 }
  0xbf   : > { %1697 = vmatpush.msra.mxu2 %v6338_v36  ;;  %6345 = vst [vmem:[#allocation77_spill] sm:$0xff] %v4736_v26  ;;  %v4748_v17 = vand.u32 4294901760, %v4736_v26 }
  0xc0   : > { %1804 = vmatpush.msra.mxu3 %v4255_v30  ;;  %6339 = vst [vmem:[#allocation74_spill] sm:$0xff] %v4709_v60  ;;  %v4712_v30 = vand.u32 4294901760, %v435_v39  ;;  %v4721_v5 = vand.u32 4294901760, %v4709_v60 }
  0xc1   : > { %1701 = vmatpush.msra.mxu2 %v6341_v13  ;;  %6349 = vst [vmem:[#allocation79_spill] sm:$0xff] %v4748_v17 }
  0xc2   : > { %1806 = vmatpush.msra.mxu3 %v4293_v2  ;;  %6340 = vst [vmem:[#allocation75_spill] sm:$0xff] %v4712_v30  ;;  %v6342_v2 = vand.u32 4294901760, %v4449_v11  ;;  %v6346_v11 = vand.u32 4294901760, %v4517_v28  ;;  %v6352_v28 = vand.u32 4294901760, %v4609_v24 }
  0xc3   : > { %429 = vmatmul.f32.gmra.mxu0 %v4685_v31  ;;  %6343 = vst [vmem:[#allocation76_spill] sm:$0xff] %v4721_v5 }
  0xc4   : > { %590 = vmatmul.f32.gmra.mxu1 %v4603_v15  ;;  %1808 = vmatpush.msra.mxu3 %v4331_v14  ;;  %v6344_v14 = vand.u32 4294901760, %v4483_v58  ;;  %v6347_v58 = vand.u32 4294901760, %v4551_v44  ;;  %v1129_v44 = vsub.f32 %v4736_v26, %v4748_v17 }
  0xc5   : > { %850 = vmatmul.f32.gmra.mxu3 %v4663_v37  ;;  %1705 = vmatpush.msra.mxu2 %v6342_v2 }
  0xc6   : > { %722 = vmatmul.f32.gmra.mxu2 %v4650_v56  ;;  %1810 = vmatpush.msra.mxu3 %v4367_v32  ;;  %v1121_v32 = vsub.f32 %v4709_v60, %v4721_v5  ;;  %v4772_v39 = vand.u32 4294901760, %v1129_v44 }
  0xc7   : > { %1709 = vmatpush.msra.mxu2 %v6344_v14 }
  0xc8   : > { %1812 = vmatpush.msra.mxu3 %v4405_v4  ;;  %v189_v4 = vld [vmem:[%s3976_s14 + $0x28] sm:$0xff]  ;;  %v4745_v63 = vand.u32 4294901760, %v1121_v32  ;;  %6353 = vst [vmem:[#allocation81_spill] sm:$0xff] %v4772_v39 }
  0xc9   : > { %1713 = vmatpush.msra.mxu2 %v6346_v11  ;;  %v4750_v0 = vand.u32 4294901760, %v189_v4 }
  0xca   : > { %1814 = vmatpush.msra.mxu3 %v4443_v48  ;;  %6348 = vst [vmem:[#allocation78_spill] sm:$0xff] %v4745_v63 }
  0xcb   : > { %437 = vmatmul.f32.gmra.mxu0 %v4712_v30  ;;  %1717 = vmatpush.msra.mxu2 %v6347_v58  ;;  %v4796_v58 = vand.u32 4294901760, %v193_v21 }
  0xcc   : > { %594 = vmatmul.f32.gmra.mxu1 %v4634_v18  ;;  %1816 = vmatpush.msra.mxu3 %v4477_v29  ;;  %v6350_v29 = vand.u32 4294901760, %v4580_v1 }
  0xcd   : > { %856 = vmatmul.f32.gmra.mxu3 %v4688_v7  ;;  %6359 = vst [vmem:[#allocation87_spill] sm:$0xff] %v4796_v58 }
  0xce   : > { %727 = vmatmul.f32.gmra.mxu2 %v4677_v57  ;;  %1818 = vmatpush.msra.mxu3 %v4511_v51  ;;  %v4763_v51 = vsub.f32 %v189_v4, %v4750_v0 }
  0xcf   : > { %1721 = vmatpush.msra.mxu2 %v6350_v29 }
  0xd0   : > { %v318_v48 = vpop.f32.mrf.mxu0  ;;  %1820 = vmatpush.msra.mxu3 %v4545_v59  ;;  %6351 = vst [vmem:[#allocation80_spill] sm:$0xff] %v4763_v51  ;;  %v191_v59 = vld [vmem:[%s3976_s14 + $0x38] sm:$0xff]  ;;  %v4775_v36 = vand.u32 4294901760, %v4763_v51 }
  0xd1   : > { %1725 = vmatpush.msra.mxu2 %v6352_v28  ;;  %v4807_v28 = vsub.f32 %v193_v21, %v4796_v58 }
  0xd2   : > { %1822 = vmatpush.msra.mxu3 %v4576_v38  ;;  %6354 = vst [vmem:[#allocation82_spill] sm:$0xff] %v4775_v36  ;;  %v1137_v62 = vsub.f32 %v4763_v51, %v4775_v36 }
  0xd3   : > { %925 = vmatmul.f32.vlgmr.msrb.gmra.mxu0 %v4106_v6  ;;  %1729 = vmatpush.msra.mxu2 %v1339_v8  ;;  %6360 = vst [vmem:[#allocation88_spill] sm:$0xff] %v4807_v28 }
  0xd4   : > { %598 = vmatmul.f32.gmra.mxu1 %v4665_v3  ;;  %1824 = vmatpush.msra.mxu3 %v4605_v33  ;;  %v4777_v33 = vand.u32 4294901760, %v191_v59  ;;  %v4791_v11 = vand.u32 4294901760, %v1137_v62 }
  0xd5   : > { %1344 = vmatmul.f32.vlgmr.msrb.gmra.mxu3 %v4696_v42 }
  0xd6   : > { %1123 = vmatmul.f32.vlgmr.msrb.gmra.mxu2 %v4745_v63  ;;  %1826 = vmatpush.msra.mxu3 %v4627_v52  ;;  %6355 = vst [vmem:[#allocation83_spill] sm:$0xff] %v4777_v33  ;;  %v4788_v8 = vsub.f32 %v191_v59, %v4777_v33 }
  0xd7   : > { %6357 = vst [vmem:[#allocation85_spill] sm:$0xff] %v4791_v11 }
  0xd8   : > { %v326_v1 = vpop.f32.mrf.mxu0  ;;  %v539_v61 = vpop.f32.mrf.mxu1  ;;  %6356 = vst [vmem:[#allocation84_spill] sm:$0xff] %v4788_v8 }
  0xd9   : > { %v540_v38 = vadd.f32 %v539_v61, %v318_v48  ;;  %v653_v41 = vpop.f32.mrf.mxu2  ;;  %v767_v50 = vpop.f32.mrf.mxu3  ;;  %v4794_v48 = vand.u32 4294901760, %v4788_v8 }
  0xdb   : > { %v654_v24 = vadd.f32 %v653_v41, %v540_v38  ;;  %929 = vmatmul.f32.gmra.mxu0 %v4143_v49  ;;  %6358 = vst [vmem:[#allocation86_spill] sm:$0xff] %v4794_v48  ;;  %v1145_v59 = vsub.f32 %v4788_v8, %v4794_v48 }
  0xdc   : > { %1022 = vmatmul.f32.vlgmr.msrb.gmra.mxu1 %v4106_v6 }
  0xdd   : > { %v4781_v52 = vadd.f32 %v767_v50, %v654_v24  ;;  %1348 = vmatmul.f32.gmra.mxu3 %v4723_v23  ;;  %v4810_v62 = vand.u32 4294901760, %v1145_v59 }
  0xde   : > { %1131 = vmatmul.f32.gmra.mxu2 %v4772_v39 }
  0xdf   : > { %6361 = vst [vmem:[#allocation89_spill] sm:$0xff] %v4810_v62 }
  0xe0   : > { %v334_v13 = vpop.f32.mrf.mxu0  ;;  %v543_v2 = vpop.f32.mrf.mxu1 }
  0xe1   : > { %v544_v14 = vadd.f32 %v543_v2, %v326_v1  ;;  %v658_v32 = vpop.f32.mrf.mxu2  ;;  %v773_v4 = vpop.f32.mrf.mxu3  ;;  %v195_v1 = vld [vmem:[%s3976_s14 + $0x58] sm:$0xff]  ;;  %v4813_v2 = vand.u32 4294901760, %v4807_v28 }
  0xe3   : > { %v659_v29 = vadd.f32 %v658_v32, %v544_v14  ;;  %933 = vmatmul.f32.gmra.mxu0 %v4195_v55  ;;  %6362 = vst [vmem:[#allocation90_spill] sm:$0xff] %v4813_v2  ;;  %v4815_v14 = vand.u32 4294901760, %v195_v1 }
  0xe4   : > { %1026 = vmatmul.f32.gmra.mxu1 %v4143_v49 }
  0xe5   : > { %v4800_v44 = vadd.f32 %v773_v4, %v659_v29  ;;  %1352 = vmatmul.f32.gmra.mxu3 %v4750_v0  ;;  %6363 = vst [vmem:[#allocation91_spill] sm:$0xff] %v4815_v14  ;;  %v4826_v4 = vsub.f32 %v195_v1, %v4815_v14  ;;  %v197_v29 = vld [vmem:[%s3976_s14 + $0x68] sm:$0xff] }
  0xe6   : > { %1139 = vmatmul.f32.gmra.mxu2 %v4791_v11 }
  0xe7   : > { %6364 = vst [vmem:[#allocation92_spill] sm:$0xff] %v4826_v4 }
  0xe8   : > { %v342_v61 = vpop.f32.mrf.mxu0  ;;  %v547_v38 = vpop.f32.mrf.mxu1 }
  0xe9   : > { %v548_v41 = vadd.f32 %v547_v38, %v334_v13  ;;  %v663_v50 = vpop.f32.mrf.mxu2  ;;  %v779_v24 = vpop.f32.mrf.mxu3  ;;  %v1153_v13 = vsub.f32 %v4807_v28, %v4813_v2 }
  0xeb   : > { %v664_v32 = vadd.f32 %v663_v50, %v548_v41  ;;  %937 = vmatmul.f32.gmra.mxu0 %v4242_v22  ;;  %v4829_v39 = vand.u32 4294901760, %v1153_v13 }
  0xec   : > { %1030 = vmatmul.f32.gmra.mxu1 %v4195_v55 }
  0xed   : > { %v4819_v21 = vadd.f32 %v779_v24, %v664_v32  ;;  %1356 = vmatmul.f32.gmra.mxu3 %v4777_v33  ;;  %6365 = vst [vmem:[#allocation93_spill] sm:$0xff] %v4829_v39  ;;  %v4832_v24 = vand.u32 4294901760, %v4826_v4  ;;  %v4834_v32 = vand.u32 4294901760, %v197_v29 }
  0xee   : > { %1147 = vmatmul.f32.gmra.mxu2 %v4810_v62 }
  0xef   : > { %6366 = vst [vmem:[#allocation94_spill] sm:$0xff] %v4832_v24  ;;  %v4845_v13 = vsub.f32 %v197_v29, %v4834_v32 }
  0xf0   : > { %v350_v59 = vpop.f32.mrf.mxu0  ;;  %v551_v38 = vpop.f32.mrf.mxu1  ;;  %6367 = vst [vmem:[#allocation95_spill] sm:$0xff] %v4834_v32 }
  0xf1   : > { %v552_v41 = vadd.f32 %v551_v38, %v342_v61  ;;  %v668_v50 = vpop.f32.mrf.mxu2  ;;  %v785_v11 = vpop.f32.mrf.mxu3  ;;  %v1161_v61 = vsub.f32 %v4826_v4, %v4832_v24  ;;  %6368 = vst [vmem:[#allocation96_spill] sm:$0xff] %v4845_v13  ;;  %v199_v38 = vld [vmem:[%s3976_s14 + $0x78] sm:$0xff] }
  0xf3   : > { %v669_v62 = vadd.f32 %v668_v50, %v552_v41  ;;  %941 = vmatmul.f32.gmra.mxu0 %v4291_v16  ;;  %v4848_v30 = vand.u32 4294901760, %v1161_v61 }
  0xf4   : > { %1034 = vmatmul.f32.gmra.mxu1 %v4242_v22 }
  0xf5   : > { %v4838_v1 = vadd.f32 %v785_v11, %v669_v62  ;;  %1360 = vmatmul.f32.gmra.mxu3 %v4796_v58  ;;  %6369 = vst [vmem:[#allocation97_spill] sm:$0xff] %v4848_v30  ;;  %v4851_v11 = vand.u32 4294901760, %v4845_v13  ;;  %v4853_v62 = vand.u32 4294901760, %v199_v38 }
  0xf6   : > { %1155 = vmatmul.f32.gmra.mxu2 %v4829_v39 }
  0xf7   : > { %6370 = vst [vmem:[#allocation98_spill] sm:$0xff] %v4851_v11  ;;  %v4864_v61 = vsub.f32 %v199_v38, %v4853_v62 }
  0xf8   : > { %v358_v63 = vpop.f32.mrf.mxu0  ;;  %v555_v41 = vpop.f32.mrf.mxu1  ;;  %6371 = vst [vmem:[#allocation99_spill] sm:$0xff] %v4853_v62 }
  0xf9   : > { %v556_v50 = vadd.f32 %v555_v41, %v350_v59  ;;  %v673_v57 = vpop.f32.mrf.mxu2  ;;  %v791_v7 = vpop.f32.mrf.mxu3  ;;  %v1169_v59 = vsub.f32 %v4845_v13, %v4851_v11  ;;  %6372 = vst [vmem:[#allocation100_spill] sm:$0xff] %v4864_v61  ;;  %v201_v41 = vld [vmem:[%s3976_s14 + $0x88] sm:$0xff] }
  0xfb   : > { %v674_v39 = vadd.f32 %v673_v57, %v556_v50  ;;  %945 = vmatmul.f32.gmra.mxu0 %v4321_v20  ;;  %v4867_v12 = vand.u32 4294901760, %v1169_v59 }
  0xfc   : > { %1038 = vmatmul.f32.gmra.mxu1 %v4291_v16 }
  0xfd   : > { %v4857_v29 = vadd.f32 %v791_v7, %v674_v39  ;;  %1364 = vmatmul.f32.gmra.mxu3 %v4815_v14  ;;  %6373 = vst [vmem:[#allocation101_spill] sm:$0xff] %v4867_v12  ;;  %v4870_v7 = vand.u32 4294901760, %v4864_v61  ;;  %v4872_v39 = vand.u32 4294901760, %v201_v41 }
  0xfe   : > { %1163 = vmatmul.f32.gmra.mxu2 %v4848_v30 }
  0xff   : > { %6374 = vst [vmem:[#allocation102_spill] sm:$0xff] %v4870_v7  ;;  %v4883_v59 = vsub.f32 %v201_v41, %v4872_v39 }
 0x100   : > { %v366_v56 = vpop.f32.mrf.mxu0  ;;  %6375 = vst [vmem:[#allocation103_spill] sm:$0xff] %v4872_v39 }
 0x101   : > { %v559_v57 = vpop.f32.mrf.mxu1  ;;  %v678_v37 = vpop.f32.mrf.mxu2  ;;  %6376 = vst [vmem:[#allocation104_spill] sm:$0xff] %v4883_v59 }
 0x102   : > { %v560_v50 = vadd.f32 %v559_v57, %v358_v63  ;;  %v797_v31 = vpop.f32.mrf.mxu3  ;;  %v1177_v63 = vsub.f32 %v4864_v61, %v4870_v7  ;;  %v203_v57 = vld [vmem:[%s3976_s14 + $0x98] sm:$0xff] }
 0x103   : > { %949 = vmatmul.f32.gmra.mxu0 %v4365_v25 }
 0x104   : > { %v679_v30 = vadd.f32 %v678_v37, %v560_v50  ;;  %1042 = vmatmul.f32.gmra.mxu1 %v4321_v20  ;;  %v4886_v40 = vand.u32 4294901760, %v1177_v63 }
 0x105   : > { %1368 = vmatmul.f32.gmra.mxu3 %v4834_v32 }
 0x106   : > { %v4876_v38 = vadd.f32 %v797_v31, %v679_v30  ;;  %1171 = vmatmul.f32.gmra.mxu2 %v4867_v12  ;;  %6377 = vst [vmem:[#allocation105_spill] sm:$0xff] %v4886_v40  ;;  %v4889_v31 = vand.u32 4294901760, %v4883_v59  ;;  %v4891_v30 = vand.u32 4294901760, %v203_v57 }
 0x108   : > { %v374_v10 = vpop.f32.mrf.mxu0  ;;  %6378 = vst [vmem:[#allocation106_spill] sm:$0xff] %v4889_v31  ;;  %v4902_v63 = vsub.f32 %v203_v57, %v4891_v30 }
 0x109   : > { %v563_v37 = vpop.f32.mrf.mxu1  ;;  %v683_v54 = vpop.f32.mrf.mxu2  ;;  %6379 = vst [vmem:[#allocation107_spill] sm:$0xff] %v4891_v30 }
 0x10a   : > { %v564_v50 = vadd.f32 %v563_v37, %v366_v56  ;;  %v803_v9 = vpop.f32.mrf.mxu3  ;;  %v1185_v56 = vsub.f32 %v4883_v59, %v4889_v31  ;;  %6380 = vst [vmem:[#allocation108_spill] sm:$0xff] %v4902_v63  ;;  %v205_v37 = vld [vmem:[%s3976_s14 + $0xa8] sm:$0xff] }
 0x10b   : > { %953 = vmatmul.f32.gmra.mxu0 %v4403_v43 }
 0x10c   : > { %v684_v12 = vadd.f32 %v683_v54, %v564_v50  ;;  %1046 = vmatmul.f32.gmra.mxu1 %v4365_v25  ;;  %v4905_v25 = vand.u32 4294901760, %v1185_v56 }
 0x10d   : > { %1372 = vmatmul.f32.gmra.mxu3 %v4853_v62 }
 0x10e   : > { %v4895_v41 = vadd.f32 %v803_v9, %v684_v12  ;;  %1179 = vmatmul.f32.gmra.mxu2 %v4886_v40  ;;  %6381 = vst [vmem:[#allocation109_spill] sm:$0xff] %v4905_v25  ;;  %v4908_v9 = vand.u32 4294901760, %v4902_v63  ;;  %v4910_v12 = vand.u32 4294901760, %v205_v37 }
 0x110   : > { %v382_v20 = vpop.f32.mrf.mxu0  ;;  %6382 = vst [vmem:[#allocation110_spill] sm:$0xff] %v4908_v9  ;;  %v4921_v56 = vsub.f32 %v205_v37, %v4910_v12 }
 0x111   : > { %v567_v54 = vpop.f32.mrf.mxu1  ;;  %v688_v16 = vpop.f32.mrf.mxu2  ;;  %6383 = vst [vmem:[#allocation111_spill] sm:$0xff] %v4910_v12 }
 0x112   : > { %v568_v50 = vadd.f32 %v567_v54, %v374_v10  ;;  %v809_v22 = vpop.f32.mrf.mxu3  ;;  %v1193_v10 = vsub.f32 %v4902_v63, %v4908_v9  ;;  %6384 = vst [vmem:[#allocation112_spill] sm:$0xff] %v4921_v56  ;;  %v207_v54 = vld [vmem:[%s3976_s14 + $0xb8] sm:$0xff] }
 0x113   : > { %957 = vmatmul.f32.gmra.mxu0 %v4435_v45 }
 0x114   : > { %v689_v40 = vadd.f32 %v688_v16, %v568_v50  ;;  %1050 = vmatmul.f32.gmra.mxu1 %v4403_v43  ;;  %v4924_v43 = vand.u32 4294901760, %v1193_v10 }
 0x115   : > { %1376 = vmatmul.f32.gmra.mxu3 %v4872_v39 }
 0x116   : > { %v4914_v57 = vadd.f32 %v809_v22, %v689_v40  ;;  %1187 = vmatmul.f32.gmra.mxu2 %v4905_v25  ;;  %6385 = vst [vmem:[#allocation113_spill] sm:$0xff] %v4924_v43  ;;  %v4927_v22 = vand.u32 4294901760, %v4921_v56  ;;  %v4929_v40 = vand.u32 4294901760, %v207_v54 }
 0x118   : > { %v390_v55 = vpop.f32.mrf.mxu0  ;;  %6386 = vst [vmem:[#allocation114_spill] sm:$0xff] %v4927_v22  ;;  %v4940_v10 = vsub.f32 %v207_v54, %v4929_v40 }
 0x119   : > { %v571_v16 = vpop.f32.mrf.mxu1  ;;  %v693_v49 = vpop.f32.mrf.mxu2  ;;  %6387 = vst [vmem:[#allocation115_spill] sm:$0xff] %v4929_v40 }
 0x11a   : > { %v572_v50 = vadd.f32 %v571_v16, %v382_v20  ;;  %v815_v6 = vpop.f32.mrf.mxu3  ;;  %v1201_v20 = vsub.f32 %v4921_v56, %v4927_v22  ;;  %6388 = vst [vmem:[#allocation116_spill] sm:$0xff] %v4940_v10  ;;  %v209_v16 = vld [vmem:[%s3976_s14 + $0xc8] sm:$0xff] }
 0x11b   : > { %961 = vmatmul.f32.gmra.mxu0 %v4475_v46 }
 0x11c   : > { %v694_v25 = vadd.f32 %v693_v49, %v572_v50  ;;  %1054 = vmatmul.f32.gmra.mxu1 %v4435_v45  ;;  %v4943_v45 = vand.u32 4294901760, %v1201_v20 }
 0x11d   : > { %1380 = vmatmul.f32.gmra.mxu3 %v4891_v30 }
 0x11e   : > { %v4933_v37 = vadd.f32 %v815_v6, %v694_v25  ;;  %1195 = vmatmul.f32.gmra.mxu2 %v4924_v43  ;;  %6389 = vst [vmem:[#allocation117_spill] sm:$0xff] %v4943_v45  ;;  %v4946_v6 = vand.u32 4294901760, %v4940_v10  ;;  %v4948_v25 = vand.u32 4294901760, %v209_v16 }
 0x120   : > { %v398_v27 = vpop.f32.mrf.mxu0  ;;  %6390 = vst [vmem:[#allocation118_spill] sm:$0xff] %v4946_v6  ;;  %v4959_v20 = vsub.f32 %v209_v16, %v4948_v25 }
 0x121   : > { %v575_v49 = vpop.f32.mrf.mxu1  ;;  %v698_v47 = vpop.f32.mrf.mxu2  ;;  %6391 = vst [vmem:[#allocation119_spill] sm:$0xff] %v4948_v25 }
 0x122   : > { %v576_v50 = vadd.f32 %v575_v49, %v390_v55  ;;  %v821_v35 = vpop.f32.mrf.mxu3  ;;  %v1209_v55 = vsub.f32 %v4940_v10, %v4946_v6  ;;  %6392 = vst [vmem:[#allocation120_spill] sm:$0xff] %v4959_v20  ;;  %v211_v49 = vld [vmem:[%s3976_s14 + $0xd8] sm:$0xff] }
 0x123   : > { %965 = vmatmul.f32.gmra.mxu0 %v4509_v34 }
 0x124   : > { %v699_v43 = vadd.f32 %v698_v47, %v576_v50  ;;  %1058 = vmatmul.f32.gmra.mxu1 %v4475_v46  ;;  %v4962_v46 = vand.u32 4294901760, %v1209_v55 }
 0x125   : > { %1384 = vmatmul.f32.gmra.mxu3 %v4910_v12 }
 0x126   : > { %v4952_v54 = vadd.f32 %v821_v35, %v699_v43  ;;  %1203 = vmatmul.f32.gmra.mxu2 %v4943_v45  ;;  %6393 = vst [vmem:[#allocation121_spill] sm:$0xff] %v4962_v46  ;;  %v4965_v35 = vand.u32 4294901760, %v4959_v20  ;;  %v4967_v43 = vand.u32 4294901760, %v211_v49 }
 0x128   : > { %v406_v22 = vpop.f32.mrf.mxu0  ;;  %6394 = vst [vmem:[#allocation122_spill] sm:$0xff] %v4965_v35  ;;  %v4978_v55 = vsub.f32 %v211_v49, %v4967_v43 }
 0x129   : > { %v579_v47 = vpop.f32.mrf.mxu1  ;;  %v703_v9 = vpop.f32.mrf.mxu2  ;;  %6395 = vst [vmem:[#allocation123_spill] sm:$0xff] %v4967_v43 }
 0x12a   : > { %v580_v50 = vadd.f32 %v579_v47, %v398_v27  ;;  %v827_v56 = vpop.f32.mrf.mxu3  ;;  %v1217_v27 = vsub.f32 %v4959_v20, %v4965_v35  ;;  %6396 = vst [vmem:[#allocation124_spill] sm:$0xff] %v4978_v55  ;;  %v213_v47 = vld [vmem:[%s3976_s14 + $0xe8] sm:$0xff]  ;;  %v215_v35 = vld [vmem:[%s3976_s14 + $0xf8] sm:$0xff] }
 0x12b   : > { %969 = vmatmul.f32.gmra.mxu0 %v4537_v53 }
 0x12c   : > { %v704_v45 = vadd.f32 %v703_v9, %v580_v50  ;;  %1062 = vmatmul.f32.gmra.mxu1 %v4509_v34  ;;  %v4981_v34 = vand.u32 4294901760, %v1217_v27  ;;  %v247_v27 = vld [vmem:[#allocation5 + $0xf8] sm:$0xff] }
 0x12d   : > { %1388 = vmatmul.f32.gmra.mxu3 %v4929_v40  ;;  %v5000_v20 = vand.u32 4294901760, %v247_v27 }
 0x12e   : > { %v4971_v16 = vadd.f32 %v827_v56, %v704_v45  ;;  %1211 = vmatmul.f32.gmra.mxu2 %v4962_v46  ;;  %6397 = vst [vmem:[#allocation125_spill] sm:$0xff] %v4981_v34  ;;  %v4984_v45 = vand.u32 4294901760, %v4978_v55  ;;  %v4986_v56 = vand.u32 4294901760, %v213_v47 }
 0x12f   : > { %6401 = vst [vmem:[#allocation129_spill] sm:$0xff] %v5000_v20  ;;  %1893 = vmatpush.msrb.mxu0 %v5000_v20  ;;  %2344 = vmatpush.msrb.mxu3 %v5000_v20 }
 0x130   : > { %v414_v6 = vpop.f32.mrf.mxu0  ;;  %6398 = vst [vmem:[#allocation126_spill] sm:$0xff] %v4984_v45 }
 0x131   : > { %v583_v10 = vpop.f32.mrf.mxu1  ;;  %v708_v50 = vpop.f32.mrf.mxu2  ;;  %6399 = vst [vmem:[#allocation127_spill] sm:$0xff] %v4986_v56 }
 0x132   : > { %v584_v9 = vadd.f32 %v583_v10, %v406_v22  ;;  %v833_v12 = vpop.f32.mrf.mxu3  ;;  %v1225_v22 = vsub.f32 %v4978_v55, %v4984_v45  ;;  %v4997_v10 = vsub.f32 %v213_v47, %v4986_v56  ;;  %v5012_v45 = vand.u32 4294901760, %v215_v35 }
 0x133   : > { %973 = vmatmul.f32.gmra.mxu0 %v4574_v19 }
 0x134   : > { %v709_v46 = vadd.f32 %v708_v50, %v584_v9  ;;  %1066 = vmatmul.f32.gmra.mxu1 %v4537_v53  ;;  %6400 = vst [vmem:[#allocation128_spill] sm:$0xff] %v4997_v10  ;;  %v5010_v47 = vand.u32 4294901760, %v4997_v10 }
 0x135   : > { %1392 = vmatmul.f32.gmra.mxu3 %v4948_v25  ;;  %6404 = vst [vmem:[#allocation132_spill] sm:$0xff] %v5012_v45 }
 0x136   : > { %v4990_v49 = vadd.f32 %v833_v12, %v709_v46  ;;  %1219 = vmatmul.f32.gmra.mxu2 %v4981_v34  ;;  %v5003_v12 = vsub.f32 %v247_v27, %v5000_v20  ;;  %v5007_v34 = vand.u32 4294901760, %v1225_v22  ;;  %6403 = vst [vmem:[#allocation131_spill] sm:$0xff] %v5010_v47 }
 0x138   : > { %v422_v9 = vpop.f32.mrf.mxu0  ;;  %6402 = vst [vmem:[#allocation130_spill] sm:$0xff] %v5007_v34  ;;  %2216 = vmatpush.msrb.mxu2 %v5003_v12 }
 0x139   : > { %v587_v50 = vpop.f32.mrf.mxu1  ;;  %v713_v53 = vpop.f32.mrf.mxu2 }
 0x13a   : > { %v588_v40 = vadd.f32 %v587_v50, %v414_v6  ;;  %v839_v46 = vpop.f32.mrf.mxu3  ;;  %v6154_v6 = vand.u32 4294901760, %v5003_v12  ;;  %v245_v50 = vld [vmem:[#allocation5 + $0xe8] sm:$0xff] }
 0x13b   : > { %977 = vmatmul.f32.gmra.mxu0 %v4603_v15  ;;  %v5030_v20 = vand.u32 4294901760, %v245_v50 }
 0x13c   : > { %v714_v55 = vadd.f32 %v713_v53, %v588_v40  ;;  %1070 = vmatmul.f32.gmra.mxu1 %v4574_v19  ;;  %v2056_v22 = vsub.f32 %v5003_v12, %v6154_v6  ;;  %v1233_v53 = vsub.f32 %v4997_v10, %v5010_v47  ;;  %v5028_v40 = vsub.f32 %v215_v35, %v5012_v45 }
 0x13d   : > { %1396 = vmatmul.f32.gmra.mxu3 %v4967_v43  ;;  %v5033_v6 = vsub.f32 %v245_v50, %v5030_v20  ;;  %1895 = vmatpush.msrb.mxu0 %v5030_v20 }
 0x13e   : > { %v5018_v27 = vadd.f32 %v839_v46, %v714_v55  ;;  %1227 = vmatmul.f32.gmra.mxu2 %v5007_v34  ;;  %6406 = vst [vmem:[#allocation134_spill] sm:$0xff] %v5028_v40  ;;  %v2057_v19 = vand.u32 4294901760, %v2056_v22  ;;  %v5036_v34 = vand.u32 4294901760, %v1233_v53  ;;  %v5039_v35 = vand.u32 4294901760, %v5028_v40  ;;  %2346 = vmatpush.msrb.mxu3 %v5030_v20 }
 0x13f   : > { %2219 = vmatpush.msrb.mxu2 %v5033_v6 }
 0x140   : > { %6405 = vst [vmem:[#allocation133_spill] sm:$0xff] %v5018_v27  ;;  %v430_v55 = vpop.f32.mrf.mxu0  ;;  %2058 = vmatpush.msrb.mxu1 %v2057_v19 }
 0x141   : > { %v591_v46 = vpop.f32.mrf.mxu1  ;;  %v718_v43 = vpop.f32.mrf.mxu2  ;;  %6407 = vst [vmem:[#allocation135_spill] sm:$0xff] %v5036_v34 }
 0x142   : > { %v592_v27 = vadd.f32 %v591_v46, %v422_v9  ;;  %v845_v25 = vpop.f32.mrf.mxu3  ;;  %6408 = vst [vmem:[#allocation136_spill] sm:$0xff] %v5039_v35  ;;  %v6164_v9 = vand.u32 4294901760, %v5033_v6 }
 0x143   : > { %981 = vmatmul.f32.gmra.mxu0 %v4634_v18 }
 0x144   : > { %v719_v22 = vadd.f32 %v718_v43, %v592_v27  ;;  %1074 = vmatmul.f32.gmra.mxu1 %v4603_v15  ;;  %v2062_v53 = vsub.f32 %v5033_v6, %v6164_v9  ;;  %v1241_v43 = vsub.f32 %v5028_v40, %v5039_v35  ;;  %v243_v27 = vld [vmem:[#allocation5 + $0xd8] sm:$0xff] }
 0x145   : > { %1400 = vmatmul.f32.gmra.mxu3 %v4986_v56  ;;  %v5055_v46 = vand.u32 4294901760, %v243_v27 }
 0x146   : > { %v5046_v19 = vadd.f32 %v845_v25, %v719_v22  ;;  %1235 = vmatmul.f32.gmra.mxu2 %v5036_v34  ;;  %v2063_v50 = vand.u32 4294901760, %v2062_v53  ;;  %v5061_v9 = vand.u32 4294901760, %v1241_v43  ;;  %v241_v43 = vld [vmem:[#allocation5 + $0xc8] sm:$0xff] }
 0x147   : > { %v5058_v56 = vsub.f32 %v243_v27, %v5055_v46  ;;  %1897 = vmatpush.msrb.mxu0 %v5055_v46  ;;  %2348 = vmatpush.msrb.mxu3 %v5055_v46  ;;  %v5075_v27 = vand.u32 4294901760, %v241_v43 }
 0x148   : > { %v438_v15 = vpop.f32.mrf.mxu0  ;;  %2064 = vmatpush.msrb.mxu1 %v2063_v50  ;;  %6409 = vst [vmem:[#allocation137_spill] sm:$0xff] %v5061_v9 }
 0x149   : > { %v595_v47 = vpop.f32.mrf.mxu1  ;;  %v723_v25 = vpop.f32.mrf.mxu2  ;;  %v6172_v53 = vand.u32 4294901760, %v5058_v56  ;;  %2222 = vmatpush.msrb.mxu2 %v5058_v56  ;;  %1899 = vmatpush.msrb.mxu0 %v5075_v27 }
 0x14a   : > { %v596_v10 = vadd.f32 %v595_v47, %v430_v55  ;;  %v851_v22 = vpop.f32.mrf.mxu3  ;;  %2350 = vmatpush.msrb.mxu3 %v5075_v27 }
 0x14b   : > { %985 = vmatmul.f32.gmra.mxu0 %v4665_v3  ;;  %v2068_v55 = vsub.f32 %v5058_v56, %v6172_v53 }
 0x14c   : > { %v724_v34 = vadd.f32 %v723_v25, %v596_v10  ;;  %1078 = vmatmul.f32.gmra.mxu1 %v4634_v18 }
 0x14d   : > { %1404 = vmatmul.f32.gmra.mxu3 %v5012_v45  ;;  %v2069_v10 = vand.u32 4294901760, %v2068_v55 }
 0x14e   : > { %v5068_v47 = vadd.f32 %v851_v22, %v724_v34  ;;  %1243 = vmatmul.f32.gmra.mxu2 %v5061_v9  ;;  %v5078_v34 = vsub.f32 %v241_v43, %v5075_v27 }
 0x14f   : > { %2070 = vmatpush.msrb.mxu1 %v2069_v10  ;;  %v239_v10 = vld [vmem:[#allocation5 + $0xb8] sm:$0xff] }
 0x150   : > { %v926_v25 = vpop.f32.mrf.mxu0  ;;  %v6177_v55 = vand.u32 4294901760, %v5078_v34  ;;  %2225 = vmatpush.msrb.mxu2 %v5078_v34 }
 0x151   : > { %v599_v50 = vpop.f32.mrf.mxu1  ;;  %v728_v35 = vpop.f32.mrf.mxu2 }
 0x152   : > { %v600_v18 = vadd.f32 %v599_v50, %v438_v15  ;;  %v857_v40 = vpop.f32.mrf.mxu3  ;;  %v2074_v43 = vsub.f32 %v5078_v34, %v6177_v55  ;;  %v5094_v50 = vand.u32 4294901760, %v239_v10 }
 0x153   : > { %1458 = vmatmul.f32.vlgmr.msra.gmra.mxu0 %v4709_v60 }
 0x154   : > { %v729_v22 = vadd.f32 %v728_v35, %v600_v18  ;;  %1082 = vmatmul.f32.gmra.mxu1 %v4665_v3  ;;  %v927_v18 = vadd.f32 %v926_v25, %v4781_v52  ;;  %v2075_v35 = vand.u32 4294901760, %v2074_v43  ;;  %1901 = vmatpush.msrb.mxu0 %v5094_v50  ;;  %v237_v43 = vld [vmem:[#allocation5 + $0xa8] sm:$0xff] }
 0x155   : > { %1828 = vmatmul.f32.vlgmr.msra.gmra.mxu3 %v4696_v42 }
 0x156   : > { %v5086_v15 = vadd.f32 %v857_v40, %v729_v22  ;;  %1731 = vmatmul.f32.vlgmr.msra.gmra.mxu2 %v4696_v42  ;;  %2076 = vmatpush.msrb.mxu1 %v2075_v35  ;;  %v5097_v22 = vsub.f32 %v239_v10, %v5094_v50  ;;  %v5113_v10 = vand.u32 4294901760, %v237_v43 }
 0x157   : > { %2352 = vmatpush.msrb.mxu3 %v5094_v50 }
 0x158   : > { %v930_v53 = vpop.f32.mrf.mxu0  ;;  %v6180_v52 = vand.u32 4294901760, %v5097_v22  ;;  %2228 = vmatpush.msrb.mxu2 %v5097_v22  ;;  %1903 = vmatpush.msrb.mxu0 %v5113_v10 }
 0x159   : > { %v1023_v60 = vpop.f32.mrf.mxu1  ;;  %v1124_v3 = vpop.f32.mrf.mxu2  ;;  %2354 = vmatpush.msrb.mxu3 %v5113_v10 }
 0x15a   : > { %v1024_v9 = vadd.f32 %v1023_v60, %v927_v18  ;;  %v1345_v40 = vpop.f32.mrf.mxu3  ;;  %v2080_v25 = vsub.f32 %v5097_v22, %v6180_v52 }
 0x15b   : > { %1463 = vmatmul.f32.gmra.mxu0 %v4736_v26 }
 0x15c   : > { %v1125_v55 = vadd.f32 %v1124_v3, %v1024_v9  ;;  %1572 = vmatmul.f32.vlgmr.msra.gmra.mxu1 %v4721_v5  ;;  %v931_v3 = vadd.f32 %v930_v53, %v4800_v44  ;;  %v2081_v9 = vand.u32 4294901760, %v2080_v25 }
 0x15d   : > { %1832 = vmatmul.f32.gmra.mxu3 %v4723_v23 }
 0x15e   : > { %v5105_v60 = vadd.f32 %v1345_v40, %v1125_v55  ;;  %1735 = vmatmul.f32.gmra.mxu2 %v4723_v23  ;;  %2082 = vmatpush.msrb.mxu1 %v2081_v9  ;;  %v5116_v40 = vsub.f32 %v237_v43, %v5113_v10  ;;  %v235_v43 = vld [vmem:[#allocation5 + $0x98] sm:$0xff] }
 0x160   : > { %v934_v18 = vpop.f32.mrf.mxu0  ;;  %v6183_v44 = vand.u32 4294901760, %v5116_v40  ;;  %2231 = vmatpush.msrb.mxu2 %v5116_v40 }
 0x161   : > { %v1027_v35 = vpop.f32.mrf.mxu1  ;;  %v1132_v26 = vpop.f32.mrf.mxu2 }
 0x162   : > { %v1028_v5 = vadd.f32 %v1027_v35, %v931_v3  ;;  %v1349_v55 = vpop.f32.mrf.mxu3  ;;  %v2086_v25 = vsub.f32 %v5116_v40, %v6183_v44  ;;  %v5132_v3 = vand.u32 4294901760, %v235_v43 }
 0x163   : > { %1468 = vmatmul.f32.gmra.mxu0 %v4763_v51 }
 0x164   : > { %v1133_v52 = vadd.f32 %v1132_v26, %v1028_v5  ;;  %1578 = vmatmul.f32.gmra.mxu1 %v4748_v17  ;;  %v935_v5 = vadd.f32 %v934_v18, %v4819_v21  ;;  %v2087_v26 = vand.u32 4294901760, %v2086_v25  ;;  %1905 = vmatpush.msrb.mxu0 %v5132_v3 }
 0x165   : > { %1836 = vmatmul.f32.gmra.mxu3 %v4750_v0 }
 0x166   : > { %v5124_v53 = vadd.f32 %v1349_v55, %v1133_v52  ;;  %1739 = vmatmul.f32.gmra.mxu2 %v4750_v0  ;;  %2088 = vmatpush.msrb.mxu1 %v2087_v26  ;;  %v5135_v55 = vsub.f32 %v235_v43, %v5132_v3  ;;  %v233_v43 = vld [vmem:[#allocation5 + $0x88] sm:$0xff] }
 0x167   : > { %2356 = vmatpush.msrb.mxu3 %v5132_v3 }
 0x168   : > { %v938_v9 = vpop.f32.mrf.mxu0  ;;  %v6186_v21 = vand.u32 4294901760, %v5135_v55  ;;  %2234 = vmatpush.msrb.mxu2 %v5135_v55 }
 0x169   : > { %v1031_v35 = vpop.f32.mrf.mxu1  ;;  %v1140_v51 = vpop.f32.mrf.mxu2 }
 0x16a   : > { %v1032_v17 = vadd.f32 %v1031_v35, %v935_v5  ;;  %v1353_v52 = vpop.f32.mrf.mxu3  ;;  %v2092_v25 = vsub.f32 %v5135_v55, %v6186_v21  ;;  %v5151_v5 = vand.u32 4294901760, %v233_v43 }
 0x16b   : > { %1473 = vmatmul.f32.gmra.mxu0 %v4788_v8 }
 0x16c   : > { %v1141_v44 = vadd.f32 %v1140_v51, %v1032_v17  ;;  %1584 = vmatmul.f32.gmra.mxu1 %v4775_v36  ;;  %v939_v17 = vadd.f32 %v938_v9, %v4838_v1  ;;  %v2093_v51 = vand.u32 4294901760, %v2092_v25  ;;  %1907 = vmatpush.msrb.mxu0 %v5151_v5 }
 0x16d   : > { %1840 = vmatmul.f32.gmra.mxu3 %v4777_v33 }
 0x16e   : > { %v5143_v18 = vadd.f32 %v1353_v52, %v1141_v44  ;;  %1743 = vmatmul.f32.gmra.mxu2 %v4777_v33  ;;  %2094 = vmatpush.msrb.mxu1 %v2093_v51  ;;  %v5154_v52 = vsub.f32 %v233_v43, %v5151_v5  ;;  %v231_v43 = vld [vmem:[#allocation5 + $0x78] sm:$0xff] }
 0x16f   : > { %2358 = vmatpush.msrb.mxu3 %v5151_v5 }
 0x170   : > { %v942_v26 = vpop.f32.mrf.mxu0  ;;  %v6189_v1 = vand.u32 4294901760, %v5154_v52  ;;  %2237 = vmatpush.msrb.mxu2 %v5154_v52 }
 0x171   : > { %v1035_v35 = vpop.f32.mrf.mxu1  ;;  %v1148_v8 = vpop.f32.mrf.mxu2 }
 0x172   : > { %v1036_v36 = vadd.f32 %v1035_v35, %v939_v17  ;;  %v1357_v44 = vpop.f32.mrf.mxu3  ;;  %v2098_v25 = vsub.f32 %v5154_v52, %v6189_v1  ;;  %v5170_v17 = vand.u32 4294901760, %v231_v43 }
 0x173   : > { %1478 = vmatmul.f32.gmra.mxu0 %v4807_v28 }
 0x174   : > { %v1149_v21 = vadd.f32 %v1148_v8, %v1036_v36  ;;  %1590 = vmatmul.f32.gmra.mxu1 %v4794_v48  ;;  %v943_v36 = vadd.f32 %v942_v26, %v4857_v29  ;;  %v2099_v8 = vand.u32 4294901760, %v2098_v25  ;;  %1909 = vmatpush.msrb.mxu0 %v5170_v17 }
 0x175   : > { %1844 = vmatmul.f32.gmra.mxu3 %v4796_v58 }
 0x176   : > { %v5162_v9 = vadd.f32 %v1357_v44, %v1149_v21  ;;  %1747 = vmatmul.f32.gmra.mxu2 %v4796_v58  ;;  %2100 = vmatpush.msrb.mxu1 %v2099_v8  ;;  %v5173_v44 = vsub.f32 %v231_v43, %v5170_v17  ;;  %v229_v43 = vld [vmem:[#allocation5 + $0x68] sm:$0xff] }
 0x177   : > { %2360 = vmatpush.msrb.mxu3 %v5170_v17 }
 0x178   : > { %v946_v51 = vpop.f32.mrf.mxu0  ;;  %v6192_v29 = vand.u32 4294901760, %v5173_v44  ;;  %2240 = vmatpush.msrb.mxu2 %v5173_v44 }
 0x179   : > { %v1039_v35 = vpop.f32.mrf.mxu1  ;;  %v1156_v28 = vpop.f32.mrf.mxu2 }
 0x17a   : > { %v1040_v48 = vadd.f32 %v1039_v35, %v943_v36  ;;  %v1361_v21 = vpop.f32.mrf.mxu3  ;;  %v2104_v25 = vsub.f32 %v5173_v44, %v6192_v29  ;;  %v5189_v36 = vand.u32 4294901760, %v229_v43 }
 0x17b   : > { %1483 = vmatmul.f32.gmra.mxu0 %v4826_v4 }
 0x17c   : > { %v1157_v1 = vadd.f32 %v1156_v28, %v1040_v48  ;;  %1596 = vmatmul.f32.gmra.mxu1 %v4813_v2  ;;  %v947_v48 = vadd.f32 %v946_v51, %v4876_v38  ;;  %v2105_v28 = vand.u32 4294901760, %v2104_v25  ;;  %1911 = vmatpush.msrb.mxu0 %v5189_v36 }
 0x17d   : > { %1848 = vmatmul.f32.gmra.mxu3 %v4815_v14 }
 0x17e   : > { %v5181_v26 = vadd.f32 %v1361_v21, %v1157_v1  ;;  %1751 = vmatmul.f32.gmra.mxu2 %v4815_v14  ;;  %2106 = vmatpush.msrb.mxu1 %v2105_v28  ;;  %v5192_v21 = vsub.f32 %v229_v43, %v5189_v36  ;;  %v227_v43 = vld [vmem:[#allocation5 + $0x58] sm:$0xff] }
 0x17f   : > { %2362 = vmatpush.msrb.mxu3 %v5189_v36 }
 0x180   : > { %v950_v8 = vpop.f32.mrf.mxu0  ;;  %v6195_v38 = vand.u32 4294901760, %v5192_v21  ;;  %2243 = vmatpush.msrb.mxu2 %v5192_v21 }
 0x181   : > { %v1043_v35 = vpop.f32.mrf.mxu1  ;;  %v1164_v4 = vpop.f32.mrf.mxu2 }
 0x182   : > { %v1044_v2 = vadd.f32 %v1043_v35, %v947_v48  ;;  %v1365_v1 = vpop.f32.mrf.mxu3  ;;  %v2110_v25 = vsub.f32 %v5192_v21, %v6195_v38  ;;  %v5208_v48 = vand.u32 4294901760, %v227_v43 }
 0x183   : > { %1488 = vmatmul.f32.gmra.mxu0 %v4845_v13 }
 0x184   : > { %v1165_v29 = vadd.f32 %v1164_v4, %v1044_v2  ;;  %1602 = vmatmul.f32.gmra.mxu1 %v4832_v24  ;;  %v951_v2 = vadd.f32 %v950_v8, %v4895_v41  ;;  %v2111_v4 = vand.u32 4294901760, %v2110_v25  ;;  %1913 = vmatpush.msrb.mxu0 %v5208_v48 }
 0x185   : > { %1852 = vmatmul.f32.gmra.mxu3 %v4834_v32 }
 0x186   : > { %v5200_v51 = vadd.f32 %v1365_v1, %v1165_v29  ;;  %1755 = vmatmul.f32.gmra.mxu2 %v4834_v32  ;;  %2112 = vmatpush.msrb.mxu1 %v2111_v4  ;;  %v5211_v1 = vsub.f32 %v227_v43, %v5208_v48  ;;  %v225_v43 = vld [vmem:[#allocation5 + $0x48] sm:$0xff] }
 0x187   : > { %2364 = vmatpush.msrb.mxu3 %v5208_v48 }
 0x188   : > { %v954_v28 = vpop.f32.mrf.mxu0  ;;  %v6198_v41 = vand.u32 4294901760, %v5211_v1  ;;  %2246 = vmatpush.msrb.mxu2 %v5211_v1 }
 0x189   : > { %v1047_v35 = vpop.f32.mrf.mxu1  ;;  %v1172_v13 = vpop.f32.mrf.mxu2 }
 0x18a   : > { %v1048_v24 = vadd.f32 %v1047_v35, %v951_v2  ;;  %v1369_v29 = vpop.f32.mrf.mxu3  ;;  %v2116_v25 = vsub.f32 %v5211_v1, %v6198_v41  ;;  %v5227_v2 = vand.u32 4294901760, %v225_v43 }
 0x18b   : > { %1493 = vmatmul.f32.gmra.mxu0 %v4864_v61 }
 0x18c   : > { %v1173_v38 = vadd.f32 %v1172_v13, %v1048_v24  ;;  %1608 = vmatmul.f32.gmra.mxu1 %v4851_v11  ;;  %v955_v24 = vadd.f32 %v954_v28, %v4914_v57  ;;  %v2117_v13 = vand.u32 4294901760, %v2116_v25  ;;  %1915 = vmatpush.msrb.mxu0 %v5227_v2 }
 0x18d   : > { %1856 = vmatmul.f32.gmra.mxu3 %v4853_v62 }
 0x18e   : > { %v5219_v8 = vadd.f32 %v1369_v29, %v1173_v38  ;;  %1759 = vmatmul.f32.gmra.mxu2 %v4853_v62  ;;  %2118 = vmatpush.msrb.mxu1 %v2117_v13  ;;  %v5230_v29 = vsub.f32 %v225_v43, %v5227_v2  ;;  %v223_v43 = vld [vmem:[#allocation5 + $0x38] sm:$0xff] }
 0x18f   : > { %2366 = vmatpush.msrb.mxu3 %v5227_v2 }
 0x190   : > { %v958_v4 = vpop.f32.mrf.mxu0  ;;  %v6201_v57 = vand.u32 4294901760, %v5230_v29  ;;  %2249 = vmatpush.msrb.mxu2 %v5230_v29 }
 0x191   : > { %v1051_v35 = vpop.f32.mrf.mxu1  ;;  %v1180_v61 = vpop.f32.mrf.mxu2 }
 0x192   : > { %v1052_v11 = vadd.f32 %v1051_v35, %v955_v24  ;;  %v1373_v38 = vpop.f32.mrf.mxu3  ;;  %v2122_v25 = vsub.f32 %v5230_v29, %v6201_v57  ;;  %v5246_v24 = vand.u32 4294901760, %v223_v43 }
 0x193   : > { %1498 = vmatmul.f32.gmra.mxu0 %v4883_v59 }
 0x194   : > { %v1181_v41 = vadd.f32 %v1180_v61, %v1052_v11  ;;  %1614 = vmatmul.f32.gmra.mxu1 %v4870_v7  ;;  %v959_v11 = vadd.f32 %v958_v4, %v4933_v37  ;;  %v2123_v61 = vand.u32 4294901760, %v2122_v25  ;;  %1917 = vmatpush.msrb.mxu0 %v5246_v24 }
 0x195   : > { %1860 = vmatmul.f32.gmra.mxu3 %v4872_v39 }
 0x196   : > { %v5238_v28 = vadd.f32 %v1373_v38, %v1181_v41  ;;  %1763 = vmatmul.f32.gmra.mxu2 %v4872_v39  ;;  %2124 = vmatpush.msrb.mxu1 %v2123_v61  ;;  %v5249_v38 = vsub.f32 %v223_v43, %v5246_v24  ;;  %v221_v43 = vld [vmem:[#allocation5 + $0x28] sm:$0xff] }
 0x197   : > { %2368 = vmatpush.msrb.mxu3 %v5246_v24 }
 0x198   : > { %v962_v13 = vpop.f32.mrf.mxu0  ;;  %v6204_v37 = vand.u32 4294901760, %v5249_v38  ;;  %2252 = vmatpush.msrb.mxu2 %v5249_v38 }
 0x199   : > { %v1055_v35 = vpop.f32.mrf.mxu1  ;;  %v1188_v59 = vpop.f32.mrf.mxu2 }
 0x19a   : > { %v1056_v7 = vadd.f32 %v1055_v35, %v959_v11  ;;  %v1377_v41 = vpop.f32.mrf.mxu3  ;;  %v2128_v25 = vsub.f32 %v5249_v38, %v6204_v37  ;;  %v5265_v11 = vand.u32 4294901760, %v221_v43 }
 0x19b   : > { %1503 = vmatmul.f32.gmra.mxu0 %v4902_v63 }
 0x19c   : > { %v1189_v57 = vadd.f32 %v1188_v59, %v1056_v7  ;;  %1620 = vmatmul.f32.gmra.mxu1 %v4889_v31  ;;  %v963_v7 = vadd.f32 %v962_v13, %v4952_v54  ;;  %v2129_v59 = vand.u32 4294901760, %v2128_v25  ;;  %1919 = vmatpush.msrb.mxu0 %v5265_v11  ;;  %v6411_v54 = vld [vmem:[#allocation110_spill] sm:$0xff] }
 0x19d   : > { %1864 = vmatmul.f32.gmra.mxu3 %v4891_v30 }
 0x19e   : > { %v5257_v4 = vadd.f32 %v1377_v41, %v1189_v57  ;;  %1767 = vmatmul.f32.gmra.mxu2 %v4891_v30  ;;  %2130 = vmatpush.msrb.mxu1 %v2129_v59  ;;  %v5268_v41 = vsub.f32 %v221_v43, %v5265_v11  ;;  %v6410_v30 = vld [vmem:[#allocation112_spill] sm:$0xff]  ;;  %v219_v59 = vld [vmem:[#allocation5 + $0x18] sm:$0xff] }
 0x19f   : > { %2370 = vmatpush.msrb.mxu3 %v5265_v11 }
 0x1a0   : > { %v966_v61 = vpop.f32.mrf.mxu0  ;;  %v6211_v13 = vand.u32 4294901760, %v5268_v41  ;;  %2255 = vmatpush.msrb.mxu2 %v5268_v41 }
 0x1a1   : > { %v1059_v35 = vpop.f32.mrf.mxu1  ;;  %v1196_v63 = vpop.f32.mrf.mxu2 }
 0x1a2   : > { %v1060_v31 = vadd.f32 %v1059_v35, %v963_v7  ;;  %v1381_v57 = vpop.f32.mrf.mxu3  ;;  %v6412_v7 = vld [vmem:[#allocation111_spill] sm:$0xff]  ;;  %v2134_v43 = vsub.f32 %v5268_v41, %v6211_v13  ;;  %v5284_v35 = vand.u32 4294901760, %v219_v59 }
 0x1a3   : > { %1508 = vmatmul.f32.gmra.mxu0 %v6410_v30 }
 0x1a4   : > { %v1197_v37 = vadd.f32 %v1196_v63, %v1060_v31  ;;  %1626 = vmatmul.f32.gmra.mxu1 %v6411_v54  ;;  %v967_v31 = vadd.f32 %v966_v61, %v4971_v16  ;;  %v2135_v63 = vand.u32 4294901760, %v2134_v43  ;;  %1921 = vmatpush.msrb.mxu0 %v5284_v35  ;;  %v6414_v16 = vld [vmem:[#allocation114_spill] sm:$0xff]  ;;  %v6415_v43 = vld [vmem:[#allocation115_spill] sm:$0xff] }
 0x1a5   : > { %1868 = vmatmul.f32.gmra.mxu3 %v6412_v7 }
 0x1a6   : > { %v5276_v25 = vadd.f32 %v1381_v57, %v1197_v37  ;;  %1771 = vmatmul.f32.gmra.mxu2 %v6412_v7  ;;  %2136 = vmatpush.msrb.mxu1 %v2135_v63  ;;  %v5287_v57 = vsub.f32 %v219_v59, %v5284_v35  ;;  %v6413_v7 = vld [vmem:[#allocation116_spill] sm:$0xff] }
 0x1a7   : > { %2372 = vmatpush.msrb.mxu3 %v5284_v35 }
 0x1a8   : > { %v970_v54 = vpop.f32.mrf.mxu0  ;;  %v6217_v61 = vand.u32 4294901760, %v5287_v57  ;;  %2258 = vmatpush.msrb.mxu2 %v5287_v57 }
 0x1a9   : > { %v1063_v30 = vpop.f32.mrf.mxu1  ;;  %v1204_v62 = vpop.f32.mrf.mxu2 }
 0x1aa   : > { %v1064_v39 = vadd.f32 %v1063_v30, %v967_v31  ;;  %v1385_v37 = vpop.f32.mrf.mxu3  ;;  %v2140_v59 = vsub.f32 %v5287_v57, %v6217_v61  ;;  %v217_v31 = vld [vmem:[#allocation5 + $0x8] sm:$0xff]  ;;  %v6416_v61 = vand.u32 4294901760, %v5003_v12 }
 0x1ab   : > { %1513 = vmatmul.f32.gmra.mxu0 %v6413_v7  ;;  %v5303_v63 = vand.u32 4294901760, %v217_v31 }
 0x1ac   : > { %v1205_v13 = vadd.f32 %v1204_v62, %v1064_v39  ;;  %1632 = vmatmul.f32.gmra.mxu1 %v6414_v16  ;;  %v971_v62 = vadd.f32 %v970_v54, %v4990_v49  ;;  %v2141_v39 = vand.u32 4294901760, %v2140_v59  ;;  %v6417_v54 = vld [vmem:[#allocation120_spill] sm:$0xff]  ;;  %v6418_v59 = vld [vmem:[#allocation118_spill] sm:$0xff] }
 0x1ad   : > { %1872 = vmatmul.f32.gmra.mxu3 %v6415_v43  ;;  %1923 = vmatpush.msrb.mxu0 %v5303_v63 }
 0x1ae   : > { %v5295_v30 = vadd.f32 %v1385_v37, %v1205_v13  ;;  %1775 = vmatmul.f32.gmra.mxu2 %v6415_v43  ;;  %2142 = vmatpush.msrb.mxu1 %v2141_v39  ;;  %v5306_v37 = vsub.f32 %v217_v31, %v5303_v63  ;;  %v6420_v39 = vld [vmem:[#allocation119_spill] sm:$0xff] }
 0x1af   : > { %2374 = vmatpush.msrb.mxu3 %v5303_v63  ;;  %2475 = vmatpush.msra.mxu0 %v6416_v61  ;;  %v6422_v61 = vld [vmem:[#allocation133_spill] sm:$0xff] }
 0x1b0   : > { %v974_v16 = vpop.f32.mrf.mxu0  ;;  %2261 = vmatpush.msrb.mxu2 %v5306_v37 }
 0x1b1   : > { %v1067_v7 = vpop.f32.mrf.mxu1  ;;  %v1212_v14 = vpop.f32.mrf.mxu2 }
 0x1b2   : > { %v1068_v32 = vadd.f32 %v1067_v7, %v971_v62  ;;  %v1389_v13 = vpop.f32.mrf.mxu3  ;;  %v6223_v7 = vand.u32 4294901760, %v5306_v37  ;;  %v6419_v62 = vand.u32 4294901760, %v5033_v6 }
 0x1b3   : > { %1518 = vmatmul.f32.gmra.mxu0 %v6417_v54 }
 0x1b4   : > { %v1213_v49 = vadd.f32 %v1212_v14, %v1068_v32  ;;  %1638 = vmatmul.f32.gmra.mxu1 %v6418_v59  ;;  %2479 = vmatpush.msra.mxu0 %v6419_v62  ;;  %v2146_v12 = vsub.f32 %v5306_v37, %v6223_v7  ;;  %v279_v14 = vld [vmem:[#allocation5 + $0x1f8] sm:$0xff]  ;;  %v6421_v32 = vand.u32 4294901760, %v5058_v56  ;;  %v975_v59 = vadd.f32 %v974_v16, %v6422_v61  ;;  %v6424_v56 = vld [vmem:[#allocation129_spill] sm:$0xff] }
 0x1b5   : > { %1876 = vmatmul.f32.gmra.mxu3 %v6420_v39  ;;  %v5328_v43 = vand.u32 4294901760, %v279_v14  ;;  %v6425_v16 = vand.u32 4294901760, %v5097_v22  ;;  %v6427_v61 = vld [vmem:[#allocation122_spill] sm:$0xff] }
 0x1b6   : > { %v5318_v31 = vadd.f32 %v1389_v13, %v1213_v49  ;;  %1779 = vmatmul.f32.gmra.mxu2 %v6420_v39  ;;  %2483 = vmatpush.msra.mxu0 %v6421_v32  ;;  %v2147_v54 = vand.u32 4294901760, %v2146_v12  ;;  %v6423_v49 = vand.u32 4294901760, %v5078_v34  ;;  %v6426_v32 = vld [vmem:[#allocation124_spill] sm:$0xff] }
 0x1b7   : > { %2699 = vmatpush.msra.mxu2 %v5328_v43  ;;  %v5334_v7 = vsub.f32 %v279_v14, %v5328_v43  ;;  %v6429_v14 = vld [vmem:[#allocation123_spill] sm:$0xff] }
 0x1b8   : > { %v978_v6 = vpop.f32.mrf.mxu0  ;;  %2487 = vmatpush.msra.mxu0 %v6423_v49  ;;  %2148 = vmatpush.msrb.mxu1 %v2147_v54  ;;  %v6428_v54 = vand.u32 4294901760, %v5116_v40  ;;  %v277_v49 = vld [vmem:[#allocation5 + $0x1e8] sm:$0xff] }
 0x1b9   : > { %v1071_v13 = vpop.f32.mrf.mxu1  ;;  %v1220_v58 = vpop.f32.mrf.mxu2  ;;  %v6231_v34 = vand.u32 4294901760, %v5334_v7 }
 0x1ba   : > { %v1072_v62 = vadd.f32 %v1071_v13, %v975_v59  ;;  %v1393_v33 = vpop.f32.mrf.mxu3  ;;  %2602 = vmatpush.msra.mxu1 %v6424_v56  ;;  %2491 = vmatpush.msra.mxu0 %v6425_v16 }
 0x1bb   : > { %1523 = vmatmul.f32.gmra.mxu0 %v6426_v32  ;;  %v2862_v22 = vsub.f32 %v5334_v7, %v6231_v34 }
 0x1bc   : > { %v1221_v12 = vadd.f32 %v1220_v58, %v1072_v62  ;;  %1644 = vmatmul.f32.gmra.mxu1 %v6427_v61  ;;  %2495 = vmatpush.msra.mxu0 %v6428_v54  ;;  %v979_v58 = vadd.f32 %v978_v6, %v5046_v19  ;;  %v5356_v62 = vand.u32 4294901760, %v277_v49  ;;  %v6431_v54 = vand.u32 4294901760, %v5154_v52  ;;  %v6433_v6 = vld [vmem:[#allocation126_spill] sm:$0xff] }
 0x1bd   : > { %2604 = vmatpush.msra.mxu1 %v5030_v20  ;;  %1880 = vmatmul.f32.gmra.mxu3 %v6429_v14  ;;  %v2863_v13 = vand.u32 4294901760, %v2862_v22  ;;  %v6430_v20 = vand.u32 4294901760, %v5135_v55  ;;  %v6432_v55 = vld [vmem:[#allocation128_spill] sm:$0xff]  ;;  %v6434_v22 = vand.u32 4294901760, %v5173_v44 }
 0x1be   : > { %v5345_v59 = vadd.f32 %v1393_v33, %v1221_v12  ;;  %1783 = vmatmul.f32.gmra.mxu2 %v6429_v14  ;;  %v5363_v19 = vsub.f32 %v277_v49, %v5356_v62  ;;  %v275_v49 = vld [vmem:[#allocation5 + $0x1d8] sm:$0xff] }
 0x1bf   : > { %2606 = vmatpush.msra.mxu1 %v5055_v46  ;;  %2499 = vmatpush.msra.mxu0 %v6430_v20 }
 0x1c0   : > { %v982_v40 = vpop.f32.mrf.mxu0  ;;  %2864 = vmatpush.msra.mxu3 %v2863_v13  ;;  %2701 = vmatpush.msra.mxu2 %v5356_v62 }
 0x1c1   : > { %v1075_v33 = vpop.f32.mrf.mxu1  ;;  %2608 = vmatpush.msra.mxu1 %v5075_v27  ;;  %v1228_v16 = vpop.f32.mrf.mxu2  ;;  %2503 = vmatpush.msra.mxu0 %v6431_v54  ;;  %v6230_v27 = vand.u32 4294901760, %v5363_v19  ;;  %v983_v13 = vadd.f32 %v982_v40, %v5068_v47  ;;  %v6439_v40 = vld [vmem:[#allocation131_spill] sm:$0xff] }
 0x1c2   : > { %v1076_v56 = vadd.f32 %v1075_v33, %v979_v58  ;;  %v1397_v12 = vpop.f32.mrf.mxu3  ;;  %v6435_v58 = vld [vmem:[#allocation127_spill] sm:$0xff] }
 0x1c3   : > { %2610 = vmatpush.msra.mxu1 %v5094_v50  ;;  %1528 = vmatmul.f32.gmra.mxu0 %v6432_v55  ;;  %v2868_v50 = vsub.f32 %v5363_v19, %v6230_v27 }
 0x1c4   : > { %v1229_v46 = vadd.f32 %v1228_v16, %v1076_v56  ;;  %1650 = vmatmul.f32.gmra.mxu1 %v6433_v6  ;;  %2507 = vmatpush.msra.mxu0 %v6434_v22  ;;  %v5383_v56 = vand.u32 4294901760, %v275_v49 }
 0x1c5   : > { %2612 = vmatpush.msra.mxu1 %v5113_v10  ;;  %1884 = vmatmul.f32.gmra.mxu3 %v6435_v58  ;;  %v6436_v10 = vand.u32 4294901760, %v5192_v21  ;;  %v2869_v33 = vand.u32 4294901760, %v2868_v50  ;;  %v6438_v21 = vld [vmem:[#allocation134_spill] sm:$0xff] }
 0x1c6   : > { %v5372_v52 = vadd.f32 %v1397_v12, %v1229_v46  ;;  %1787 = vmatmul.f32.gmra.mxu2 %v6435_v58  ;;  %v6437_v46 = vand.u32 4294901760, %v5211_v1  ;;  %v5390_v47 = vsub.f32 %v275_v49, %v5383_v56  ;;  %v273_v49 = vld [vmem:[#allocation5 + $0x1c8] sm:$0xff] }
 0x1c7   : > { %2614 = vmatpush.msra.mxu1 %v5132_v3  ;;  %2511 = vmatpush.msra.mxu0 %v6436_v10 }
 0x1c8   : > { %v986_v44 = vpop.f32.mrf.mxu0  ;;  %2870 = vmatpush.msra.mxu3 %v2869_v33  ;;  %2703 = vmatpush.msra.mxu2 %v5383_v56  ;;  %v6228_v22 = vand.u32 4294901760, %v5390_v47  ;;  %v5409_v33 = vand.u32 4294901760, %v273_v49 }
 0x1c9   : > { %v1079_v20 = vpop.f32.mrf.mxu1  ;;  %2616 = vmatpush.msra.mxu1 %v5151_v5  ;;  %v1236_v12 = vpop.f32.mrf.mxu2  ;;  %2515 = vmatpush.msra.mxu0 %v6437_v46  ;;  %v6440_v5 = vand.u32 4294901760, %v5230_v29  ;;  %v6442_v46 = vand.u32 4294901760, %v5268_v41 }
 0x1ca   : > { %v1080_v16 = vadd.f32 %v1079_v20, %v983_v13  ;;  %v1401_v54 = vpop.f32.mrf.mxu3  ;;  %v2874_v50 = vsub.f32 %v5390_v47, %v6228_v22  ;;  %v987_v13 = vadd.f32 %v986_v44, %v5086_v15  ;;  %2705 = vmatpush.msra.mxu2 %v5409_v33  ;;  %v5416_v15 = vsub.f32 %v273_v49, %v5409_v33  ;;  %v6444_v44 = vld [vmem:[#allocation17_spill] sm:$0xff] }
 0x1cb   : > { %1533 = vmatmul.f32.gmra.mxu0 %v6438_v21  ;;  %2618 = vmatpush.msra.mxu1 %v5170_v17  ;;  %v6441_v17 = vand.u32 4294901760, %v5249_v38  ;;  %v6443_v38 = vld [vmem:[#allocation136_spill] sm:$0xff] }
 0x1cc   : > { %v1237_v3 = vadd.f32 %v1236_v12, %v1080_v16  ;;  %1656 = vmatmul.f32.gmra.mxu1 %v6439_v40  ;;  %2519 = vmatpush.msra.mxu0 %v6440_v5  ;;  %v2875_v20 = vand.u32 4294901760, %v2874_v50  ;;  %v6446_v5 = vld [vmem:[#allocation13_spill] sm:$0xff]  ;;  %v6447_v50 = vld [vmem:[#allocation12_spill] sm:$0xff] }
 0x1cd   : > { %1888 = vmatmul.f32.gmra.mxu3 %v5012_v45  ;;  %2620 = vmatpush.msra.mxu1 %v5189_v36 }
 0x1ce   : > { %v5398_v1 = vadd.f32 %v1401_v54, %v1237_v3  ;;  %1791 = vmatmul.f32.gmra.mxu2 %v5012_v45  ;;  %2523 = vmatpush.msra.mxu0 %v6441_v17  ;;  %v6227_v3 = vand.u32 4294901760, %v5416_v15  ;;  %v271_v17 = vld [vmem:[#allocation5 + $0x1b8] sm:$0xff] }
 0x1cf   : > { %2622 = vmatpush.msra.mxu1 %v5208_v48  ;;  %2876 = vmatpush.msra.mxu3 %v2875_v20  ;;  %v6445_v48 = vand.u32 4294901760, %v5287_v57 }
 0x1d0   : > { %v1459_v10 = vpop.f32.mrf.mxu0  ;;  %2527 = vmatpush.msra.mxu0 %v6442_v46 }
 0x1d1   : > { %v1083_v29 = vpop.f32.mrf.mxu1  ;;  %v1244_v12 = vpop.f32.mrf.mxu2  ;;  %2624 = vmatpush.msra.mxu1 %v5227_v2  ;;  %v1460_v49 = vadd.f32 %v1459_v10, %v5105_v60  ;;  %v6448_v2 = vand.u32 4294901760, %v5306_v37  ;;  %v6449_v37 = vld [vmem:[#allocation21_spill] sm:$0xff]  ;;  %v6450_v10 = vld [vmem:[#allocation11_spill] sm:$0xff] }
 0x1d2   : > { %v1084_v16 = vadd.f32 %v1083_v29, %v987_v13  ;;  %v1405_v54 = vpop.f32.mrf.mxu3  ;;  %2531 = vmatpush.msra.mxu0 %v6445_v48  ;;  %v2880_v13 = vsub.f32 %v5416_v15, %v6227_v3  ;;  %v6452_v48 = vld [vmem:[#allocation15_spill] sm:$0xff] }
 0x1d3   : > { %1929 = vmatmul.f32.vlgmr.msrb.gmra.mxu0 %v6444_v44  ;;  %2626 = vmatpush.msra.mxu1 %v5246_v24  ;;  %v6451_v44 = vld [vmem:[#allocation18_spill] sm:$0xff] }
 0x1d4   : > { %v1245_v36 = vadd.f32 %v1244_v12, %v1084_v16  ;;  %1662 = vmatmul.f32.gmra.mxu1 %v6443_v38  ;;  %2535 = vmatpush.msra.mxu0 %v6448_v2  ;;  %v2881_v20 = vand.u32 4294901760, %v2880_v13  ;;  %v5435_v16 = vand.u32 4294901760, %v271_v17 }
 0x1d5   : > { %2378 = vmatmul.f32.vlgmr.msrb.gmra.mxu3 %v6446_v5  ;;  %2628 = vmatpush.msra.mxu1 %v5265_v11 }
 0x1d6   : > { %v5424_v41 = vadd.f32 %v1405_v54, %v1245_v36  ;;  %2264 = vmatmul.f32.vlgmr.msrb.gmra.mxu2 %v6447_v50  ;;  %3022 = vmatpush.msrb.mxu0 %v5334_v7  ;;  %v5441_v60 = vsub.f32 %v271_v17, %v5435_v16 }
 0x1d7   : > { %2882 = vmatpush.msra.mxu3 %v2881_v20  ;;  %2707 = vmatpush.msra.mxu2 %v5435_v16 }
 0x1d8   : > { %v1464_v57 = vpop.f32.mrf.mxu0  ;;  %v6226_v36 = vand.u32 4294901760, %v5441_v60  ;;  %2630 = vmatpush.msra.mxu1 %v5284_v35  ;;  %3025 = vmatpush.msrb.mxu0 %v5363_v19  ;;  %v269_v35 = vld [vmem:[#allocation5 + $0x1a8] sm:$0xff] }
 0x1d9   : > { %v1573_v29 = vpop.f32.mrf.mxu1  ;;  %v1732_v54 = vpop.f32.mrf.mxu2  ;;  %v1465_v50 = vadd.f32 %v1464_v57, %v5124_v53  ;;  %v5462_v2 = vand.u32 4294901760, %v269_v35 }
 0x1da   : > { %v1574_v12 = vadd.f32 %v1573_v29, %v1460_v49  ;;  %v1829_v46 = vpop.f32.mrf.mxu3  ;;  %v2886_v5 = vsub.f32 %v5441_v60, %v6226_v36  ;;  %2632 = vmatpush.msra.mxu1 %v5303_v63  ;;  %3028 = vmatpush.msrb.mxu0 %v5390_v47 }
 0x1db   : > { %1937 = vmatmul.f32.gmra.mxu0 %v6449_v37  ;;  %2709 = vmatpush.msra.mxu2 %v5462_v2  ;;  %v5468_v53 = vsub.f32 %v269_v35, %v5462_v2  ;;  %v6455_v37 = vld [vmem:[#allocation22_spill] sm:$0xff] }
 0x1dc   : > { %v1733_v24 = vadd.f32 %v1732_v54, %v1574_v12  ;;  %2150 = vmatmul.f32.vlgmr.msrb.gmra.mxu1 %v6450_v10  ;;  %v2887_v17 = vand.u32 4294901760, %v2886_v5  ;;  %3031 = vmatpush.msrb.mxu0 %v5416_v15  ;;  %v6453_v12 = vld [vmem:[#allocation24_spill] sm:$0xff]  ;;  %v6454_v54 = vld [vmem:[#allocation14_spill] sm:$0xff] }
 0x1dd   : > { %2384 = vmatmul.f32.gmra.mxu3 %v6451_v44  ;;  %3150 = vmatpush.msrb.mxu1 %v5328_v43  ;;  %v267_v5 = vld [vmem:[#allocation5 + $0x198] sm:$0xff] }
 0x1de   : > { %v1830_v11 = vadd.f32 %v1829_v46, %v1733_v24  ;;  %2269 = vmatmul.f32.gmra.mxu2 %v6452_v48  ;;  %2888 = vmatpush.msra.mxu3 %v2887_v17  ;;  %v6225_v46 = vand.u32 4294901760, %v5468_v53  ;;  %v5484_v17 = vand.u32 4294901760, %v267_v5 }
 0x1df   : > { %3152 = vmatpush.msrb.mxu1 %v5356_v62  ;;  %3034 = vmatpush.msrb.mxu0 %v5441_v60 }
 0x1e0   : > { %3504 = vst [vmem:[%s5457_s15] sm:$0xff] %v1830_v11  ;;  %v1469_v13 = vpop.f32.mrf.mxu0  ;;  %v6456_v11 = vld [vmem:[#allocation19_spill] sm:$0xff]  ;;  %v2892_v44 = vsub.f32 %v5468_v53, %v6225_v46  ;;  %2711 = vmatpush.msra.mxu2 %v5484_v17  ;;  %v6461_v46 = vld [vmem:[#allocation33_spill] sm:$0xff] }
 0x1e1   : > { %v1579_v49 = vpop.f32.mrf.mxu1  ;;  %v1736_v20 = vpop.f32.mrf.mxu2  ;;  %3154 = vmatpush.msrb.mxu1 %v5383_v56  ;;  %v1470_v48 = vadd.f32 %v1469_v13, %v5143_v18  ;;  %3037 = vmatpush.msrb.mxu0 %v5468_v53  ;;  %v5489_v18 = vsub.f32 %v267_v5, %v5484_v17 }
 0x1e2   : > { %v1580_v29 = vadd.f32 %v1579_v49, %v1465_v50  ;;  %v1833_v63 = vpop.f32.mrf.mxu3  ;;  %v2893_v49 = vand.u32 4294901760, %v2892_v44  ;;  %v6460_v44 = vld [vmem:[#allocation23_spill] sm:$0xff] }
 0x1e3   : > { %1945 = vmatmul.f32.gmra.mxu0 %v6453_v12  ;;  %3156 = vmatpush.msrb.mxu1 %v5409_v33  ;;  %v6458_v12 = vld [vmem:[#allocation16_spill] sm:$0xff] }
 0x1e4   : > { %v1737_v57 = vadd.f32 %v1736_v20, %v1580_v29  ;;  %2154 = vmatmul.f32.gmra.mxu1 %v6454_v54  ;;  %2894 = vmatpush.msra.mxu3 %v2893_v49 }
 0x1e5   : > { %2390 = vmatmul.f32.gmra.mxu3 %v6455_v37  ;;  %3158 = vmatpush.msrb.mxu1 %v5435_v16 }
 0x1e6   : > { %v1834_v24 = vadd.f32 %v1833_v63, %v1737_v57  ;;  %2274 = vmatmul.f32.gmra.mxu2 %v6456_v11  ;;  %v6457_v57 = vld [vmem:[#allocation29_spill] sm:$0xff]  ;;  %3040 = vmatpush.msrb.mxu0 %v5489_v18 }
 0x1e7   : > { %3160 = vmatpush.msrb.mxu1 %v5462_v2  ;;  %v6459_v11 = vld [vmem:[#allocation25_spill] sm:$0xff] }
 0x1e8   : > { %3506 = vst [vmem:[%s5457_s15 + $0x10] sm:$0xff] %v1834_v24  ;;  %v1474_v50 = vpop.f32.mrf.mxu0  ;;  %v6224_v24 = vand.u32 4294901760, %v5489_v18 }
 0x1e9   : > { %v1585_v35 = vpop.f32.mrf.mxu1  ;;  %v1740_v20 = vpop.f32.mrf.mxu2  ;;  %3162 = vmatpush.msrb.mxu1 %v5484_v17  ;;  %v1475_v5 = vadd.f32 %v1474_v50, %v5162_v9  ;;  %v6462_v9 = vld [vmem:[#allocation20_spill] sm:$0xff] }
 0x1ea   : > { %v1586_v29 = vadd.f32 %v1585_v35, %v1470_v48  ;;  %v1837_v63 = vpop.f32.mrf.mxu3  ;;  %v2898_v48 = vsub.f32 %v5489_v18, %v6224_v24  ;;  %v265_v35 = vld [vmem:[#allocation5 + $0x188] sm:$0xff] }
 0x1eb   : > { %1953 = vmatmul.f32.gmra.mxu0 %v6457_v57  ;;  %v5504_v57 = vand.u32 4294901760, %v265_v35 }
 0x1ec   : > { %v1741_v13 = vadd.f32 %v1740_v20, %v1586_v29  ;;  %2158 = vmatmul.f32.gmra.mxu1 %v6458_v12  ;;  %v2899_v20 = vand.u32 4294901760, %v2898_v48  ;;  %v6463_v48 = vld [vmem:[#allocation30_spill] sm:$0xff] }
 0x1ed   : > { %2396 = vmatmul.f32.gmra.mxu3 %v6459_v11  ;;  %2713 = vmatpush.msra.mxu2 %v5504_v57 }
 0x1ee   : > { %v1838_v37 = vadd.f32 %v1837_v63, %v1741_v13  ;;  %2279 = vmatmul.f32.gmra.mxu2 %v6460_v44  ;;  %2900 = vmatpush.msra.mxu3 %v2899_v20  ;;  %v5508_v44 = vsub.f32 %v265_v35, %v5504_v57 }
 0x1ef   : > { %3164 = vmatpush.msrb.mxu1 %v5504_v57 }
 0x1f0   : > { %3508 = vst [vmem:[%s5457_s15 + $0x20] sm:$0xff] %v1838_v37  ;;  %v1479_v49 = vpop.f32.mrf.mxu0  ;;  %v6229_v50 = vand.u32 4294901760, %v5508_v44  ;;  %3043 = vmatpush.msrb.mxu0 %v5508_v44 }
 0x1f1   : > { %v1591_v29 = vpop.f32.mrf.mxu1  ;;  %v1744_v13 = vpop.f32.mrf.mxu2 }
 0x1f2   : > { %v1592_v63 = vadd.f32 %v1591_v29, %v1475_v5  ;;  %v1841_v11 = vpop.f32.mrf.mxu3  ;;  %v6464_v5 = vld [vmem:[#allocation27_spill] sm:$0xff]  ;;  %v2904_v35 = vsub.f32 %v5508_v44, %v6229_v50  ;;  %v1480_v29 = vadd.f32 %v1479_v49, %v5181_v26  ;;  %v6466_v26 = vld [vmem:[#allocation26_spill] sm:$0xff] }
 0x1f3   : > { %1961 = vmatmul.f32.gmra.mxu0 %v6461_v46  ;;  %v263_v46 = vld [vmem:[#allocation5 + $0x178] sm:$0xff] }
 0x1f4   : > { %v1745_v24 = vadd.f32 %v1744_v13, %v1592_v63  ;;  %2162 = vmatmul.f32.gmra.mxu1 %v6462_v9  ;;  %v2905_v13 = vand.u32 4294901760, %v2904_v35  ;;  %v5522_v36 = vand.u32 4294901760, %v263_v46  ;;  %v6467_v35 = vld [vmem:[#allocation32_spill] sm:$0xff] }
 0x1f5   : > { %2402 = vmatmul.f32.gmra.mxu3 %v6463_v48 }
 0x1f6   : > { %v1842_v37 = vadd.f32 %v1841_v11, %v1745_v24  ;;  %2284 = vmatmul.f32.gmra.mxu2 %v6464_v5  ;;  %2906 = vmatpush.msra.mxu3 %v2905_v13  ;;  %v5526_v11 = vsub.f32 %v263_v46, %v5522_v36  ;;  %v6465_v5 = vld [vmem:[#allocation36_spill] sm:$0xff] }
 0x1f7   : > { %2715 = vmatpush.msra.mxu2 %v5522_v36  ;;  %3166 = vmatpush.msrb.mxu1 %v5522_v36 }
 0x1f8   : > { %3510 = vst [vmem:[%s5457_s15 + $0x30] sm:$0xff] %v1842_v37  ;;  %v1484_v20 = vpop.f32.mrf.mxu0  ;;  %v6232_v49 = vand.u32 4294901760, %v5526_v11  ;;  %3046 = vmatpush.msrb.mxu0 %v5526_v11 }
 0x1f9   : > { %v1597_v63 = vpop.f32.mrf.mxu1  ;;  %v1748_v22 = vpop.f32.mrf.mxu2 }
 0x1fa   : > { %v1598_v3 = vadd.f32 %v1597_v63, %v1480_v29  ;;  %v1845_v24 = vpop.f32.mrf.mxu3  ;;  %v6468_v29 = vld [vmem:[#allocation31_spill] sm:$0xff]  ;;  %v2910_v46 = vsub.f32 %v5526_v11, %v6232_v49 }
 0x1fb   : > { %1969 = vmatmul.f32.gmra.mxu0 %v6465_v5 }
 0x1fc   : > { %v1749_v48 = vadd.f32 %v1748_v22, %v1598_v3  ;;  %2166 = vmatmul.f32.gmra.mxu1 %v6466_v26  ;;  %v1485_v22 = vadd.f32 %v1484_v20, %v5200_v51  ;;  %v261_v3 = vld [vmem:[#allocation5 + $0x168] sm:$0xff]  ;;  %v2911_v5 = vand.u32 4294901760, %v2910_v46  ;;  %v6471_v46 = vld [vmem:[#allocation37_spill] sm:$0xff] }
 0x1fd   : > { %2408 = vmatmul.f32.gmra.mxu3 %v6467_v35  ;;  %v5540_v50 = vand.u32 4294901760, %v261_v3  ;;  %v6470_v51 = vld [vmem:[#allocation28_spill] sm:$0xff] }
 0x1fe   : > { %v1846_v37 = vadd.f32 %v1845_v24, %v1749_v48  ;;  %2289 = vmatmul.f32.gmra.mxu2 %v6468_v29  ;;  %2912 = vmatpush.msra.mxu3 %v2911_v5  ;;  %v6469_v29 = vld [vmem:[#allocation41_spill] sm:$0xff] }
 0x1ff   : > { %2717 = vmatpush.msra.mxu2 %v5540_v50  ;;  %v5544_v48 = vsub.f32 %v261_v3, %v5540_v50  ;;  %3168 = vmatpush.msrb.mxu1 %v5540_v50 }
 0x200   : > { %3512 = vst [vmem:[%s5457_s15 + $0x40] sm:$0xff] %v1846_v37  ;;  %v1489_v63 = vpop.f32.mrf.mxu0 }
 0x201   : > { %v1603_v13 = vpop.f32.mrf.mxu1  ;;  %v1752_v34 = vpop.f32.mrf.mxu2  ;;  %v6233_v20 = vand.u32 4294901760, %v5544_v48  ;;  %3049 = vmatpush.msrb.mxu0 %v5544_v48 }
 0x202   : > { %v1604_v27 = vadd.f32 %v1603_v13, %v1485_v22  ;;  %v1849_v24 = vpop.f32.mrf.mxu3  ;;  %v6472_v22 = vld [vmem:[#allocation35_spill] sm:$0xff] }
 0x203   : > { %1977 = vmatmul.f32.gmra.mxu0 %v6469_v29  ;;  %v2916_v3 = vsub.f32 %v5544_v48, %v6233_v20 }
 0x204   : > { %v1753_v35 = vadd.f32 %v1752_v34, %v1604_v27  ;;  %2170 = vmatmul.f32.gmra.mxu1 %v6470_v51  ;;  %v1490_v34 = vadd.f32 %v1489_v63, %v5219_v8  ;;  %v259_v27 = vld [vmem:[#allocation5 + $0x158] sm:$0xff] }
 0x205   : > { %2414 = vmatmul.f32.gmra.mxu3 %v6471_v46  ;;  %v2917_v29 = vand.u32 4294901760, %v2916_v3  ;;  %v5558_v49 = vand.u32 4294901760, %v259_v27  ;;  %v6474_v8 = vld [vmem:[#allocation34_spill] sm:$0xff] }
 0x206   : > { %v1850_v37 = vadd.f32 %v1849_v24, %v1753_v35  ;;  %2294 = vmatmul.f32.gmra.mxu2 %v6472_v22  ;;  %v6473_v22 = vld [vmem:[#allocation45_spill] sm:$0xff]  ;;  %v6475_v3 = vld [vmem:[#allocation42_spill] sm:$0xff] }
 0x207   : > { %2918 = vmatpush.msra.mxu3 %v2917_v29  ;;  %2719 = vmatpush.msra.mxu2 %v5558_v49  ;;  %v5562_v35 = vsub.f32 %v259_v27, %v5558_v49 }
 0x208   : > { %3514 = vst [vmem:[%s5457_s15 + $0x50] sm:$0xff] %v1850_v37  ;;  %v1494_v13 = vpop.f32.mrf.mxu0  ;;  %3170 = vmatpush.msrb.mxu1 %v5558_v49 }
 0x209   : > { %v1609_v5 = vpop.f32.mrf.mxu1  ;;  %v1756_v40 = vpop.f32.mrf.mxu2  ;;  %v6234_v63 = vand.u32 4294901760, %v5562_v35  ;;  %3052 = vmatpush.msrb.mxu0 %v5562_v35 }
 0x20a   : > { %v1610_v38 = vadd.f32 %v1609_v5, %v1490_v34  ;;  %v1853_v24 = vpop.f32.mrf.mxu3  ;;  %v6476_v34 = vld [vmem:[#allocation39_spill] sm:$0xff] }
 0x20b   : > { %1985 = vmatmul.f32.gmra.mxu0 %v6473_v22  ;;  %v2922_v27 = vsub.f32 %v5562_v35, %v6234_v63 }
 0x20c   : > { %v1757_v46 = vadd.f32 %v1756_v40, %v1610_v38  ;;  %2174 = vmatmul.f32.gmra.mxu1 %v6474_v8  ;;  %v1495_v40 = vadd.f32 %v1494_v13, %v5238_v28  ;;  %v257_v38 = vld [vmem:[#allocation5 + $0x148] sm:$0xff]  ;;  %v6478_v28 = vld [vmem:[#allocation38_spill] sm:$0xff] }
 0x20d   : > { %2420 = vmatmul.f32.gmra.mxu3 %v6475_v3  ;;  %v2923_v22 = vand.u32 4294901760, %v2922_v27  ;;  %v5576_v20 = vand.u32 4294901760, %v257_v38  ;;  %v6479_v27 = vld [vmem:[#allocation44_spill] sm:$0xff] }
 0x20e   : > { %v1854_v37 = vadd.f32 %v1853_v24, %v1757_v46  ;;  %2299 = vmatmul.f32.gmra.mxu2 %v6476_v34  ;;  %v6477_v34 = vld [vmem:[#allocation48_spill] sm:$0xff] }
 0x20f   : > { %2924 = vmatpush.msra.mxu3 %v2923_v22  ;;  %2721 = vmatpush.msra.mxu2 %v5576_v20  ;;  %v5580_v46 = vsub.f32 %v257_v38, %v5576_v20 }
 0x210   : > { %3516 = vst [vmem:[%s5457_s15 + $0x60] sm:$0xff] %v1854_v37  ;;  %v1499_v5 = vpop.f32.mrf.mxu0  ;;  %3172 = vmatpush.msrb.mxu1 %v5576_v20 }
 0x211   : > { %v1615_v29 = vpop.f32.mrf.mxu1  ;;  %v1760_v6 = vpop.f32.mrf.mxu2  ;;  %v6235_v13 = vand.u32 4294901760, %v5580_v46  ;;  %3055 = vmatpush.msrb.mxu0 %v5580_v46 }
 0x212   : > { %v1616_v21 = vadd.f32 %v1615_v29, %v1495_v40  ;;  %v1857_v24 = vpop.f32.mrf.mxu3  ;;  %v6480_v40 = vld [vmem:[#allocation43_spill] sm:$0xff] }
 0x213   : > { %1993 = vmatmul.f32.gmra.mxu0 %v6477_v34  ;;  %v2928_v38 = vsub.f32 %v5580_v46, %v6235_v13 }
 0x214   : > { %v1761_v3 = vadd.f32 %v1760_v6, %v1616_v21  ;;  %2178 = vmatmul.f32.gmra.mxu1 %v6478_v28  ;;  %v1500_v6 = vadd.f32 %v1499_v5, %v5257_v4  ;;  %v255_v21 = vld [vmem:[#allocation5 + $0x138] sm:$0xff]  ;;  %v6482_v4 = vld [vmem:[#allocation40_spill] sm:$0xff] }
 0x215   : > { %2426 = vmatmul.f32.gmra.mxu3 %v6479_v27  ;;  %v2929_v34 = vand.u32 4294901760, %v2928_v38  ;;  %v5594_v63 = vand.u32 4294901760, %v255_v21  ;;  %v6483_v38 = vld [vmem:[#allocation49_spill] sm:$0xff] }
 0x216   : > { %v1858_v37 = vadd.f32 %v1857_v24, %v1761_v3  ;;  %2304 = vmatmul.f32.gmra.mxu2 %v6480_v40  ;;  %v6481_v40 = vld [vmem:[#allocation53_spill] sm:$0xff] }
 0x217   : > { %2930 = vmatpush.msra.mxu3 %v2929_v34  ;;  %2723 = vmatpush.msra.mxu2 %v5594_v63  ;;  %v5598_v3 = vsub.f32 %v255_v21, %v5594_v63 }
 0x218   : > { %3518 = vst [vmem:[%s5457_s15 + $0x70] sm:$0xff] %v1858_v37  ;;  %v1504_v29 = vpop.f32.mrf.mxu0  ;;  %3174 = vmatpush.msrb.mxu1 %v5594_v63 }
 0x219   : > { %v1621_v22 = vpop.f32.mrf.mxu1  ;;  %v1764_v61 = vpop.f32.mrf.mxu2  ;;  %v6238_v5 = vand.u32 4294901760, %v5598_v3  ;;  %3058 = vmatpush.msrb.mxu0 %v5598_v3 }
 0x21a   : > { %v1622_v55 = vadd.f32 %v1621_v22, %v1500_v6  ;;  %v1861_v24 = vpop.f32.mrf.mxu3  ;;  %v6484_v6 = vld [vmem:[#allocation47_spill] sm:$0xff] }
 0x21b   : > { %2001 = vmatmul.f32.gmra.mxu0 %v6481_v40  ;;  %v2934_v21 = vsub.f32 %v5598_v3, %v6238_v5 }
 0x21c   : > { %v1765_v27 = vadd.f32 %v1764_v61, %v1622_v55  ;;  %2182 = vmatmul.f32.gmra.mxu1 %v6482_v4  ;;  %v1505_v61 = vadd.f32 %v1504_v29, %v5276_v25  ;;  %v253_v55 = vld [vmem:[#allocation5 + $0x128] sm:$0xff]  ;;  %v6486_v25 = vld [vmem:[#allocation46_spill] sm:$0xff] }
 0x21d   : > { %2432 = vmatmul.f32.gmra.mxu3 %v6483_v38  ;;  %v2935_v40 = vand.u32 4294901760, %v2934_v21  ;;  %v5612_v13 = vand.u32 4294901760, %v253_v55  ;;  %v6487_v21 = vld [vmem:[#allocation54_spill] sm:$0xff] }
 0x21e   : > { %v1862_v37 = vadd.f32 %v1861_v24, %v1765_v27  ;;  %2309 = vmatmul.f32.gmra.mxu2 %v6484_v6  ;;  %v6485_v6 = vld [vmem:[#allocation57_spill] sm:$0xff] }
 0x21f   : > { %2936 = vmatpush.msra.mxu3 %v2935_v40  ;;  %2725 = vmatpush.msra.mxu2 %v5612_v13  ;;  %v5616_v27 = vsub.f32 %v253_v55, %v5612_v13 }
 0x220   : > { %3520 = vst [vmem:[%s5457_s15 + $0x80] sm:$0xff] %v1862_v37  ;;  %v1509_v22 = vpop.f32.mrf.mxu0  ;;  %3176 = vmatpush.msrb.mxu1 %v5612_v13 }
 0x221   : > { %v1627_v34 = vpop.f32.mrf.mxu1  ;;  %v1768_v45 = vpop.f32.mrf.mxu2  ;;  %v6241_v29 = vand.u32 4294901760, %v5616_v27  ;;  %3061 = vmatpush.msrb.mxu0 %v5616_v27 }
 0x222   : > { %v1628_v32 = vadd.f32 %v1627_v34, %v1505_v61  ;;  %v1865_v24 = vpop.f32.mrf.mxu3  ;;  %v6488_v61 = vld [vmem:[#allocation51_spill] sm:$0xff] }
 0x223   : > { %2009 = vmatmul.f32.gmra.mxu0 %v6485_v6  ;;  %v2940_v55 = vsub.f32 %v5616_v27, %v6241_v29 }
 0x224   : > { %v1769_v38 = vadd.f32 %v1768_v45, %v1628_v32  ;;  %2186 = vmatmul.f32.gmra.mxu1 %v6486_v25  ;;  %v1510_v45 = vadd.f32 %v1509_v22, %v5295_v30  ;;  %v251_v32 = vld [vmem:[#allocation5 + $0x118] sm:$0xff] }
 0x225   : > { %2438 = vmatmul.f32.gmra.mxu3 %v6487_v21  ;;  %v2941_v6 = vand.u32 4294901760, %v2940_v55  ;;  %v5630_v5 = vand.u32 4294901760, %v251_v32  ;;  %v6490_v30 = vld [vmem:[#allocation50_spill] sm:$0xff]  ;;  %v6491_v55 = vld [vmem:[#allocation56_spill] sm:$0xff] }
 0x226   : > { %v1866_v37 = vadd.f32 %v1865_v24, %v1769_v38  ;;  %2314 = vmatmul.f32.gmra.mxu2 %v6488_v61  ;;  %v6489_v61 = vld [vmem:[#allocation60_spill] sm:$0xff] }
 0x227   : > { %2942 = vmatpush.msra.mxu3 %v2941_v6  ;;  %2727 = vmatpush.msra.mxu2 %v5630_v5  ;;  %v5634_v38 = vsub.f32 %v251_v32, %v5630_v5 }
 0x228   : > { %3522 = vst [vmem:[%s5457_s15 + $0x90] sm:$0xff] %v1866_v37  ;;  %v1514_v34 = vpop.f32.mrf.mxu0  ;;  %3178 = vmatpush.msrb.mxu1 %v5630_v5 }
 0x229   : > { %v1633_v40 = vpop.f32.mrf.mxu1  ;;  %v1772_v14 = vpop.f32.mrf.mxu2  ;;  %v6242_v22 = vand.u32 4294901760, %v5634_v38  ;;  %3064 = vmatpush.msrb.mxu0 %v5634_v38  ;;  %v1515_v32 = vadd.f32 %v1514_v34, %v5318_v31 }
 0x22a   : > { %v1634_v58 = vadd.f32 %v1633_v40, %v1510_v45  ;;  %v1869_v24 = vpop.f32.mrf.mxu3  ;;  %v249_v45 = vld [vmem:[#allocation5 + $0x108] sm:$0xff]  ;;  %v6492_v40 = vld [vmem:[#allocation55_spill] sm:$0xff] }
 0x22b   : > { %2017 = vmatmul.f32.gmra.mxu0 %v6489_v61 }
 0x22c   : > { %v1773_v21 = vadd.f32 %v1772_v14, %v1634_v58  ;;  %2190 = vmatmul.f32.gmra.mxu1 %v6490_v30  ;;  %v2946_v14 = vsub.f32 %v5634_v38, %v6242_v22  ;;  %v5646_v58 = vand.u32 4294901760, %v249_v45  ;;  %v6493_v22 = vand.u32 4294901760, %v5334_v7  ;;  %v6497_v7 = vld [vmem:[#allocation61_spill] sm:$0xff] }
 0x22d   : > { %2444 = vmatmul.f32.gmra.mxu3 %v6491_v55 }
 0x22e   : > { %v1870_v37 = vadd.f32 %v1869_v24, %v1773_v21  ;;  %2319 = vmatmul.f32.gmra.mxu2 %v6492_v40  ;;  %v2947_v29 = vand.u32 4294901760, %v2946_v14  ;;  %v5652_v24 = vsub.f32 %v249_v45, %v5646_v58  ;;  %3180 = vmatpush.msrb.mxu1 %v5646_v58  ;;  %v6495_v14 = vld [vmem:[#allocation52_spill] sm:$0xff] }
 0x22f   : > { %2729 = vmatpush.msra.mxu2 %v5646_v58 }
 0x230   : > { %3524 = vst [vmem:[%s5457_s15 + $0xa0] sm:$0xff] %v1870_v37  ;;  %v1519_v6 = vpop.f32.mrf.mxu0  ;;  %2948 = vmatpush.msra.mxu3 %v2947_v29  ;;  %v6244_v31 = vand.u32 4294901760, %v5652_v24  ;;  %3067 = vmatpush.msrb.mxu0 %v5652_v24  ;;  %v6494_v37 = vld [vmem:[#allocation64_spill] sm:$0xff]  ;;  %v6498_v29 = vld [vmem:[#allocation59_spill] sm:$0xff] }
 0x231   : > { %v1639_v61 = vpop.f32.mrf.mxu1  ;;  %v1776_v55 = vpop.f32.mrf.mxu2  ;;  %3281 = vmatpush.msrb.mxu2 %v6493_v22  ;;  %v1520_v39 = vadd.f32 %v1519_v6, %v5345_v59  ;;  %v6502_v59 = vld [vmem:[#allocation58_spill] sm:$0xff] }
 0x232   : > { %v1640_v21 = vadd.f32 %v1639_v61, %v1515_v32  ;;  %v1873_v40 = vpop.f32.mrf.mxu3  ;;  %v2952_v45 = vsub.f32 %v5652_v24, %v6244_v31  ;;  %v6496_v32 = vand.u32 4294901760, %v5363_v19 }
 0x233   : > { %2025 = vmatmul.f32.gmra.mxu0 %v6494_v37 }
 0x234   : > { %v1777_v34 = vadd.f32 %v1776_v55, %v1640_v21  ;;  %2194 = vmatmul.f32.gmra.mxu1 %v6495_v14  ;;  %3285 = vmatpush.msrb.mxu2 %v6496_v32  ;;  %v2953_v22 = vand.u32 4294901760, %v2952_v45  ;;  %v6499_v21 = vand.u32 4294901760, %v5390_v47  ;;  %v6501_v45 = vld [vmem:[#allocation68_spill] sm:$0xff]  ;;  %v6503_v47 = vand.u32 4294901760, %v5441_v60  ;;  %v6504_v32 = vld [vmem:[#allocation65_spill] sm:$0xff] }
 0x235   : > { %2450 = vmatmul.f32.gmra.mxu3 %v6497_v7  ;;  %v6507_v7 = vand.u32 4294901760, %v5489_v18 }
 0x236   : > { %v1874_v61 = vadd.f32 %v1873_v40, %v1777_v34  ;;  %2324 = vmatmul.f32.gmra.mxu2 %v6498_v29  ;;  %2954 = vmatpush.msra.mxu3 %v2953_v22  ;;  %v6500_v40 = vand.u32 4294901760, %v5416_v15  ;;  %v6506_v15 = vand.u32 4294901760, %v5468_v53  ;;  %v6508_v29 = vld [vmem:[#allocation72_spill] sm:$0xff]  ;;  %v6510_v53 = vand.u32 4294901760, %v5508_v44  ;;  %v6511_v22 = vld [vmem:[#allocation69_spill] sm:$0xff] }
 0x237   : > { %3289 = vmatpush.msrb.mxu2 %v6499_v21  ;;  %v6512_v21 = vld [vmem:[#allocation67_spill] sm:$0xff] }
 0x238   : > { %3526 = vst [vmem:[%s5457_s15 + $0xb0] sm:$0xff] %v1874_v61  ;;  %v1524_v55 = vpop.f32.mrf.mxu0  ;;  %3408 = vmatpush.msrb.mxu3 %v5328_v43 }
 0x239   : > { %v1645_v37 = vpop.f32.mrf.mxu1  ;;  %v1780_v14 = vpop.f32.mrf.mxu2  ;;  %3293 = vmatpush.msrb.mxu2 %v6500_v40  ;;  %v1525_v43 = vadd.f32 %v1524_v55, %v5372_v52  ;;  %v6509_v52 = vld [vmem:[#allocation62_spill] sm:$0xff]  ;;  %v6514_v40 = vand.u32 4294901760, %v5544_v48 }
 0x23a   : > { %v1646_v31 = vadd.f32 %v1645_v37, %v1520_v39  ;;  %v1877_v19 = vpop.f32.mrf.mxu3  ;;  %3410 = vmatpush.msrb.mxu3 %v5356_v62  ;;  %v6505_v39 = vld [vmem:[#allocation63_spill] sm:$0xff] }
 0x23b   : > { %2033 = vmatmul.f32.gmra.mxu0 %v6501_v45  ;;  %3297 = vmatpush.msrb.mxu2 %v6503_v47  ;;  %v6518_v45 = vld [vmem:[#allocation73_spill] sm:$0xff]  ;;  %v6519_v47 = vld [vmem:[#allocation71_spill] sm:$0xff] }
 0x23c   : > { %v1781_v34 = vadd.f32 %v1780_v14, %v1646_v31  ;;  %2198 = vmatmul.f32.gmra.mxu1 %v6502_v59  ;;  %3412 = vmatpush.msrb.mxu3 %v5383_v56 }
 0x23d   : > { %2456 = vmatmul.f32.gmra.mxu3 %v6504_v32  ;;  %3301 = vmatpush.msrb.mxu2 %v6506_v15  ;;  %v6522_v15 = vld [vmem:[#allocation70_spill] sm:$0xff] }
 0x23e   : > { %v1878_v6 = vadd.f32 %v1877_v19, %v1781_v34  ;;  %2329 = vmatmul.f32.gmra.mxu2 %v6505_v39  ;;  %3414 = vmatpush.msrb.mxu3 %v5409_v33  ;;  %v6515_v34 = vld [vmem:[#allocation75_spill] sm:$0xff] }
 0x23f   : > { %3305 = vmatpush.msrb.mxu2 %v6507_v7 }
 0x240   : > { %3528 = vst [vmem:[%s5457_s15 + $0xc0] sm:$0xff] %v1878_v6  ;;  %v1529_v31 = vpop.f32.mrf.mxu0  ;;  %3416 = vmatpush.msrb.mxu3 %v5435_v16  ;;  %v6513_v16 = vand.u32 4294901760, %v5526_v11  ;;  %v6517_v11 = vand.u32 4294901760, %v5562_v35 }
 0x241   : > { %v1651_v14 = vpop.f32.mrf.mxu1  ;;  %v1784_v60 = vpop.f32.mrf.mxu2  ;;  %3309 = vmatpush.msrb.mxu2 %v6510_v53  ;;  %v1530_v18 = vadd.f32 %v1529_v31, %v5398_v1  ;;  %v6516_v1 = vld [vmem:[#allocation66_spill] sm:$0xff] }
 0x242   : > { %v1652_v62 = vadd.f32 %v1651_v14, %v1525_v43  ;;  %v1881_v61 = vpop.f32.mrf.mxu3  ;;  %3418 = vmatpush.msrb.mxu3 %v5462_v2  ;;  %v6521_v43 = vand.u32 4294901760, %v5598_v3 }
 0x243   : > { %2041 = vmatmul.f32.gmra.mxu0 %v6508_v29  ;;  %3313 = vmatpush.msrb.mxu2 %v6513_v16 }
 0x244   : > { %v1785_v56 = vadd.f32 %v1784_v60, %v1652_v62  ;;  %2202 = vmatmul.f32.gmra.mxu1 %v6509_v52  ;;  %3420 = vmatpush.msrb.mxu3 %v5484_v17 }
 0x245   : > { %2462 = vmatmul.f32.gmra.mxu3 %v6511_v22  ;;  %3317 = vmatpush.msrb.mxu2 %v6514_v40 }
 0x246   : > { %v1882_v33 = vadd.f32 %v1881_v61, %v1785_v56  ;;  %2334 = vmatmul.f32.gmra.mxu2 %v6512_v21  ;;  %3422 = vmatpush.msrb.mxu3 %v5504_v57 }
 0x247   : > { %3321 = vmatpush.msrb.mxu2 %v6517_v11 }
 0x248   : > { %3530 = vst [vmem:[%s5457_s15 + $0xd0] sm:$0xff] %v1882_v33  ;;  %v1534_v55 = vpop.f32.mrf.mxu0  ;;  %3424 = vmatpush.msrb.mxu3 %v5522_v36  ;;  %v6520_v36 = vand.u32 4294901760, %v5580_v46 }
 0x249   : > { %v1657_v37 = vpop.f32.mrf.mxu1  ;;  %v1788_v44 = vpop.f32.mrf.mxu2  ;;  %v1535_v48 = vadd.f32 %v1534_v55, %v5424_v41  ;;  %v6523_v41 = vand.u32 4294901760, %v5616_v27 }
 0x24a   : > { %v1658_v2 = vadd.f32 %v1657_v37, %v1530_v18  ;;  %v1885_v19 = vpop.f32.mrf.mxu3  ;;  %3426 = vmatpush.msrb.mxu3 %v5540_v50  ;;  %3325 = vmatpush.msrb.mxu2 %v6520_v36 }
 0x24b   : > { %2049 = vmatmul.f32.gmra.mxu0 %v6515_v34 }
 0x24c   : > { %v1789_v17 = vadd.f32 %v1788_v44, %v1658_v2  ;;  %2206 = vmatmul.f32.gmra.mxu1 %v6516_v1  ;;  %3428 = vmatpush.msrb.mxu3 %v5558_v49  ;;  %v6529_v2 = vld [vmem:[#allocation83_spill] sm:$0xff] }
 0x24d   : > { %2468 = vmatmul.f32.gmra.mxu3 %v6518_v45  ;;  %3329 = vmatpush.msrb.mxu2 %v6521_v43  ;;  %v6531_v45 = vld [vmem:[#allocation87_spill] sm:$0xff] }
 0x24e   : > { %v1886_v57 = vadd.f32 %v1885_v19, %v1789_v17  ;;  %2339 = vmatmul.f32.gmra.mxu2 %v6519_v47  ;;  %3430 = vmatpush.msrb.mxu3 %v5576_v20  ;;  %v6524_v20 = vld [vmem:[#allocation78_spill] sm:$0xff] }
 0x24f   : > { %3333 = vmatpush.msrb.mxu2 %v6523_v41 }
 0x250   : > { %3532 = vst [vmem:[%s5457_s15 + $0xe0] sm:$0xff] %v1886_v57  ;;  %v1930_v32 = vpop.f32.mrf.mxu0  ;;  %3432 = vmatpush.msrb.mxu3 %v5594_v63  ;;  %v6525_v63 = vand.u32 4294901760, %v5634_v38  ;;  %v6527_v38 = vld [vmem:[#allocation81_spill] sm:$0xff] }
 0x251   : > { %v1663_v6 = vpop.f32.mrf.mxu1  ;;  %v1792_v35 = vpop.f32.mrf.mxu2 }
 0x252   : > { %v1664_v50 = vadd.f32 %v1663_v6, %v1535_v48  ;;  %v1889_v39 = vpop.f32.mrf.mxu3  ;;  %3434 = vmatpush.msrb.mxu3 %v5612_v13  ;;  %3337 = vmatpush.msrb.mxu2 %v6525_v63  ;;  %v6526_v13 = vand.u32 4294901760, %v5652_v24 }
 0x253   : > { %2537 = vmatmul.f32.vlgmr.msra.gmra.mxu0 %v6450_v10 }
 0x254   : > { %v1793_v49 = vadd.f32 %v1792_v35, %v1664_v50  ;;  %2210 = vmatmul.f32.gmra.mxu1 %v6522_v15  ;;  %3436 = vmatpush.msrb.mxu3 %v5630_v5 }
 0x255   : > { %2956 = vmatmul.f32.vlgmr.msra.gmra.mxu3 %v4696_v42  ;;  %3341 = vmatpush.msrb.mxu2 %v6526_v13 }
 0x256   : > { %v1890_v46 = vadd.f32 %v1889_v39, %v1793_v49  ;;  %2735 = vmatmul.f32.vlgmr.msra.gmra.mxu2 %v6524_v20  ;;  %3438 = vmatpush.msrb.mxu3 %v5646_v58  ;;  %v6533_v39 = vld [vmem:[#allocation91_spill] sm:$0xff] }
 0x258   : > { %3534 = vst [vmem:[%s5457_s15 + $0xf0] sm:$0xff] %v1890_v46  ;;  %v1938_v3 = vpop.f32.mrf.mxu0 }
 0x259   : > { %v2151_v31 = vpop.f32.mrf.mxu1  ;;  %v2265_v27 = vpop.f32.mrf.mxu2 }
 0x25a   : > { %v2152_v14 = vadd.f32 %v2151_v31, %v1930_v32  ;;  %v2379_v62 = vpop.f32.mrf.mxu3  ;;  %v6535_v31 = vld [vmem:[#allocation95_spill] sm:$0xff] }
 0x25b   : > { %2541 = vmatmul.f32.gmra.mxu0 %v6454_v54 }
 0x25c   : > { %v2266_v60 = vadd.f32 %v2265_v27, %v2152_v14  ;;  %2634 = vmatmul.f32.vlgmr.msra.gmra.mxu1 %v6450_v10  ;;  %v6528_v10 = vld [vmem:[#allocation85_spill] sm:$0xff] }
 0x25d   : > { %2960 = vmatmul.f32.gmra.mxu3 %v4723_v23 }
 0x25e   : > { %v5739_v5 = vadd.f32 %v2379_v62, %v2266_v60  ;;  %2743 = vmatmul.f32.gmra.mxu2 %v6527_v38 }
 0x260   : > { %v1946_v61 = vpop.f32.mrf.mxu0 }
 0x261   : > { %v2155_v7 = vpop.f32.mrf.mxu1  ;;  %v2270_v56 = vpop.f32.mrf.mxu2 }
 0x262   : > { %v2156_v58 = vadd.f32 %v2155_v7, %v1938_v3  ;;  %v2385_v29 = vpop.f32.mrf.mxu3  ;;  %v6537_v7 = vld [vmem:[#allocation99_spill] sm:$0xff] }
 0x263   : > { %2545 = vmatmul.f32.gmra.mxu0 %v6458_v12 }
 0x264   : > { %v2271_v53 = vadd.f32 %v2270_v56, %v2156_v58  ;;  %2638 = vmatmul.f32.gmra.mxu1 %v6454_v54  ;;  %v6530_v54 = vld [vmem:[#allocation89_spill] sm:$0xff] }
 0x265   : > { %2964 = vmatmul.f32.gmra.mxu3 %v4750_v0 }
 0x266   : > { %v5745_v24 = vadd.f32 %v2385_v29, %v2271_v53  ;;  %2751 = vmatmul.f32.gmra.mxu2 %v6528_v10 }
 0x268   : > { %v1954_v33 = vpop.f32.mrf.mxu0 }
 0x269   : > { %v2159_v22 = vpop.f32.mrf.mxu1  ;;  %v2275_v18 = vpop.f32.mrf.mxu2 }
 0x26a   : > { %v2160_v21 = vadd.f32 %v2159_v22, %v1946_v61  ;;  %v2391_v16 = vpop.f32.mrf.mxu3 }
 0x26b   : > { %2549 = vmatmul.f32.gmra.mxu0 %v6462_v9 }
 0x26c   : > { %v2276_v55 = vadd.f32 %v2275_v18, %v2160_v21  ;;  %2642 = vmatmul.f32.gmra.mxu1 %v6458_v12  ;;  %v6532_v12 = vld [vmem:[#allocation93_spill] sm:$0xff]  ;;  %v6539_v21 = vld [vmem:[#allocation103_spill] sm:$0xff] }
 0x26d   : > { %2968 = vmatmul.f32.gmra.mxu3 %v6529_v2 }
 0x26e   : > { %v5751_v37 = vadd.f32 %v2391_v16, %v2276_v55  ;;  %2759 = vmatmul.f32.gmra.mxu2 %v6530_v54 }
 0x270   : > { %v1962_v44 = vpop.f32.mrf.mxu0 }
 0x271   : > { %v2163_v19 = vpop.f32.mrf.mxu1  ;;  %v2280_v17 = vpop.f32.mrf.mxu2 }
 0x272   : > { %v2164_v40 = vadd.f32 %v2163_v19, %v1954_v33  ;;  %v2397_v34 = vpop.f32.mrf.mxu3 }
 0x273   : > { %2553 = vmatmul.f32.gmra.mxu0 %v6466_v26 }
 0x274   : > { %v2281_v11 = vadd.f32 %v2280_v17, %v2164_v40  ;;  %2646 = vmatmul.f32.gmra.mxu1 %v6462_v9  ;;  %v6534_v9 = vld [vmem:[#allocation97_spill] sm:$0xff]  ;;  %v6541_v17 = vld [vmem:[#allocation107_spill] sm:$0xff] }
 0x275   : > { %2972 = vmatmul.f32.gmra.mxu3 %v6531_v45 }
 0x276   : > { %v5757_v57 = vadd.f32 %v2397_v34, %v2281_v11  ;;  %2767 = vmatmul.f32.gmra.mxu2 %v6532_v12 }
 0x278   : > { %v1970_v47 = vpop.f32.mrf.mxu0 }
 0x279   : > { %v2167_v48 = vpop.f32.mrf.mxu1  ;;  %v2285_v6 = vpop.f32.mrf.mxu2 }
 0x27a   : > { %v2168_v36 = vadd.f32 %v2167_v48, %v1962_v44  ;;  %v2403_v32 = vpop.f32.mrf.mxu3 }
 0x27b   : > { %2557 = vmatmul.f32.gmra.mxu0 %v6470_v51 }
 0x27c   : > { %v2286_v50 = vadd.f32 %v2285_v6, %v2168_v36  ;;  %2650 = vmatmul.f32.gmra.mxu1 %v6466_v26  ;;  %v6536_v26 = vld [vmem:[#allocation101_spill] sm:$0xff] }
 0x27d   : > { %2976 = vmatmul.f32.gmra.mxu3 %v6533_v39 }
 0x27e   : > { %v5763_v35 = vadd.f32 %v2403_v32, %v2286_v50  ;;  %2775 = vmatmul.f32.gmra.mxu2 %v6534_v9  ;;  %v6543_v32 = vld [vmem:[#allocation111_spill] sm:$0xff] }
 0x280   : > { %v1978_v43 = vpop.f32.mrf.mxu0 }
 0x281   : > { %v2171_v49 = vpop.f32.mrf.mxu1  ;;  %v2290_v46 = vpop.f32.mrf.mxu2 }
 0x282   : > { %v2172_v41 = vadd.f32 %v2171_v49, %v1970_v47  ;;  %v2409_v20 = vpop.f32.mrf.mxu3 }
 0x283   : > { %2561 = vmatmul.f32.gmra.mxu0 %v6474_v8 }
 0x284   : > { %v2291_v63 = vadd.f32 %v2290_v46, %v2172_v41  ;;  %2654 = vmatmul.f32.gmra.mxu1 %v6470_v51  ;;  %v6538_v51 = vld [vmem:[#allocation105_spill] sm:$0xff] }
 0x285   : > { %2980 = vmatmul.f32.gmra.mxu3 %v6535_v31 }
 0x286   : > { %v5769_v3 = vadd.f32 %v2409_v20, %v2291_v63  ;;  %2783 = vmatmul.f32.gmra.mxu2 %v6536_v26  ;;  %v6545_v20 = vld [vmem:[#allocation52_spill] sm:$0xff]  ;;  %v6546_v26 = vld [vmem:[#allocation115_spill] sm:$0xff] }
 0x288   : > { %v1986_v14 = vpop.f32.mrf.mxu0 }
 0x289   : > { %v2175_v27 = vpop.f32.mrf.mxu1  ;;  %v2295_v13 = vpop.f32.mrf.mxu2 }
 0x28a   : > { %v2176_v62 = vadd.f32 %v2175_v27, %v1978_v43  ;;  %v2415_v60 = vpop.f32.mrf.mxu3 }
 0x28b   : > { %2565 = vmatmul.f32.gmra.mxu0 %v6478_v28 }
 0x28c   : > { %v2296_v38 = vadd.f32 %v2295_v13, %v2176_v62  ;;  %2658 = vmatmul.f32.gmra.mxu1 %v6474_v8  ;;  %v6540_v8 = vld [vmem:[#allocation109_spill] sm:$0xff] }
 0x28d   : > { %2984 = vmatmul.f32.gmra.mxu3 %v6537_v7 }
 0x28e   : > { %v5775_v61 = vadd.f32 %v2415_v60, %v2296_v38  ;;  %2791 = vmatmul.f32.gmra.mxu2 %v6538_v51 }
 0x290   : > { %v1994_v58 = vpop.f32.mrf.mxu0 }
 0x291   : > { %v2179_v56 = vpop.f32.mrf.mxu1  ;;  %v2300_v53 = vpop.f32.mrf.mxu2 }
 0x292   : > { %v2180_v29 = vadd.f32 %v2179_v56, %v1986_v14  ;;  %v2421_v10 = vpop.f32.mrf.mxu3 }
 0x293   : > { %2569 = vmatmul.f32.gmra.mxu0 %v6482_v4 }
 0x294   : > { %v2301_v33 = vadd.f32 %v2300_v53, %v2180_v29  ;;  %2662 = vmatmul.f32.gmra.mxu1 %v6478_v28  ;;  %v6542_v28 = vld [vmem:[#allocation113_spill] sm:$0xff] }
 0x295   : > { %2988 = vmatmul.f32.gmra.mxu3 %v6539_v21 }
 0x296   : > { %v5781_v22 = vadd.f32 %v2421_v10, %v2301_v33  ;;  %2799 = vmatmul.f32.gmra.mxu2 %v6540_v8 }
 0x298   : > { %v2002_v18 = vpop.f32.mrf.mxu0 }
 0x299   : > { %v2183_v16 = vpop.f32.mrf.mxu1  ;;  %v2305_v54 = vpop.f32.mrf.mxu2 }
 0x29a   : > { %v2184_v55 = vadd.f32 %v2183_v16, %v1994_v58  ;;  %v2427_v44 = vpop.f32.mrf.mxu3  ;;  %v6548_v58 = vld [vmem:[#allocation119_spill] sm:$0xff] }
 0x29b   : > { %2573 = vmatmul.f32.gmra.mxu0 %v6486_v25  ;;  %v6550_v16 = vld [vmem:[#allocation123_spill] sm:$0xff] }
 0x29c   : > { %v2306_v19 = vadd.f32 %v2305_v54, %v2184_v55  ;;  %2666 = vmatmul.f32.gmra.mxu1 %v6482_v4  ;;  %v6544_v4 = vld [vmem:[#allocation117_spill] sm:$0xff]  ;;  %v6551_v55 = vld [vmem:[#allocation130_spill] sm:$0xff] }
 0x29d   : > { %2992 = vmatmul.f32.gmra.mxu3 %v6541_v17 }
 0x29e   : > { %v5787_v40 = vadd.f32 %v2427_v44, %v2306_v19  ;;  %2807 = vmatmul.f32.gmra.mxu2 %v6542_v28 }
 0x2a0   : > { %v2010_v34 = vpop.f32.mrf.mxu0 }
 0x2a1   : > { %v2187_v11 = vpop.f32.mrf.mxu1  ;;  %v2310_v47 = vpop.f32.mrf.mxu2 }
 0x2a2   : > { %v2188_v12 = vadd.f32 %v2187_v11, %v2002_v18  ;;  %v2433_v48 = vpop.f32.mrf.mxu3 }
 0x2a3   : > { %2577 = vmatmul.f32.gmra.mxu0 %v6490_v30 }
 0x2a4   : > { %v2311_v36 = vadd.f32 %v2310_v47, %v2188_v12  ;;  %2670 = vmatmul.f32.gmra.mxu1 %v6486_v25  ;;  %v6547_v25 = vld [vmem:[#allocation121_spill] sm:$0xff]  ;;  %v6552_v47 = vld [vmem:[#allocation127_spill] sm:$0xff] }
 0x2a5   : > { %2996 = vmatmul.f32.gmra.mxu3 %v6543_v32 }
 0x2a6   : > { %v5793_v6 = vadd.f32 %v2433_v48, %v2311_v36  ;;  %2815 = vmatmul.f32.gmra.mxu2 %v6544_v4 }
 0x2a8   : > { %v2018_v50 = vpop.f32.mrf.mxu0 }
 0x2a9   : > { %v2191_v9 = vpop.f32.mrf.mxu1  ;;  %v2315_v49 = vpop.f32.mrf.mxu2 }
 0x2aa   : > { %v2192_v43 = vadd.f32 %v2191_v9, %v2010_v34  ;;  %v2439_v41 = vpop.f32.mrf.mxu3 }
 0x2ab   : > { %2581 = vmatmul.f32.gmra.mxu0 %v6545_v20 }
 0x2ac   : > { %v2316_v46 = vadd.f32 %v2315_v49, %v2192_v43  ;;  %2674 = vmatmul.f32.gmra.mxu1 %v6490_v30  ;;  %v6549_v30 = vld [vmem:[#allocation125_spill] sm:$0xff] }
 0x2ad   : > { %3000 = vmatmul.f32.gmra.mxu3 %v6546_v26 }
 0x2ae   : > { %v5799_v63 = vadd.f32 %v2439_v41, %v2316_v46  ;;  %2823 = vmatmul.f32.gmra.mxu2 %v6547_v25  ;;  %v6554_v41 = vld [vmem:[#allocation132_spill] sm:$0xff] }
 0x2b0   : > { %v2026_v14 = vpop.f32.mrf.mxu0 }
 0x2b1   : > { %v2195_v27 = vpop.f32.mrf.mxu1  ;;  %v2320_v13 = vpop.f32.mrf.mxu2 }
 0x2b2   : > { %v2196_v62 = vadd.f32 %v2195_v27, %v2018_v50  ;;  %v2445_v60 = vpop.f32.mrf.mxu3 }
 0x2b3   : > { %2585 = vmatmul.f32.gmra.mxu0 %v6502_v59 }
 0x2b4   : > { %v2321_v38 = vadd.f32 %v2320_v13, %v2196_v62  ;;  %2678 = vmatmul.f32.gmra.mxu1 %v6545_v20  ;;  %v6556_v13 = vld [vmem:[#allocation74_spill] sm:$0xff] }
 0x2b5   : > { %3004 = vmatmul.f32.gmra.mxu3 %v6548_v58 }
 0x2b6   : > { %v5805_v51 = vadd.f32 %v2445_v60, %v2321_v38  ;;  %2831 = vmatmul.f32.gmra.mxu2 %v6549_v30 }
 0x2b8   : > { %v2034_v56 = vpop.f32.mrf.mxu0 }
 0x2b9   : > { %v2199_v29 = vpop.f32.mrf.mxu1  ;;  %v2325_v10 = vpop.f32.mrf.mxu2 }
 0x2ba   : > { %v2200_v53 = vadd.f32 %v2199_v29, %v2026_v14  ;;  %v2451_v33 = vpop.f32.mrf.mxu3 }
 0x2bb   : > { %2589 = vmatmul.f32.gmra.mxu0 %v6509_v52 }
 0x2bc   : > { %v2326_v8 = vadd.f32 %v2325_v10, %v2200_v53  ;;  %2682 = vmatmul.f32.gmra.mxu1 %v6502_v59  ;;  %v6553_v59 = vld [vmem:[#allocation135_spill] sm:$0xff] }
 0x2bd   : > { %3008 = vmatmul.f32.gmra.mxu3 %v6550_v16 }
 0x2be   : > { %v5811_v18 = vadd.f32 %v2451_v33, %v2326_v8  ;;  %2839 = vmatmul.f32.gmra.mxu2 %v6551_v55  ;;  %v6557_v33 = vld [vmem:[#allocation77_spill] sm:$0xff]  ;;  %v6558_v8 = vld [vmem:[#allocation76_spill] sm:$0xff] }
 0x2c0   : > { %v2042_v54 = vpop.f32.mrf.mxu0 }
 0x2c1   : > { %v2203_v44 = vpop.f32.mrf.mxu1  ;;  %v2330_v28 = vpop.f32.mrf.mxu2 }
 0x2c2   : > { %v2204_v19 = vadd.f32 %v2203_v44, %v2034_v56  ;;  %v2457_v34 = vpop.f32.mrf.mxu3 }
 0x2c3   : > { %2593 = vmatmul.f32.gmra.mxu0 %v6516_v1 }
 0x2c4   : > { %v2331_v11 = vadd.f32 %v2330_v28, %v2204_v19  ;;  %2686 = vmatmul.f32.gmra.mxu1 %v6509_v52  ;;  %v6555_v52 = vld [vmem:[#allocation137_spill] sm:$0xff] }
 0x2c5   : > { %3012 = vmatmul.f32.gmra.mxu3 %v6552_v47 }
 0x2c6   : > { %v5817_v12 = vadd.f32 %v2457_v34, %v2331_v11  ;;  %2847 = vmatmul.f32.gmra.mxu2 %v6553_v59  ;;  %v6559_v34 = vld [vmem:[#allocation80_spill] sm:$0xff]  ;;  %v6560_v11 = vld [vmem:[#allocation79_spill] sm:$0xff] }
 0x2c8   : > { %v2050_v48 = vpop.f32.mrf.mxu0 }
 0x2c9   : > { %v2207_v36 = vpop.f32.mrf.mxu1  ;;  %v2335_v50 = vpop.f32.mrf.mxu2 }
 0x2ca   : > { %v2208_v4 = vadd.f32 %v2207_v36, %v2042_v54  ;;  %v2463_v9 = vpop.f32.mrf.mxu3 }
 0x2cb   : > { %2597 = vmatmul.f32.gmra.mxu0 %v6522_v15 }
 0x2cc   : > { %v2336_v43 = vadd.f32 %v2335_v50, %v2208_v4  ;;  %2690 = vmatmul.f32.gmra.mxu1 %v6516_v1 }
 0x2cd   : > { %3016 = vmatmul.f32.gmra.mxu3 %v6554_v41 }
 0x2ce   : > { %v5823_v49 = vadd.f32 %v2463_v9, %v2336_v43  ;;  %2855 = vmatmul.f32.gmra.mxu2 %v6555_v52  ;;  %v6561_v43 = vld [vmem:[#allocation84_spill] sm:$0xff]  ;;  %v6562_v52 = vld [vmem:[#allocation82_spill] sm:$0xff] }
 0x2d0   : > { %v2538_v20 = vpop.f32.mrf.mxu0 }
 0x2d1   : > { %v2211_v46 = vpop.f32.mrf.mxu1  ;;  %v2340_v14 = vpop.f32.mrf.mxu2  ;;  %v2539_v1 = vadd.f32 %v2538_v20, %v5739_v5 }
 0x2d2   : > { %v2212_v25 = vadd.f32 %v2211_v46, %v2050_v48  ;;  %v2469_v27 = vpop.f32.mrf.mxu3 }
 0x2d3   : > { %3070 = vmatmul.f32.vlgmr.msrb.gmra.mxu0 %v6556_v13  ;;  %v6563_v13 = vld [vmem:[#allocation88_spill] sm:$0xff] }
 0x2d4   : > { %v2341_v62 = vadd.f32 %v2340_v14, %v2212_v25  ;;  %2694 = vmatmul.f32.gmra.mxu1 %v6522_v15 }
 0x2d5   : > { %3440 = vmatmul.f32.vlgmr.msrb.gmra.mxu3 %v4696_v42 }
 0x2d6   : > { %v5829_v60 = vadd.f32 %v2469_v27, %v2341_v62  ;;  %3343 = vmatmul.f32.vlgmr.msrb.gmra.mxu2 %v4696_v42 }
 0x2d8   : > { %v2542_v38 = vpop.f32.mrf.mxu0 }
 0x2d9   : > { %v2635_v30 = vpop.f32.mrf.mxu1  ;;  %v2736_v29 = vpop.f32.mrf.mxu2  ;;  %v2543_v42 = vadd.f32 %v2542_v38, %v5745_v24 }
 0x2da   : > { %v2636_v56 = vadd.f32 %v2635_v30, %v2539_v1  ;;  %v2957_v53 = vpop.f32.mrf.mxu3  ;;  %v6564_v1 = vld [vmem:[#allocation86_spill] sm:$0xff] }
 0x2db   : > { %3075 = vmatmul.f32.gmra.mxu0 %v6557_v33  ;;  %v6565_v33 = vld [vmem:[#allocation92_spill] sm:$0xff] }
 0x2dc   : > { %v2737_v10 = vadd.f32 %v2736_v29, %v2636_v56  ;;  %3184 = vmatmul.f32.vlgmr.msrb.gmra.mxu1 %v6558_v8  ;;  %v6566_v8 = vld [vmem:[#allocation90_spill] sm:$0xff] }
 0x2dd   : > { %3444 = vmatmul.f32.gmra.mxu3 %v4723_v23 }
 0x2de   : > { %v5836_v15 = vadd.f32 %v2957_v53, %v2737_v10  ;;  %3347 = vmatmul.f32.gmra.mxu2 %v4723_v23 }
 0x2e0   : > { %v2546_v55 = vpop.f32.mrf.mxu0 }
 0x2e1   : > { %v2639_v5 = vpop.f32.mrf.mxu1  ;;  %v2744_v44 = vpop.f32.mrf.mxu2  ;;  %v2547_v23 = vadd.f32 %v2546_v55, %v5751_v37 }
 0x2e2   : > { %v2640_v54 = vadd.f32 %v2639_v5, %v2543_v42  ;;  %v2961_v19 = vpop.f32.mrf.mxu3 }
 0x2e3   : > { %3080 = vmatmul.f32.gmra.mxu0 %v6559_v34  ;;  %v6568_v34 = vld [vmem:[#allocation94_spill] sm:$0xff] }
 0x2e4   : > { %v2745_v28 = vadd.f32 %v2744_v44, %v2640_v54  ;;  %3190 = vmatmul.f32.gmra.mxu1 %v6560_v11 }
 0x2e5   : > { %3448 = vmatmul.f32.gmra.mxu3 %v4750_v0 }
 0x2e6   : > { %v5843_v59 = vadd.f32 %v2961_v19, %v2745_v28  ;;  %3351 = vmatmul.f32.gmra.mxu2 %v4750_v0  ;;  %v6567_v28 = vld [vmem:[#allocation96_spill] sm:$0xff] }
 0x2e8   : > { %v2550_v48 = vpop.f32.mrf.mxu0 }
 0x2e9   : > { %v2643_v24 = vpop.f32.mrf.mxu1  ;;  %v2752_v4 = vpop.f32.mrf.mxu2  ;;  %v2551_v0 = vadd.f32 %v2550_v48, %v5757_v57 }
 0x2ea   : > { %v2644_v36 = vadd.f32 %v2643_v24, %v2547_v23  ;;  %v2965_v50 = vpop.f32.mrf.mxu3 }
 0x2eb   : > { %3085 = vmatmul.f32.gmra.mxu0 %v6561_v43 }
 0x2ec   : > { %v2753_v9 = vadd.f32 %v2752_v4, %v2644_v36  ;;  %3196 = vmatmul.f32.gmra.mxu1 %v6562_v52 }
 0x2ed   : > { %3452 = vmatmul.f32.gmra.mxu3 %v6529_v2 }
 0x2ee   : > { %v5850_v46 = vadd.f32 %v2965_v50, %v2753_v9  ;;  %3355 = vmatmul.f32.gmra.mxu2 %v6529_v2  ;;  %v6569_v50 = vld [vmem:[#allocation100_spill] sm:$0xff]  ;;  %v6570_v9 = vld [vmem:[#allocation98_spill] sm:$0xff] }
 0x2f0   : > { %v2554_v20 = vpop.f32.mrf.mxu0 }
 0x2f1   : > { %v2647_v37 = vpop.f32.mrf.mxu1  ;;  %v2760_v14 = vpop.f32.mrf.mxu2  ;;  %v2555_v2 = vadd.f32 %v2554_v20, %v5763_v35 }
 0x2f2   : > { %v2648_v25 = vadd.f32 %v2647_v37, %v2551_v0  ;;  %v2969_v27 = vpop.f32.mrf.mxu3 }
 0x2f3   : > { %3090 = vmatmul.f32.gmra.mxu0 %v6563_v13 }
 0x2f4   : > { %v2761_v62 = vadd.f32 %v2760_v14, %v2648_v25  ;;  %3202 = vmatmul.f32.gmra.mxu1 %v6564_v1 }
 0x2f5   : > { %3456 = vmatmul.f32.gmra.mxu3 %v6531_v45 }
 0x2f6   : > { %v5857_v38 = vadd.f32 %v2969_v27, %v2761_v62  ;;  %3359 = vmatmul.f32.gmra.mxu2 %v6531_v45  ;;  %v6571_v27 = vld [vmem:[#allocation104_spill] sm:$0xff]  ;;  %v6572_v62 = vld [vmem:[#allocation102_spill] sm:$0xff] }
 0x2f8   : > { %v2558_v30 = vpop.f32.mrf.mxu0 }
 0x2f9   : > { %v2651_v57 = vpop.f32.mrf.mxu1  ;;  %v2768_v29 = vpop.f32.mrf.mxu2  ;;  %v2559_v45 = vadd.f32 %v2558_v30, %v5769_v3 }
 0x2fa   : > { %v2652_v56 = vadd.f32 %v2651_v57, %v2555_v2  ;;  %v2973_v53 = vpop.f32.mrf.mxu3 }
 0x2fb   : > { %3095 = vmatmul.f32.gmra.mxu0 %v6565_v33 }
 0x2fc   : > { %v2769_v10 = vadd.f32 %v2768_v29, %v2652_v56  ;;  %3208 = vmatmul.f32.gmra.mxu1 %v6566_v8  ;;  %v6573_v56 = vld [vmem:[#allocation108_spill] sm:$0xff]  ;;  %v6574_v29 = vld [vmem:[#allocation106_spill] sm:$0xff] }
 0x2fd   : > { %3460 = vmatmul.f32.gmra.mxu3 %v6533_v39 }
 0x2fe   : > { %v5864_v42 = vadd.f32 %v2973_v53, %v2769_v10  ;;  %3363 = vmatmul.f32.gmra.mxu2 %v6533_v39 }
 0x300   : > { %v2562_v55 = vpop.f32.mrf.mxu0 }
 0x301   : > { %v2655_v35 = vpop.f32.mrf.mxu1  ;;  %v2776_v54 = vpop.f32.mrf.mxu2  ;;  %v2563_v39 = vadd.f32 %v2562_v55, %v5775_v61 }
 0x302   : > { %v2656_v5 = vadd.f32 %v2655_v35, %v2559_v45  ;;  %v2977_v44 = vpop.f32.mrf.mxu3  ;;  %v6575_v35 = vld [vmem:[#allocation112_spill] sm:$0xff] }
 0x303   : > { %3100 = vmatmul.f32.gmra.mxu0 %v6567_v28 }
 0x304   : > { %v2777_v19 = vadd.f32 %v2776_v54, %v2656_v5  ;;  %3214 = vmatmul.f32.gmra.mxu1 %v6568_v34  ;;  %v6576_v5 = vld [vmem:[#allocation110_spill] sm:$0xff] }
 0x305   : > { %3464 = vmatmul.f32.gmra.mxu3 %v6535_v31 }
 0x306   : > { %v5871_v11 = vadd.f32 %v2977_v44, %v2777_v19  ;;  %3367 = vmatmul.f32.gmra.mxu2 %v6535_v31 }
 0x308   : > { %v2566_v23 = vpop.f32.mrf.mxu0 }
 0x309   : > { %v2659_v3 = vpop.f32.mrf.mxu1  ;;  %v2784_v24 = vpop.f32.mrf.mxu2  ;;  %v2567_v31 = vadd.f32 %v2566_v23, %v5781_v22  ;;  %v6577_v23 = vld [vmem:[#allocation116_spill] sm:$0xff] }
 0x30a   : > { %v2660_v48 = vadd.f32 %v2659_v3, %v2563_v39  ;;  %v2981_v36 = vpop.f32.mrf.mxu3  ;;  %v6578_v3 = vld [vmem:[#allocation114_spill] sm:$0xff] }
 0x30b   : > { %3105 = vmatmul.f32.gmra.mxu0 %v6569_v50 }
 0x30c   : > { %v2785_v4 = vadd.f32 %v2784_v24, %v2660_v48  ;;  %3220 = vmatmul.f32.gmra.mxu1 %v6570_v9 }
 0x30d   : > { %3468 = vmatmul.f32.gmra.mxu3 %v6537_v7 }
 0x30e   : > { %v5878_v43 = vadd.f32 %v2981_v36, %v2785_v4  ;;  %3371 = vmatmul.f32.gmra.mxu2 %v6537_v7 }
 0x310   : > { %v2570_v52 = vpop.f32.mrf.mxu0 }
 0x311   : > { %v2663_v61 = vpop.f32.mrf.mxu1  ;;  %v2571_v0 = vadd.f32 %v2570_v52, %v5787_v40  ;;  %v2792_v37 = vpop.f32.mrf.mxu2  ;;  %v6580_v52 = vld [vmem:[#allocation118_spill] sm:$0xff] }
 0x312   : > { %v2664_v20 = vadd.f32 %v2663_v61, %v2567_v31  ;;  %v2985_v25 = vpop.f32.mrf.mxu3  ;;  %v6579_v31 = vld [vmem:[#allocation120_spill] sm:$0xff] }
 0x313   : > { %3110 = vmatmul.f32.gmra.mxu0 %v6571_v27  ;;  %v6581_v27 = vld [vmem:[#allocation124_spill] sm:$0xff] }
 0x314   : > { %v2793_v14 = vadd.f32 %v2792_v37, %v2664_v20  ;;  %3226 = vmatmul.f32.gmra.mxu1 %v6572_v62  ;;  %v6582_v62 = vld [vmem:[#allocation122_spill] sm:$0xff] }
 0x315   : > { %3472 = vmatmul.f32.gmra.mxu3 %v6539_v21 }
 0x316   : > { %v5886_v13 = vadd.f32 %v2985_v25, %v2793_v14  ;;  %3375 = vmatmul.f32.gmra.mxu2 %v6539_v21 }
 0x318   : > { %v2574_v7 = vpop.f32.mrf.mxu0 }
 0x319   : > { %v2667_v22 = vpop.f32.mrf.mxu1  ;;  %v2575_v1 = vadd.f32 %v2574_v7, %v5793_v6  ;;  %v2800_v40 = vpop.f32.mrf.mxu2 }
 0x31a   : > { %v2668_v2 = vadd.f32 %v2667_v22, %v2571_v0  ;;  %v2989_v30 = vpop.f32.mrf.mxu3 }
 0x31b   : > { %3115 = vmatmul.f32.gmra.mxu0 %v6573_v56  ;;  %v6584_v56 = vld [vmem:[#allocation126_spill] sm:$0xff] }
 0x31c   : > { %v2801_v57 = vadd.f32 %v2800_v40, %v2668_v2  ;;  %3232 = vmatmul.f32.gmra.mxu1 %v6574_v29 }
 0x31d   : > { %3476 = vmatmul.f32.gmra.mxu3 %v6541_v17 }
 0x31e   : > { %v5893_v53 = vadd.f32 %v2989_v30, %v2801_v57  ;;  %3379 = vmatmul.f32.gmra.mxu2 %v6541_v17  ;;  %v6583_v57 = vld [vmem:[#allocation128_spill] sm:$0xff] }
 0x320   : > { %v2578_v10 = vpop.f32.mrf.mxu0 }
 0x321   : > { %v2671_v21 = vpop.f32.mrf.mxu1  ;;  %v2579_v33 = vadd.f32 %v2578_v10, %v5799_v63  ;;  %v2808_v6 = vpop.f32.mrf.mxu2 }
 0x322   : > { %v2672_v8 = vadd.f32 %v2671_v21, %v2575_v1  ;;  %v2993_v45 = vpop.f32.mrf.mxu3 }
 0x323   : > { %3120 = vmatmul.f32.gmra.mxu0 %v6575_v35 }
 0x324   : > { %v2809_v55 = vadd.f32 %v2808_v6, %v2672_v8  ;;  %3238 = vmatmul.f32.gmra.mxu1 %v6576_v5 }
 0x325   : > { %3480 = vmatmul.f32.gmra.mxu3 %v6543_v32 }
 0x326   : > { %v5900_v54 = vadd.f32 %v2993_v45, %v2809_v55  ;;  %3383 = vmatmul.f32.gmra.mxu2 %v6543_v32  ;;  %v6585_v45 = vld [vmem:[#allocation134_spill] sm:$0xff]  ;;  %v6586_v55 = vld [vmem:[#allocation131_spill] sm:$0xff] }
 0x328   : > { %v2582_v44 = vpop.f32.mrf.mxu0 }
 0x329   : > { %v2675_v17 = vpop.f32.mrf.mxu1  ;;  %v2583_v19 = vadd.f32 %v2582_v44, %v5805_v51  ;;  %v2816_v63 = vpop.f32.mrf.mxu2 }
 0x32a   : > { %v2676_v28 = vadd.f32 %v2675_v17, %v2579_v33  ;;  %v2997_v34 = vpop.f32.mrf.mxu3 }
 0x32b   : > { %3125 = vmatmul.f32.gmra.mxu0 %v6577_v23 }
 0x32c   : > { %v2817_v39 = vadd.f32 %v2816_v63, %v2676_v28  ;;  %3244 = vmatmul.f32.gmra.mxu1 %v6578_v3  ;;  %v6587_v28 = vld [vmem:[#allocation136_spill] sm:$0xff] }
 0x32d   : > { %3484 = vmatmul.f32.gmra.mxu3 %v6546_v26 }
 0x32e   : > { %v5907_v48 = vadd.f32 %v2997_v34, %v2817_v39  ;;  %3387 = vmatmul.f32.gmra.mxu2 %v6546_v26 }
 0x330   : > { %v2586_v24 = vpop.f32.mrf.mxu0 }
 0x331   : > { %v2679_v32 = vpop.f32.mrf.mxu1  ;;  %v2587_v36 = vadd.f32 %v2586_v24, %v5811_v18  ;;  %v2824_v51 = vpop.f32.mrf.mxu2 }
 0x332   : > { %v2680_v4 = vadd.f32 %v2679_v32, %v2583_v19  ;;  %v3001_v50 = vpop.f32.mrf.mxu3 }
 0x333   : > { %3130 = vmatmul.f32.gmra.mxu0 %v6579_v31 }
 0x334   : > { %v2825_v9 = vadd.f32 %v2824_v51, %v2680_v4  ;;  %3250 = vmatmul.f32.gmra.mxu1 %v6580_v52 }
 0x335   : > { %3488 = vmatmul.f32.gmra.mxu3 %v6548_v58 }
 0x336   : > { %v5914_v61 = vadd.f32 %v3001_v50, %v2825_v9  ;;  %3391 = vmatmul.f32.gmra.mxu2 %v6548_v58 }
 0x338   : > { %v2590_v0 = vpop.f32.mrf.mxu0 }
 0x339   : > { %v2683_v26 = vpop.f32.mrf.mxu1  ;;  %v2591_v20 = vadd.f32 %v2590_v0, %v5817_v12  ;;  %v2832_v18 = vpop.f32.mrf.mxu2 }
 0x33a   : > { %v2684_v37 = vadd.f32 %v2683_v26, %v2587_v36  ;;  %v3005_v25 = vpop.f32.mrf.mxu3 }
 0x33b   : > { %3135 = vmatmul.f32.gmra.mxu0 %v6581_v27 }
 0x33c   : > { %v2833_v14 = vadd.f32 %v2832_v18, %v2684_v37  ;;  %3256 = vmatmul.f32.gmra.mxu1 %v6582_v62 }
 0x33d   : > { %3492 = vmatmul.f32.gmra.mxu3 %v6550_v16 }
 0x33e   : > { %v5921_v7 = vadd.f32 %v3005_v25, %v2833_v14  ;;  %3395 = vmatmul.f32.gmra.mxu2 %v6550_v16 }
 0x340   : > { %v2594_v22 = vpop.f32.mrf.mxu0 }
 0x341   : > { %v2687_v58 = vpop.f32.mrf.mxu1  ;;  %v2595_v1 = vadd.f32 %v2594_v22, %v5823_v49  ;;  %v2840_v12 = vpop.f32.mrf.mxu2 }
 0x342   : > { %v2688_v2 = vadd.f32 %v2687_v58, %v2591_v20  ;;  %v3009_v40 = vpop.f32.mrf.mxu3 }
 0x343   : > { %3140 = vmatmul.f32.gmra.mxu0 %v6583_v57 }
 0x344   : > { %v2841_v30 = vadd.f32 %v2840_v12, %v2688_v2  ;;  %3262 = vmatmul.f32.gmra.mxu1 %v6584_v56 }
 0x345   : > { %3496 = vmatmul.f32.gmra.mxu3 %v6552_v47 }
 0x346   : > { %v5928_v29 = vadd.f32 %v3009_v40, %v2841_v30  ;;  %3399 = vmatmul.f32.gmra.mxu2 %v6552_v47 }
 0x348   : > { %v2598_v10 = vpop.f32.mrf.mxu0 }
 0x349   : > { %v2691_v16 = vpop.f32.mrf.mxu1  ;;  %v2599_v21 = vadd.f32 %v2598_v10, %v5829_v60  ;;  %v2848_v49 = vpop.f32.mrf.mxu2 }
 0x34a   : > { %v2692_v33 = vadd.f32 %v2691_v16, %v2595_v1  ;;  %v3013_v8 = vpop.f32.mrf.mxu3 }
 0x34b   : > { %3145 = vmatmul.f32.gmra.mxu0 %v6585_v45 }
 0x34c   : > { %v2849_v6 = vadd.f32 %v2848_v49, %v2692_v33  ;;  %3268 = vmatmul.f32.gmra.mxu1 %v6586_v55 }
 0x34d   : > { %3500 = vmatmul.f32.gmra.mxu3 %v6554_v41 }
 0x34e   : > { %v5935_v35 = vadd.f32 %v3013_v8, %v2849_v6  ;;  %3403 = vmatmul.f32.gmra.mxu2 %v6554_v41 }
 0x350   : > { %v3071_v47 = vpop.f32.mrf.mxu0 }
 0x351   : > { %v2695_v5 = vpop.f32.mrf.mxu1  ;;  %v2856_v17 = vpop.f32.mrf.mxu2  ;;  %v3072_v34 = vadd.f32 %v3071_v47, %v5836_v15 }
 0x352   : > { %v2696_v44 = vadd.f32 %v2695_v5, %v2599_v21  ;;  %v3017_v60 = vpop.f32.mrf.mxu3 }
 0x354   : > { %v2857_v19 = vadd.f32 %v2856_v17, %v2696_v44  ;;  %3274 = vmatmul.f32.gmra.mxu1 %v6587_v28 }
 0x356   : > { %v5940_v63 = vadd.f32 %v3017_v60, %v2857_v19 }
 0x358   : > { %v3076_v39 = vpop.f32.mrf.mxu0 }
 0x359   : > { %v3185_v23 = vpop.f32.mrf.mxu1  ;;  %v3344_v24 = vpop.f32.mrf.mxu2  ;;  %v3077_v4 = vadd.f32 %v3076_v39, %v5843_v59 }
 0x35a   : > { %v3186_v3 = vadd.f32 %v3185_v23, %v3072_v34  ;;  %v3441_v32 = vpop.f32.mrf.mxu3 }
 0x35c   : > { %v3345_v41 = vadd.f32 %v3344_v24, %v3186_v3 }
 0x35e   : > { %v3442_v36 = vadd.f32 %v3441_v32, %v3345_v41 }
 0x360   : > { %3505 = vst [vmem:[%s5457_s15 + $0x8] sm:$0xff] %v3442_v36  ;;  %v3081_v51 = vpop.f32.mrf.mxu0 }
 0x361   : > { %v3191_v50 = vpop.f32.mrf.mxu1  ;;  %v3348_v31 = vpop.f32.mrf.mxu2  ;;  %v3082_v15 = vadd.f32 %v3081_v51, %v5850_v46 }
 0x362   : > { %v3192_v9 = vadd.f32 %v3191_v50, %v3077_v4  ;;  %v3445_v52 = vpop.f32.mrf.mxu3 }
 0x364   : > { %v3349_v0 = vadd.f32 %v3348_v31, %v3192_v9 }
 0x366   : > { %v3446_v26 = vadd.f32 %v3445_v52, %v3349_v0 }
 0x368   : > { %3507 = vst [vmem:[%s5457_s15 + $0x18] sm:$0xff] %v3446_v26  ;;  %v3086_v20 = vpop.f32.mrf.mxu0 }
 0x369   : > { %v3197_v37 = vpop.f32.mrf.mxu1  ;;  %v3352_v25 = vpop.f32.mrf.mxu2  ;;  %v3087_v62 = vadd.f32 %v3086_v20, %v5857_v38 }
 0x36a   : > { %v3198_v18 = vadd.f32 %v3197_v37, %v3082_v15  ;;  %v3449_v14 = vpop.f32.mrf.mxu3 }
 0x36c   : > { %v3353_v27 = vadd.f32 %v3352_v25, %v3198_v18 }
 0x36e   : > { %v3450_v59 = vadd.f32 %v3449_v14, %v3353_v27 }
 0x370   : > { %3509 = vst [vmem:[%s5457_s15 + $0x28] sm:$0xff] %v3450_v59  ;;  %v3091_v22 = vpop.f32.mrf.mxu0 }
 0x371   : > { %v3203_v58 = vpop.f32.mrf.mxu1  ;;  %v3356_v2 = vpop.f32.mrf.mxu2  ;;  %v3092_v30 = vadd.f32 %v3091_v22, %v5864_v42 }
 0x372   : > { %v3204_v1 = vadd.f32 %v3203_v58, %v3087_v62  ;;  %v3453_v12 = vpop.f32.mrf.mxu3 }
 0x374   : > { %v3357_v40 = vadd.f32 %v3356_v2, %v3204_v1 }
 0x376   : > { %v3454_v46 = vadd.f32 %v3453_v12, %v3357_v40 }
 0x378   : > { %3511 = vst [vmem:[%s5457_s15 + $0x38] sm:$0xff] %v3454_v46  ;;  %v3096_v57 = vpop.f32.mrf.mxu0 }
 0x379   : > { %v3209_v56 = vpop.f32.mrf.mxu1  ;;  %v3360_v16 = vpop.f32.mrf.mxu2  ;;  %v3097_v49 = vadd.f32 %v3096_v57, %v5871_v11 }
 0x37a   : > { %v3210_v10 = vadd.f32 %v3209_v56, %v3092_v30  ;;  %v3457_v21 = vpop.f32.mrf.mxu3 }
 0x37c   : > { %v3361_v33 = vadd.f32 %v3360_v16, %v3210_v10 }
 0x37e   : > { %v3458_v38 = vadd.f32 %v3457_v21, %v3361_v33 }
 0x380   : > { %3513 = vst [vmem:[%s5457_s15 + $0x48] sm:$0xff] %v3458_v38  ;;  %v3101_v8 = vpop.f32.mrf.mxu0 }
 0x381   : > { %v3215_v6 = vpop.f32.mrf.mxu1  ;;  %v3364_v55 = vpop.f32.mrf.mxu2  ;;  %v3102_v44 = vadd.f32 %v3101_v8, %v5878_v43 }
 0x382   : > { %v3216_v45 = vadd.f32 %v3215_v6, %v3097_v49  ;;  %v3461_v5 = vpop.f32.mrf.mxu3 }
 0x384   : > { %v3365_v47 = vadd.f32 %v3364_v55, %v3216_v45 }
 0x386   : > { %v3462_v42 = vadd.f32 %v3461_v5, %v3365_v47 }
 0x388   : > { %3515 = vst [vmem:[%s5457_s15 + $0x58] sm:$0xff] %v3462_v42  ;;  %v3106_v17 = vpop.f32.mrf.mxu0 }
 0x389   : > { %v3221_v60 = vpop.f32.mrf.mxu1  ;;  %v3368_v28 = vpop.f32.mrf.mxu2  ;;  %v3107_v23 = vadd.f32 %v3106_v17, %v5886_v13 }
 0x38a   : > { %v3222_v19 = vadd.f32 %v3221_v60, %v3102_v44  ;;  %v3465_v34 = vpop.f32.mrf.mxu3 }
 0x38c   : > { %v3369_v39 = vadd.f32 %v3368_v28, %v3222_v19 }
 0x38e   : > { %v3466_v11 = vadd.f32 %v3465_v34, %v3369_v39 }
 0x390   : > { %3517 = vst [vmem:[%s5457_s15 + $0x68] sm:$0xff] %v3466_v11  ;;  %v3111_v3 = vpop.f32.mrf.mxu0 }
 0x391   : > { %v3227_v24 = vpop.f32.mrf.mxu1  ;;  %v3372_v41 = vpop.f32.mrf.mxu2  ;;  %v3112_v51 = vadd.f32 %v3111_v3, %v5893_v53 }
 0x392   : > { %v3228_v32 = vadd.f32 %v3227_v24, %v3107_v23  ;;  %v3469_v36 = vpop.f32.mrf.mxu3 }
 0x394   : > { %v3373_v4 = vadd.f32 %v3372_v41, %v3228_v32 }
 0x396   : > { %v3470_v43 = vadd.f32 %v3469_v36, %v3373_v4 }
 0x398   : > { %3519 = vst [vmem:[%s5457_s15 + $0x78] sm:$0xff] %v3470_v43  ;;  %v3116_v50 = vpop.f32.mrf.mxu0 }
 0x399   : > { %v3233_v9 = vpop.f32.mrf.mxu1  ;;  %v3376_v52 = vpop.f32.mrf.mxu2  ;;  %v3117_v15 = vadd.f32 %v3116_v50, %v5900_v54 }
 0x39a   : > { %v3234_v31 = vadd.f32 %v3233_v9, %v3112_v51  ;;  %v3473_v0 = vpop.f32.mrf.mxu3 }
 0x39c   : > { %v3377_v26 = vadd.f32 %v3376_v52, %v3234_v31 }
 0x39e   : > { %v3474_v13 = vadd.f32 %v3473_v0, %v3377_v26 }
 0x3a0   : > { %3521 = vst [vmem:[%s5457_s15 + $0x88] sm:$0xff] %v3474_v13  ;;  %v3121_v20 = vpop.f32.mrf.mxu0 }
 0x3a1   : > { %v3239_v37 = vpop.f32.mrf.mxu1  ;;  %v3380_v25 = vpop.f32.mrf.mxu2  ;;  %v3122_v59 = vadd.f32 %v3121_v20, %v5907_v48 }
 0x3a2   : > { %v3240_v18 = vadd.f32 %v3239_v37, %v3117_v15  ;;  %v3477_v14 = vpop.f32.mrf.mxu3 }
 0x3a4   : > { %v3381_v27 = vadd.f32 %v3380_v25, %v3240_v18 }
 0x3a6   : > { %v3478_v53 = vadd.f32 %v3477_v14, %v3381_v27 }
 0x3a8   : > { %3523 = vst [vmem:[%s5457_s15 + $0x98] sm:$0xff] %v3478_v53  ;;  %v3126_v62 = vpop.f32.mrf.mxu0 }
 0x3a9   : > { %v3245_v22 = vpop.f32.mrf.mxu1  ;;  %v3384_v1 = vpop.f32.mrf.mxu2  ;;  %v3127_v40 = vadd.f32 %v3126_v62, %v5914_v61 }
 0x3aa   : > { %v3246_v58 = vadd.f32 %v3245_v22, %v3122_v59  ;;  %v3481_v2 = vpop.f32.mrf.mxu3 }
 0x3ac   : > { %v3385_v12 = vadd.f32 %v3384_v1, %v3246_v58 }
 0x3ae   : > { %v3482_v54 = vadd.f32 %v3481_v2, %v3385_v12 }
 0x3b0   : > { %3525 = vst [vmem:[%s5457_s15 + $0xa8] sm:$0xff] %v3482_v54  ;;  %v3131_v46 = vpop.f32.mrf.mxu0 }
 0x3b1   : > { %v3251_v30 = vpop.f32.mrf.mxu1  ;;  %v3388_v56 = vpop.f32.mrf.mxu2  ;;  %v3132_v21 = vadd.f32 %v3131_v46, %v5921_v7 }
 0x3b2   : > { %v3252_v57 = vadd.f32 %v3251_v30, %v3127_v40  ;;  %v3485_v10 = vpop.f32.mrf.mxu3 }
 0x3b4   : > { %v3389_v16 = vadd.f32 %v3388_v56, %v3252_v57 }
 0x3b6   : > { %v3486_v48 = vadd.f32 %v3485_v10, %v3389_v16 }
 0x3b8   : > { %3527 = vst [vmem:[%s5457_s15 + $0xb8] sm:$0xff] %v3486_v48  ;;  %v3136_v33 = vpop.f32.mrf.mxu0 }
 0x3b9   : > { %v3257_v38 = vpop.f32.mrf.mxu1  ;;  %v3392_v8 = vpop.f32.mrf.mxu2  ;;  %v3137_v55 = vadd.f32 %v3136_v33, %v5928_v29 }
 0x3ba   : > { %v3258_v49 = vadd.f32 %v3257_v38, %v3132_v21  ;;  %v3489_v6 = vpop.f32.mrf.mxu3 }
 0x3bc   : > { %v3393_v45 = vadd.f32 %v3392_v8, %v3258_v49 }
 0x3be   : > { %v3490_v61 = vadd.f32 %v3489_v6, %v3393_v45 }
 0x3c0   : > { %3529 = vst [vmem:[%s5457_s15 + $0xc8] sm:$0xff] %v3490_v61  ;;  %v3141_v17 = vpop.f32.mrf.mxu0 }
 0x3c1   : > { %v3263_v5 = vpop.f32.mrf.mxu1  ;;  %v3396_v42 = vpop.f32.mrf.mxu2  ;;  %v3142_v19 = vadd.f32 %v3141_v17, %v5935_v35 }
 0x3c2   : > { %v3264_v47 = vadd.f32 %v3263_v5, %v3137_v55  ;;  %v3493_v44 = vpop.f32.mrf.mxu3 }
 0x3c4   : > { %v3397_v7 = vadd.f32 %v3396_v42, %v3264_v47 }
 0x3c6   : > { %v3494_v60 = vadd.f32 %v3493_v44, %v3397_v7 }
 0x3c8   : > { %3531 = vst [vmem:[%s5457_s15 + $0xd8] sm:$0xff] %v3494_v60  ;;  %v3146_v29 = vpop.f32.mrf.mxu0 }
 0x3c9   : > { %v3269_v28 = vpop.f32.mrf.mxu1  ;;  %v3400_v39 = vpop.f32.mrf.mxu2  ;;  %v3147_v24 = vadd.f32 %v3146_v29, %v5940_v63 }
 0x3ca   : > { %v3270_v34 = vadd.f32 %v3269_v28, %v3142_v19  ;;  %v3497_v11 = vpop.f32.mrf.mxu3 }
 0x3cc   : > { %v3401_v23 = vadd.f32 %v3400_v39, %v3270_v34 }
 0x3ce   : > { %v3498_v3 = vadd.f32 %v3497_v11, %v3401_v23 }
 0x3d0   : > { %3533 = vst [vmem:[%s5457_s15 + $0xe8] sm:$0xff] %v3498_v3 }
 0x3d1   : > { %v3275_v35 = vpop.f32.mrf.mxu1  ;;  %v3404_v41 = vpop.f32.mrf.mxu2 }
 0x3d2   : > { %v3276_v32 = vadd.f32 %v3275_v35, %v3147_v24  ;;  %v3501_v36 = vpop.f32.mrf.mxu3 }
 0x3d4   : > { %v3405_v4 = vadd.f32 %v3404_v41, %v3276_v32 }
 0x3d6   : > { %v3502_v43 = vadd.f32 %v3501_v36, %v3405_v4 }
 0x3d8   : > { %3535 = vst [vmem:[%s5457_s15 + $0xf8] sm:$0xff] %v3502_v43 }
 0x3d9   : > { %3806 = shalt.err (!%p3803_p10)
}
 0x3da   : > { %s3854_s5 = smov 256   ;;  %s3855_s30 = smov 16  }
 0x3db   : > { %3664 = dma.vmem_to_hbm [thread:$0]  (%p3940_p3), %s3551_s17, 4096, %s3553_s18, %s3537_s13, %s3854_s5, %s3854_s5, %s3855_s30  }
 0x3dc PF: > { %s3567_s6 = sand.u32 1, %s3837_s9   ;;  %p6588_p12 = scmp.ge.s32.totalorder %s3849_s12, 2 }
 0x3dd   : > { %s3568_s7 = scalar_lea.sflag [#allocation4], %s3567_s6 }
 0x3de   : > { %p3675_p13 = pnand %p6588_p12, %p3906_p6 }
 0x3e0   : > { %p3676_p0 = pneg %p3675_p13 }
 0x3e2   : > { %3832 = dma.done.wait (%p3676_p0), %s3568_s7, 4096  }
 0x3e3   : > { %3834 = vsyncadd (%p3676_p0), %s3568_s7, 4294963200  ;;  %p16_p5 = scmp.ge.s32.totalorder %s3924_s23, 4   ;;  %s6589_s9 = smov %s3841_s10 }
 0x3e4   : > { %s6590_s10 = smov %s3845_s11  ;;  %s6591_s11 = smov %s3936_s28 }
 0x3e5   : > { %s6592_s12 = smov %s3924_s23  ;;  %18 = sbr.rel (!%p16_p5) target bundleno = 6 (0x6), region = 77 }
 0x3ea   :  { %3574 = vsyncpa [#allocation3], 1 }
 0x3eb   :  { %3576 = vsyncpa [#allocation3 + $0x1], 1 }
 0x3ec   :  { %3577 = vsyncpa [#allocation6], 1 }
 0x3ed   :  { %3578 = vsyncpa [#allocation4], 1 }
 0x3ee   :  { %3580 = vsyncpa [#allocation4 + $0x1], 1 }

</bundles_post_ra>
